<compile_context>
chip_gen: v7x
topology: tpu7x:2x2x1
jax: 0.10.0
libtpu: 0.0.40
codegen_flags: <defaults>
</compile_context>

<pallas_src>
import numpy as np
import jax
import jax.numpy as jnp
from jax import lax
from jax.experimental import pallas as pl
from jax.experimental.pallas import tpu as pltpu

OUT_CH1 = 64      # Mexh_fast(64, 16)
K1 = 16           # effective Mexh kernel size
OUT_CH2 = 16      # Conv1d(64, 16, 5)
K2 = 5
POOL_OUT = 25     # AdaptiveMaxPool1d(25)
FC1, FC2, FC3 = 120, 84, 10
OUT_PAD = 128     # lane-dense padded logits width (sliced back to FC3)
BN_EPS = 1e-5


# ----------------------------- parameter setup (glue) -----------------------------
def mexh(p):
    return (1.0 - p * p) * jnp.exp(-p * p / 2.0)


def mexh_filters(a_, b_):
    half = K1 // 2
    t_right = jnp.linspace(0.0, K1 / 2 - 1, half)           # [0 .. 7]
    t_left = jnp.linspace(-(K1 / 2) + 1, -1.0, half)         # [-7 .. -1]
    shift = b_ / a_                                          # (64, 1)
    p_right = t_right[None, :] - shift
    p_left = t_left[None, :] - shift
    return jnp.concatenate([mexh(p_left), mexh(p_right)], axis=1)  # (64, 16)


def init_params(key):
    ks = jax.random.split(key, 12)
    P = {}
    P['a_'] = jnp.linspace(1.0, 10.0, OUT_CH1).reshape(-1, 1)
    P['b_'] = jnp.linspace(0.0, 10.0, OUT_CH1).reshape(-1, 1)
    P['gamma1'] = 1.0 + 0.1 * jax.random.normal(ks[0], (OUT_CH1, 1))
    P['beta1'] = 0.1 * jax.random.normal(ks[1], (OUT_CH1, 1))
    P['mean1'] = jnp.zeros((OUT_CH1, 1))
    P['var1'] = jnp.ones((OUT_CH1, 1))
    P['w2'] = 0.05 * jax.random.normal(ks[2], (OUT_CH2, OUT_CH1, K2))
    P['b2'] = 0.05 * jax.random.normal(ks[3], (OUT_CH2, 1))
    P['gamma2'] = 1.0 + 0.1 * jax.random.normal(ks[4], (OUT_CH2, 1))
    P['beta2'] = 0.1 * jax.random.normal(ks[5], (OUT_CH2, 1))
    P['mean2'] = jnp.zeros((OUT_CH2, 1))
    P['var2'] = jnp.ones((OUT_CH2, 1))
    P['Wfc1'] = 0.05 * jax.random.normal(ks[6], (FC1, OUT_CH2 * POOL_OUT))
    P['bfc1'] = 0.05 * jax.random.normal(ks[7], (FC1,))
    P['Wfc2'] = 0.09 * jax.random.normal(ks[8], (FC2, FC1))
    P['bfc2'] = 0.05 * jax.random.normal(ks[9], (FC2,))
    P['Wfc3'] = 0.1 * jax.random.normal(ks[10], (FC3, FC2))
    P['bfc3'] = 0.05 * jax.random.normal(ks[11], (FC3,))
    return P


def build_pool_mats(L1, Lp1, Lc2):
    """0/1 selection matrices for MaxPool1d(2,2) and AdaptiveMaxPool1d(25)."""
    se = np.zeros((L1, Lp1), np.float32)
    so = np.zeros((L1, Lp1), np.float32)
    for j in range(Lp1):
        se[2 * j, j] = 1.0
        so[2 * j + 1, j] = 1.0
    starts = [(i * Lc2) // POOL_OUT for i in range(POOL_OUT)]
    ends = [((i + 1) * Lc2 + POOL_OUT - 1) // POOL_OUT for i in range(POOL_OUT)]
    R = max(e - s for s, e in zip(starts, ends))
    sa = np.zeros((R, Lc2, POOL_OUT), np.float32)
    for i in range(POOL_OUT):
        for r in range(ends[i] - starts[i]):
            sa[r, starts[i] + r, i] = 1.0
    return jnp.asarray(se), jnp.asarray(so), jnp.asarray(sa)


# ----------------------------- Pallas kernel -----------------------------
def lenet_kernel(x1_ref, w1_ref, c1_ref, se_ref, so_ref, w2_ref, c2_ref,
                 sa_ref, wf1_ref, bf1_ref, wf2_ref, bf2_ref, wf3_ref, bf3_ref,
                 out_ref):
    B = x1_ref.shape[0]
    L1 = x1_ref.shape[2]        # conv1 output length
    Lp1 = se_ref.shape[1]       # after MaxPool1d(2,2)
    Lc2 = sa_ref.shape[1]       # conv2 output length

    # --- conv1: Mexh_fast (BN1 scale folded into weights), MXU matmuls ---
    x1 = x1_ref[...]                                                 # (B,16,L1) bf16
    w1b = jnp.broadcast_to(w1_ref[...], (B,) + w1_ref.shape)         # (B,64,16) bf16
    y1 = jnp.einsum('bok,bkl->bol', w1b, x1,
                    preferred_element_type=jnp.float32)              # (B,64,L1) f32
    y1 = jnp.maximum(y1 + c1_ref[...], 0.0).astype(jnp.bfloat16)     # BN shift + ReLU

    # --- MaxPool1d(2,2): exact even/odd selection GEMMs, M = B*64 ---
    y1f = y1.reshape(B * OUT_CH1, L1)
    p1 = jnp.maximum(
        jnp.dot(y1f, se_ref[...], preferred_element_type=jnp.float32),
        jnp.dot(y1f, so_ref[...], preferred_element_type=jnp.float32))
    p1 = p1.astype(jnp.bfloat16).reshape(B, OUT_CH1, Lp1)            # (B,64,Lp1)

    # --- conv2: Conv1d(64,16,5) as one K=320 matmul per sample ---
    p1c = jnp.concatenate([p1[:, :, k:k + Lc2] for k in range(K2)],
                          axis=1)                                    # (B,320,Lc2)
    w2b = jnp.broadcast_to(w2_ref[...], (B,) + w2_ref.shape)         # (B,16,320)
    y2 = jnp.einsum('bof,bfl->bol', w2b, p1c,
                    preferred_element_type=jnp.float32)              # (B,16,Lc2)
    y2 = jnp.maximum(y2 + c2_ref[...], 0.0).astype(jnp.bfloat16)     # bias+BN2 shift + ReLU

    # --- AdaptiveMaxPool1d(25): exact 0/1 selection GEMMs, M = B*16 ---
    y2f = y2.reshape(B * OUT_CH2, Lc2)
    p2 = jnp.dot(y2f, sa_ref[0], preferred_element_type=jnp.float32)
    for r in range(1, sa_ref.shape[0]):
        p2 = jnp.maximum(p2, jnp.dot(y2f, sa_ref[r],
                                     preferred_element_type=jnp.float32))
    p2 = p2.astype(jnp.bfloat16).reshape(B, OUT_CH2, POOL_OUT)       # (B,16,25)

    # --- flatten (channel-major c*25+p) + FC head as (B, .) GEMMs ---
    flat = jnp.concatenate([p2[:, c:c + 1, :] for c in range(OUT_CH2)],
                           axis=2)                                   # (B,1,400)
    flat = flat.reshape(B, OUT_CH2 * POOL_OUT)                       # (B,400)

    z = jnp.dot(flat, wf1_ref[...],
                preferred_element_type=jnp.float32) + bf1_ref[...]   # (B,120)
    z = jnp.maximum(z, 0.0).astype(jnp.bfloat16)
    z = jnp.dot(z, wf2_ref[...],
                preferred_element_type=jnp.float32) + bf2_ref[...]   # (B,84)
    z = jnp.maximum(z, 0.0).astype(jnp.bfloat16)
    z = jnp.dot(z, wf3_ref[...],
                preferred_element_type=jnp.float32) + bf3_ref[...]   # (B,128)
    out_ref[...] = z                                                 # lane-dense store


# ----------------------------- wrapper -----------------------------
def mexhat_lenet_forward(x, P, block_b=8):
    N, c_in, L = x.shape
    assert c_in == 1, "Mexh_fast only supports a single input channel"
    assert block_b % 8 == 0
    L1 = L + 2 - K1 + 1          # conv1 out (padding=1)
    Lp1 = L1 // 2                # after MaxPool1d(2,2)
    Lc2 = Lp1 - K2 + 1           # conv2 out
    assert Lc2 >= POOL_OUT

    # Mexh filter bank; fold BatchNorm (eval mode) scales into the conv weights.
    w1 = mexh_filters(P['a_'], P['b_'])                              # (64,16)
    s1 = P['gamma1'] / jnp.sqrt(P['var1'] + BN_EPS)                  # (64,1)
    c1 = (P['beta1'] - P['mean1'] * s1).astype(jnp.float32)          # (64,1)
    w1b = (w1 * s1).astype(jnp.bfloat16)

    s2 = P['gamma2'] / jnp.sqrt(P['var2'] + BN_EPS)                  # (16,1)
    c2 = (P['beta2'] - P['mean2'] * s2 + s2 * P['b2']).astype(jnp.float32)
    # w2r[oc, k*64+ic] = w2[oc, ic, k] * s2[oc]
    w2r = (jnp.transpose(P['w2'], (0, 2, 1)).reshape(OUT_CH2, K2 * OUT_CH1)
           * s2).astype(jnp.bfloat16)

    se, so, sa = build_pool_mats(L1, Lp1, Lc2)
    se = se.astype(jnp.bfloat16)
    so = so.astype(jnp.bfloat16)
    sa = sa.astype(jnp.bfloat16)

    wf1 = P['Wfc1'].T.astype(jnp.bfloat16)                           # (400,120)
    bf1 = P['bfc1'].reshape(1, FC1).astype(jnp.float32)
    wf2 = P['Wfc2'].T.astype(jnp.bfloat16)                           # (120,84)
    bf2 = P['bfc2'].reshape(1, FC2).astype(jnp.float32)
    wf3 = jnp.pad(P['Wfc3'].T, ((0, 0), (0, OUT_PAD - FC3))).astype(jnp.bfloat16)
    bf3 = jnp.pad(P['bfc3'].reshape(1, FC3),
                  ((0, 0), (0, OUT_PAD - FC3))).astype(jnp.float32)

    # Batch padding + conv1 im2col (padding=1) done once in the wrapper.
    Np = ((N + block_b - 1) // block_b) * block_b
    xp = jnp.pad(x.astype(jnp.float32), ((0, Np - N), (0, 0), (1, 1)))[:, 0, :]
    x1 = jnp.stack([xp[:, k:k + L1] for k in range(K1)],
                   axis=1).astype(jnp.bfloat16)                      # (Np,16,L1)

    consts = (w1b, c1, se, so, w2r, c2, sa, wf1, bf1, wf2, bf2, wf3, bf3)

    def full_spec(a):
        zeros = (0,) * a.ndim
        return pl.BlockSpec(a.shape, lambda i: zeros)

    out = pl.pallas_call(
        lenet_kernel,
        out_shape=jax.ShapeDtypeStruct((Np, OUT_PAD), jnp.float32),
        grid=(Np // block_b,),
        in_specs=([pl.BlockSpec((block_b, K1, L1), lambda i: (i, 0, 0))]
                  + [full_spec(a) for a in consts]),
        out_specs=pl.BlockSpec((block_b, OUT_PAD), lambda i: (i, 0)),
        compiler_params=pltpu.CompilerParams(
            dimension_semantics=("parallel",)),
    )(x1, *consts)
    return out[:N, :FC3]


# ----------------------------- pure-JAX reference -----------------------------
def ref_forward(x, P):
    dn = ('NCH', 'OIH', 'NCH')
    w1 = mexh_filters(P['a_'], P['b_'])
    y = lax.conv_general_dilated(x, w1[:, None, :], (1,), [(1, 1)],
                                 dimension_numbers=dn)
    s1 = P['gamma1'] / jnp.sqrt(P['var1'] + BN_EPS)
    t1 = P['beta1'] - P['mean1'] * s1
    y = jnp.maximum(y * s1[None] + t1[None], 0.0)
    Lp1 = y.shape[-1] // 2
    y = y[..., :2 * Lp1].reshape(y.shape[0], y.shape[1], Lp1, 2).max(-1)
    y = lax.conv_general_dilated(y, P['w2'], (1,), [(0, 0)],
                                 dimension_numbers=dn) + P['b2'][None]
    s2 = P['gamma2'] / jnp.sqrt(P['var2'] + BN_EPS)
    t2 = P['beta2'] - P['mean2'] * s2
    y = jnp.maximum(y * s2[None] + t2[None], 0.0)
    Lc2 = y.shape[-1]
    cols = []
    for i in range(POOL_OUT):
        s = (i * Lc2) // POOL_OUT
        e = ((i + 1) * Lc2 + POOL_OUT - 1) // POOL_OUT
        cols.append(y[..., s:e].max(-1))
    y = jnp.stack(cols, axis=-1)                  # (N, 16, 25)
    v = y.reshape(y.shape[0], -1)                 # (N, 400)
    v = jnp.maximum(v @ P['Wfc1'].T + P['bfc1'], 0.0)
    v = jnp.maximum(v @ P['Wfc2'].T + P['bfc2'], 0.0)
    return v @ P['Wfc3'].T + P['bfc3']


if __name__ == "__main__":
    key = jax.random.PRNGKey(0)
    kx, kp = jax.random.split(key)
    P = init_params(kp)
    N, L = 16, 128
    x = jax.random.normal(kx, (N, 1, L), jnp.float32)      # (N, C=1, L)

    out = jax.block_until_ready(mexhat_lenet_forward(x, P, block_b=8))
    ref = jax.block_until_ready(ref_forward(x, P))

    assert out.shape == (N, FC3)
    # bf16 MXU operands (f32 accumulate) => small rounding vs the f32 reference.
    np.testing.assert_allclose(np.asarray(out), np.asarray(ref),
                               rtol=3e-2, atol=3e-2)
    print("KERNEL_OK")
</pallas_src>

<mosaic_0001>
module attributes {stable_mosaic.version = 11 : i64} {
  func.func @lenet_kernel(%arg0: i32, %arg1: memref<8x16x115xbf16, #tpu.memory_space<vmem>>, %arg2: memref<64x16xbf16, #tpu.memory_space<vmem>>, %arg3: memref<64x1xf32, #tpu.memory_space<vmem>>, %arg4: memref<115x57xbf16, #tpu.memory_space<vmem>>, %arg5: memref<115x57xbf16, #tpu.memory_space<vmem>>, %arg6: memref<16x320xbf16, #tpu.memory_space<vmem>>, %arg7: memref<16x1xf32, #tpu.memory_space<vmem>>, %arg8: memref<4x53x25xbf16, #tpu.memory_space<vmem>>, %arg9: memref<400x120xbf16, #tpu.memory_space<vmem>>, %arg10: memref<1x120xf32, #tpu.memory_space<vmem>>, %arg11: memref<120x84xbf16, #tpu.memory_space<vmem>>, %arg12: memref<1x84xf32, #tpu.memory_space<vmem>>, %arg13: memref<84x128xbf16, #tpu.memory_space<vmem>>, %arg14: memref<1x128xf32, #tpu.memory_space<vmem>>, %arg15: memref<8x128xf32, #tpu.memory_space<vmem>>) attributes {dimension_semantics = [#tpu.dimension_semantics<parallel>], iteration_bounds = array<i64: 2>, scalar_prefetch = 0 : i64, scratch_operands = 0 : i64, tpu.core_type = #tpu.core_type<tc>, window_params = [{transform_indices = @transform_0, window_bounds = array<i64: 8, 16, 115>}, {pipeline_mode = #tpu.pipeline_mode<synchronous>, transform_indices = @transform_1, window_bounds = array<i64: 64, 16>}, {pipeline_mode = #tpu.pipeline_mode<synchronous>, transform_indices = @transform_2, window_bounds = array<i64: 64, 1>}, {pipeline_mode = #tpu.pipeline_mode<synchronous>, transform_indices = @transform_3, window_bounds = array<i64: 115, 57>}, {pipeline_mode = #tpu.pipeline_mode<synchronous>, transform_indices = @transform_4, window_bounds = array<i64: 115, 57>}, {pipeline_mode = #tpu.pipeline_mode<synchronous>, transform_indices = @transform_5, window_bounds = array<i64: 16, 320>}, {pipeline_mode = #tpu.pipeline_mode<synchronous>, transform_indices = @transform_6, window_bounds = array<i64: 16, 1>}, {pipeline_mode = #tpu.pipeline_mode<synchronous>, transform_indices = @transform_7, window_bounds = array<i64: 4, 53, 25>}, {pipeline_mode = #tpu.pipeline_mode<synchronous>, transform_indices = @transform_8, window_bounds = array<i64: 400, 120>}, {pipeline_mode = #tpu.pipeline_mode<synchronous>, transform_indices = @transform_9, window_bounds = array<i64: 1, 120>}, {pipeline_mode = #tpu.pipeline_mode<synchronous>, transform_indices = @transform_10, window_bounds = array<i64: 120, 84>}, {pipeline_mode = #tpu.pipeline_mode<synchronous>, transform_indices = @transform_11, window_bounds = array<i64: 1, 84>}, {pipeline_mode = #tpu.pipeline_mode<synchronous>, transform_indices = @transform_12, window_bounds = array<i64: 84, 128>}, {pipeline_mode = #tpu.pipeline_mode<synchronous>, transform_indices = @transform_13, window_bounds = array<i64: 1, 128>}, {transform_indices = @transform_14, window_bounds = array<i64: 8, 128>}]} {
    %c0 = arith.constant 0 : index
    %c0_0 = arith.constant 0 : index
    %c0_1 = arith.constant 0 : index
    %0 = vector.load %arg1[%c0, %c0_0, %c0_1] : memref<8x16x115xbf16, #tpu.memory_space<vmem>>, vector<8x16x115xbf16>
    %c0_2 = arith.constant 0 : index
    %c0_3 = arith.constant 0 : index
    %1 = vector.load %arg2[%c0_2, %c0_3] : memref<64x16xbf16, #tpu.memory_space<vmem>>, vector<64x16xbf16>
    %2 = vector.shape_cast %1 : vector<64x16xbf16> to vector<1x64x16xbf16>
    %3 = vector.broadcast %2 : vector<1x64x16xbf16> to vector<8x64x16xbf16>
    "tpu.trace_start"() <{level = 10 : i32, message = "bok,bkl->bol"}> : () -> ()
    %cst = arith.constant dense<0.000000e+00> : vector<8x64x115xf32>
    %4 = tpu.matmul %3, %0, %cst {dimension_numbers = #tpu.dot_dimension_numbers<[2], [1], [1], [2], [0, 0, 0, 1, 1, 2], [0], [0]>} : vector<8x64x16xbf16>, vector<8x16x115xbf16>, vector<8x64x115xf32> -> vector<8x64x115xf32>
    "tpu.trace_stop"() : () -> ()
    %c0_4 = arith.constant 0 : index
    %c0_5 = arith.constant 0 : index
    %5 = vector.load %arg3[%c0_4, %c0_5] : memref<64x1xf32, #tpu.memory_space<vmem>>, vector<64x1xf32>
    %6 = vector.shape_cast %5 : vector<64x1xf32> to vector<1x64x1xf32>
    %7 = vector.broadcast %6 : vector<1x64x1xf32> to vector<8x64x115xf32>
    %8 = arith.addf %4, %7 : vector<8x64x115xf32>
    %cst_6 = arith.constant 0.000000e+00 : f32
    %9 = vector.broadcast %cst_6 : f32 to vector<8x64x115xf32>
    %10 = arith.maximumf %8, %9 : vector<8x64x115xf32>
    %11 = arith.truncf %10 : vector<8x64x115xf32> to vector<8x64x115xbf16>
    %12 = vector.shape_cast %11 : vector<8x64x115xbf16> to vector<512x115xbf16>
    %c0_7 = arith.constant 0 : index
    %c0_8 = arith.constant 0 : index
    %13 = vector.load %arg4[%c0_7, %c0_8] : memref<115x57xbf16, #tpu.memory_space<vmem>>, vector<115x57xbf16>
    %cst_9 = arith.constant dense<0.000000e+00> : vector<512x57xf32>
    %14 = tpu.matmul %12, %13, %cst_9 {dimension_numbers = #tpu.dot_dimension_numbers<[1], [0], [0], [1], [0, 0, 1, 1], [], []>} : vector<512x115xbf16>, vector<115x57xbf16>, vector<512x57xf32> -> vector<512x57xf32>
    %c0_10 = arith.constant 0 : index
    %c0_11 = arith.constant 0 : index
    %15 = vector.load %arg5[%c0_10, %c0_11] : memref<115x57xbf16, #tpu.memory_space<vmem>>, vector<115x57xbf16>
    %cst_12 = arith.constant dense<0.000000e+00> : vector<512x57xf32>
    %16 = tpu.matmul %12, %15, %cst_12 {dimension_numbers = #tpu.dot_dimension_numbers<[1], [0], [0], [1], [0, 0, 1, 1], [], []>} : vector<512x115xbf16>, vector<115x57xbf16>, vector<512x57xf32> -> vector<512x57xf32>
    %17 = arith.maximumf %14, %16 : vector<512x57xf32>
    %18 = arith.truncf %17 : vector<512x57xf32> to vector<512x57xbf16>
    %19 = vector.shape_cast %18 : vector<512x57xbf16> to vector<8x64x57xbf16>
    %20 = vector.extract_strided_slice %19 {offsets = [0, 0, 0], sizes = [8, 64, 53], strides = [1, 1, 1]} : vector<8x64x57xbf16> to vector<8x64x53xbf16>
    %21 = vector.extract_strided_slice %19 {offsets = [0, 0, 1], sizes = [8, 64, 53], strides = [1, 1, 1]} : vector<8x64x57xbf16> to vector<8x64x53xbf16>
    %22 = vector.extract_strided_slice %19 {offsets = [0, 0, 2], sizes = [8, 64, 53], strides = [1, 1, 1]} : vector<8x64x57xbf16> to vector<8x64x53xbf16>
    %23 = vector.extract_strided_slice %19 {offsets = [0, 0, 3], sizes = [8, 64, 53], strides = [1, 1, 1]} : vector<8x64x57xbf16> to vector<8x64x53xbf16>
    %24 = vector.extract_strided_slice %19 {offsets = [0, 0, 4], sizes = [8, 64, 53], strides = [1, 1, 1]} : vector<8x64x57xbf16> to vector<8x64x53xbf16>
    %25 = tpu.concatenate %20, %21, %22, %23, %24 in 1 : vector<8x64x53xbf16>, vector<8x64x53xbf16>, vector<8x64x53xbf16>, vector<8x64x53xbf16>, vector<8x64x53xbf16> -> vector<8x320x53xbf16>
    %c0_13 = arith.constant 0 : index
    %c0_14 = arith.constant 0 : index
    %26 = vector.load %arg6[%c0_13, %c0_14] : memref<16x320xbf16, #tpu.memory_space<vmem>>, vector<16x320xbf16>
    %27 = vector.shape_cast %26 : vector<16x320xbf16> to vector<1x16x320xbf16>
    %28 = vector.broadcast %27 : vector<1x16x320xbf16> to vector<8x16x320xbf16>
    "tpu.trace_start"() <{level = 10 : i32, message = "bof,bfl->bol"}> : () -> ()
    %cst_15 = arith.constant dense<0.000000e+00> : vector<8x16x53xf32>
    %29 = tpu.matmul %28, %25, %cst_15 {dimension_numbers = #tpu.dot_dimension_numbers<[2], [1], [1], [2], [0, 0, 0, 1, 1, 2], [0], [0]>} : vector<8x16x320xbf16>, vector<8x320x53xbf16>, vector<8x16x53xf32> -> vector<8x16x53xf32>
    "tpu.trace_stop"() : () -> ()
    %c0_16 = arith.constant 0 : index
    %c0_17 = arith.constant 0 : index
    %30 = vector.load %arg7[%c0_16, %c0_17] : memref<16x1xf32, #tpu.memory_space<vmem>>, vector<16x1xf32>
    %31 = vector.shape_cast %30 : vector<16x1xf32> to vector<1x16x1xf32>
    %32 = vector.broadcast %31 : vector<1x16x1xf32> to vector<8x16x53xf32>
    %33 = arith.addf %29, %32 : vector<8x16x53xf32>
    %cst_18 = arith.constant 0.000000e+00 : f32
    %34 = vector.broadcast %cst_18 : f32 to vector<8x16x53xf32>
    %35 = arith.maximumf %33, %34 : vector<8x16x53xf32>
    %36 = arith.truncf %35 : vector<8x16x53xf32> to vector<8x16x53xbf16>
    %37 = vector.shape_cast %36 : vector<8x16x53xbf16> to vector<128x53xbf16>
    %c0_19 = arith.constant 0 : index
    %c0_20 = arith.constant 0 : index
    %c0_21 = arith.constant 0 : index
    %38 = vector.load %arg8[%c0_19, %c0_20, %c0_21] : memref<4x53x25xbf16, #tpu.memory_space<vmem>>, vector<1x53x25xbf16>
    %39 = vector.shape_cast %38 : vector<1x53x25xbf16> to vector<53x25xbf16>
    %cst_22 = arith.constant dense<0.000000e+00> : vector<128x25xf32>
    %40 = tpu.matmul %37, %39, %cst_22 {dimension_numbers = #tpu.dot_dimension_numbers<[1], [0], [0], [1], [0, 0, 1, 1], [], []>} : vector<128x53xbf16>, vector<53x25xbf16>, vector<128x25xf32> -> vector<128x25xf32>
    %c1 = arith.constant 1 : index
    %c0_23 = arith.constant 0 : index
    %c0_24 = arith.constant 0 : index
    %41 = vector.load %arg8[%c1, %c0_23, %c0_24] : memref<4x53x25xbf16, #tpu.memory_space<vmem>>, vector<1x53x25xbf16>
    %42 = vector.shape_cast %41 : vector<1x53x25xbf16> to vector<53x25xbf16>
    %cst_25 = arith.constant dense<0.000000e+00> : vector<128x25xf32>
    %43 = tpu.matmul %37, %42, %cst_25 {dimension_numbers = #tpu.dot_dimension_numbers<[1], [0], [0], [1], [0, 0, 1, 1], [], []>} : vector<128x53xbf16>, vector<53x25xbf16>, vector<128x25xf32> -> vector<128x25xf32>
    %44 = arith.maximumf %40, %43 : vector<128x25xf32>
    %c2 = arith.constant 2 : index
    %c0_26 = arith.constant 0 : index
    %c0_27 = arith.constant 0 : index
    %45 = vector.load %arg8[%c2, %c0_26, %c0_27] : memref<4x53x25xbf16, #tpu.memory_space<vmem>>, vector<1x53x25xbf16>
    %46 = vector.shape_cast %45 : vector<1x53x25xbf16> to vector<53x25xbf16>
    %cst_28 = arith.constant dense<0.000000e+00> : vector<128x25xf32>
    %47 = tpu.matmul %37, %46, %cst_28 {dimension_numbers = #tpu.dot_dimension_numbers<[1], [0], [0], [1], [0, 0, 1, 1], [], []>} : vector<128x53xbf16>, vector<53x25xbf16>, vector<128x25xf32> -> vector<128x25xf32>
    %48 = arith.maximumf %44, %47 : vector<128x25xf32>
    %c3 = arith.constant 3 : index
    %c0_29 = arith.constant 0 : index
    %c0_30 = arith.constant 0 : index
    %49 = vector.load %arg8[%c3, %c0_29, %c0_30] : memref<4x53x25xbf16, #tpu.memory_space<vmem>>, vector<1x53x25xbf16>
    %50 = vector.shape_cast %49 : vector<1x53x25xbf16> to vector<53x25xbf16>
    %cst_31 = arith.constant dense<0.000000e+00> : vector<128x25xf32>
    %51 = tpu.matmul %37, %50, %cst_31 {dimension_numbers = #tpu.dot_dimension_numbers<[1], [0], [0], [1], [0, 0, 1, 1], [], []>} : vector<128x53xbf16>, vector<53x25xbf16>, vector<128x25xf32> -> vector<128x25xf32>
    %52 = arith.maximumf %48, %51 : vector<128x25xf32>
    %53 = arith.truncf %52 : vector<128x25xf32> to vector<128x25xbf16>
    %54 = vector.shape_cast %53 : vector<128x25xbf16> to vector<8x16x25xbf16>
    %55 = vector.extract_strided_slice %54 {offsets = [0, 0, 0], sizes = [8, 1, 25], strides = [1, 1, 1]} : vector<8x16x25xbf16> to vector<8x1x25xbf16>
    %56 = vector.extract_strided_slice %54 {offsets = [0, 1, 0], sizes = [8, 1, 25], strides = [1, 1, 1]} : vector<8x16x25xbf16> to vector<8x1x25xbf16>
    %57 = vector.extract_strided_slice %54 {offsets = [0, 2, 0], sizes = [8, 1, 25], strides = [1, 1, 1]} : vector<8x16x25xbf16> to vector<8x1x25xbf16>
    %58 = vector.extract_strided_slice %54 {offsets = [0, 3, 0], sizes = [8, 1, 25], strides = [1, 1, 1]} : vector<8x16x25xbf16> to vector<8x1x25xbf16>
    %59 = vector.extract_strided_slice %54 {offsets = [0, 4, 0], sizes = [8, 1, 25], strides = [1, 1, 1]} : vector<8x16x25xbf16> to vector<8x1x25xbf16>
    %60 = vector.extract_strided_slice %54 {offsets = [0, 5, 0], sizes = [8, 1, 25], strides = [1, 1, 1]} : vector<8x16x25xbf16> to vector<8x1x25xbf16>
    %61 = vector.extract_strided_slice %54 {offsets = [0, 6, 0], sizes = [8, 1, 25], strides = [1, 1, 1]} : vector<8x16x25xbf16> to vector<8x1x25xbf16>
    %62 = vector.extract_strided_slice %54 {offsets = [0, 7, 0], sizes = [8, 1, 25], strides = [1, 1, 1]} : vector<8x16x25xbf16> to vector<8x1x25xbf16>
    %63 = vector.extract_strided_slice %54 {offsets = [0, 8, 0], sizes = [8, 1, 25], strides = [1, 1, 1]} : vector<8x16x25xbf16> to vector<8x1x25xbf16>
    %64 = vector.extract_strided_slice %54 {offsets = [0, 9, 0], sizes = [8, 1, 25], strides = [1, 1, 1]} : vector<8x16x25xbf16> to vector<8x1x25xbf16>
    %65 = vector.extract_strided_slice %54 {offsets = [0, 10, 0], sizes = [8, 1, 25], strides = [1, 1, 1]} : vector<8x16x25xbf16> to vector<8x1x25xbf16>
    %66 = vector.extract_strided_slice %54 {offsets = [0, 11, 0], sizes = [8, 1, 25], strides = [1, 1, 1]} : vector<8x16x25xbf16> to vector<8x1x25xbf16>
    %67 = vector.extract_strided_slice %54 {offsets = [0, 12, 0], sizes = [8, 1, 25], strides = [1, 1, 1]} : vector<8x16x25xbf16> to vector<8x1x25xbf16>
    %68 = vector.extract_strided_slice %54 {offsets = [0, 13, 0], sizes = [8, 1, 25], strides = [1, 1, 1]} : vector<8x16x25xbf16> to vector<8x1x25xbf16>
    %69 = vector.extract_strided_slice %54 {offsets = [0, 14, 0], sizes = [8, 1, 25], strides = [1, 1, 1]} : vector<8x16x25xbf16> to vector<8x1x25xbf16>
    %70 = vector.extract_strided_slice %54 {offsets = [0, 15, 0], sizes = [8, 1, 25], strides = [1, 1, 1]} : vector<8x16x25xbf16> to vector<8x1x25xbf16>
    %71 = tpu.concatenate %55, %56, %57, %58, %59, %60, %61, %62, %63, %64, %65, %66, %67, %68, %69, %70 in 2 : vector<8x1x25xbf16>, vector<8x1x25xbf16>, vector<8x1x25xbf16>, vector<8x1x25xbf16>, vector<8x1x25xbf16>, vector<8x1x25xbf16>, vector<8x1x25xbf16>, vector<8x1x25xbf16>, vector<8x1x25xbf16>, vector<8x1x25xbf16>, vector<8x1x25xbf16>, vector<8x1x25xbf16>, vector<8x1x25xbf16>, vector<8x1x25xbf16>, vector<8x1x25xbf16>, vector<8x1x25xbf16> -> vector<8x1x400xbf16>
    %72 = vector.shape_cast %71 : vector<8x1x400xbf16> to vector<8x400xbf16>
    %c0_32 = arith.constant 0 : index
    %c0_33 = arith.constant 0 : index
    %73 = vector.load %arg9[%c0_32, %c0_33] : memref<400x120xbf16, #tpu.memory_space<vmem>>, vector<400x120xbf16>
    %cst_34 = arith.constant dense<0.000000e+00> : vector<8x120xf32>
    %74 = tpu.matmul %72, %73, %cst_34 {dimension_numbers = #tpu.dot_dimension_numbers<[1], [0], [0], [1], [0, 0, 1, 1], [], []>} : vector<8x400xbf16>, vector<400x120xbf16>, vector<8x120xf32> -> vector<8x120xf32>
    %c0_35 = arith.constant 0 : index
    %c0_36 = arith.constant 0 : index
    %75 = vector.load %arg10[%c0_35, %c0_36] : memref<1x120xf32, #tpu.memory_space<vmem>>, vector<1x120xf32>
    %76 = vector.broadcast %75 : vector<1x120xf32> to vector<8x120xf32>
    %77 = arith.addf %74, %76 : vector<8x120xf32>
    %cst_37 = arith.constant 0.000000e+00 : f32
    %78 = vector.broadcast %cst_37 : f32 to vector<8x120xf32>
    %79 = arith.maximumf %77, %78 : vector<8x120xf32>
    %80 = arith.truncf %79 : vector<8x120xf32> to vector<8x120xbf16>
    %c0_38 = arith.constant 0 : index
    %c0_39 = arith.constant 0 : index
    %81 = vector.load %arg11[%c0_38, %c0_39] : memref<120x84xbf16, #tpu.memory_space<vmem>>, vector<120x84xbf16>
    %cst_40 = arith.constant dense<0.000000e+00> : vector<8x84xf32>
    %82 = tpu.matmul %80, %81, %cst_40 {dimension_numbers = #tpu.dot_dimension_numbers<[1], [0], [0], [1], [0, 0, 1, 1], [], []>} : vector<8x120xbf16>, vector<120x84xbf16>, vector<8x84xf32> -> vector<8x84xf32>
    %c0_41 = arith.constant 0 : index
    %c0_42 = arith.constant 0 : index
    %83 = vector.load %arg12[%c0_41, %c0_42] : memref<1x84xf32, #tpu.memory_space<vmem>>, vector<1x84xf32>
    %84 = vector.broadcast %83 : vector<1x84xf32> to vector<8x84xf32>
    %85 = arith.addf %82, %84 : vector<8x84xf32>
    %cst_43 = arith.constant 0.000000e+00 : f32
    %86 = vector.broadcast %cst_43 : f32 to vector<8x84xf32>
    %87 = arith.maximumf %85, %86 : vector<8x84xf32>
    %88 = arith.truncf %87 : vector<8x84xf32> to vector<8x84xbf16>
    %c0_44 = arith.constant 0 : index
    %c0_45 = arith.constant 0 : index
    %89 = vector.load %arg13[%c0_44, %c0_45] : memref<84x128xbf16, #tpu.memory_space<vmem>>, vector<84x128xbf16>
    %cst_46 = arith.constant dense<0.000000e+00> : vector<8x128xf32>
    %90 = tpu.matmul %88, %89, %cst_46 {dimension_numbers = #tpu.dot_dimension_numbers<[1], [0], [0], [1], [0, 0, 1, 1], [], []>} : vector<8x84xbf16>, vector<84x128xbf16>, vector<8x128xf32> -> vector<8x128xf32>
    %c0_47 = arith.constant 0 : index
    %c0_48 = arith.constant 0 : index
    %91 = vector.load %arg14[%c0_47, %c0_48] : memref<1x128xf32, #tpu.memory_space<vmem>>, vector<1x128xf32>
    %92 = vector.broadcast %91 : vector<1x128xf32> to vector<8x128xf32>
    %93 = arith.addf %90, %92 : vector<8x128xf32>
    %c0_49 = arith.constant 0 : index
    %c0_50 = arith.constant 0 : index
    %94 = vector.load %arg15[%c0_49, %c0_50] : memref<8x128xf32, #tpu.memory_space<vmem>>, vector<8x128xf32>
    tpu.vector_store %arg15[%c0_49, %c0_50], %93 {strides = array<i32>} : memref<8x128xf32, #tpu.memory_space<vmem>>, vector<8x128xf32>,
    return
  }
  func.func @transform_0(%arg0: i32) -> (i32, i32, i32) {
    %c0_i32 = arith.constant 0 : i32
    %c0_i32_0 = arith.constant 0 : i32
    %c0_i32_1 = arith.constant 0 : i32
    return %arg0, %c0_i32, %c0_i32_0 : i32, i32, i32
  }
  func.func @transform_1(%arg0: i32) -> (i32, i32) {
    %c0_i32 = arith.constant 0 : i32
    %c0_i32_0 = arith.constant 0 : i32
    %c0_i32_1 = arith.constant 0 : i32
    return %c0_i32, %c0_i32_0 : i32, i32
  }
  func.func @transform_2(%arg0: i32) -> (i32, i32) {
    %c0_i32 = arith.constant 0 : i32
    %c0_i32_0 = arith.constant 0 : i32
    %c0_i32_1 = arith.constant 0 : i32
    return %c0_i32, %c0_i32_0 : i32, i32
  }
  func.func @transform_3(%arg0: i32) -> (i32, i32) {
    %c0_i32 = arith.constant 0 : i32
    %c0_i32_0 = arith.constant 0 : i32
    %c0_i32_1 = arith.constant 0 : i32
    return %c0_i32, %c0_i32_0 : i32, i32
  }
  func.func @transform_4(%arg0: i32) -> (i32, i32) {
    %c0_i32 = arith.constant 0 : i32
    %c0_i32_0 = arith.constant 0 : i32
    %c0_i32_1 = arith.constant 0 : i32
    return %c0_i32, %c0_i32_0 : i32, i32
  }
  func.func @transform_5(%arg0: i32) -> (i32, i32) {
    %c0_i32 = arith.constant 0 : i32
    %c0_i32_0 = arith.constant 0 : i32
    %c0_i32_1 = arith.constant 0 : i32
    return %c0_i32, %c0_i32_0 : i32, i32
  }
  func.func @transform_6(%arg0: i32) -> (i32, i32) {
    %c0_i32 = arith.constant 0 : i32
    %c0_i32_0 = arith.constant 0 : i32
    %c0_i32_1 = arith.constant 0 : i32
    return %c0_i32, %c0_i32_0 : i32, i32
  }
  func.func @transform_7(%arg0: i32) -> (i32, i32, i32) {
    %c0_i32 = arith.constant 0 : i32
    %c0_i32_0 = arith.constant 0 : i32
    %c0_i32_1 = arith.constant 0 : i32
    %c0_i32_2 = arith.constant 0 : i32
    return %c0_i32, %c0_i32_0, %c0_i32_1 : i32, i32, i32
  }
  func.func @transform_8(%arg0: i32) -> (i32, i32) {
    %c0_i32 = arith.constant 0 : i32
    %c0_i32_0 = arith.constant 0 : i32
    %c0_i32_1 = arith.constant 0 : i32
    return %c0_i32, %c0_i32_0 : i32, i32
  }
  func.func @transform_9(%arg0: i32) -> (i32, i32) {
    %c0_i32 = arith.constant 0 : i32
    %c0_i32_0 = arith.constant 0 : i32
    %c0_i32_1 = arith.constant 0 : i32
    return %c0_i32, %c0_i32_0 : i32, i32
  }
  func.func @transform_10(%arg0: i32) -> (i32, i32) {
    %c0_i32 = arith.constant 0 : i32
    %c0_i32_0 = arith.constant 0 : i32
    %c0_i32_1 = arith.constant 0 : i32
    return %c0_i32, %c0_i32_0 : i32, i32
  }
  func.func @transform_11(%arg0: i32) -> (i32, i32) {
    %c0_i32 = arith.constant 0 : i32
    %c0_i32_0 = arith.constant 0 : i32
    %c0_i32_1 = arith.constant 0 : i32
    return %c0_i32, %c0_i32_0 : i32, i32
  }
  func.func @transform_12(%arg0: i32) -> (i32, i32) {
    %c0_i32 = arith.constant 0 : i32
    %c0_i32_0 = arith.constant 0 : i32
    %c0_i32_1 = arith.constant 0 : i32
    return %c0_i32, %c0_i32_0 : i32, i32
  }
  func.func @transform_13(%arg0: i32) -> (i32, i32) {
    %c0_i32 = arith.constant 0 : i32
    %c0_i32_0 = arith.constant 0 : i32
    %c0_i32_1 = arith.constant 0 : i32
    return %c0_i32, %c0_i32_0 : i32, i32
  }
  func.func @transform_14(%arg0: i32) -> (i32, i32) {
    %c0_i32 = arith.constant 0 : i32
    %c0_i32_0 = arith.constant 0 : i32
    return %arg0, %c0_i32 : i32, i32
  }
}

</mosaic_0001>

<bundles_post_ra>
// kernel: tpu_custom_call.1
= control target key start
LH: loop header
LB: loop body
LE: loop exit
PB: predicated region body
PF: predicated region fallthrough
CT: control target
= control target key end

     0   :  { %s8556_s0 = inlined_call_operand.vmem [shape: bf16[16,16,115], index: 0, kind: input, shape index: {}]   ;;  %s8557_s1 = inlined_call_operand.vmem [shape: bf16[64,16], index: 1, kind: input, shape index: {}]   ;;  %s8558_s2 = inlined_call_operand.vmem [shape: f32[64,1], index: 2, kind: input, shape index: {}]   ;;  %s8559_s3 = inlined_call_operand.vmem [shape: bf16[115,57], index: 3, kind: input, shape index: {}]   ;;  %s8560_s4 = inlined_call_operand.vmem [shape: bf16[115,57], index: 4, kind: input, shape index: {}]   ;;  %s8561_s5 = inlined_call_operand.vmem [shape: bf16[16,320], index: 5, kind: input, shape index: {}]   ;;  %s8562_s6 = inlined_call_operand.vmem [shape: f32[16,1], index: 6, kind: input, shape index: {}]   ;;  %s8563_s7 = inlined_call_operand.vmem [shape: bf16[4,53,25], index: 7, kind: input, shape index: {}]   ;;  %s8564_s8 = inlined_call_operand.vmem [shape: bf16[400,120], index: 8, kind: input, shape index: {}]   ;;  %s8565_s9 = inlined_call_operand.vmem [shape: f32[1,120], index: 9, kind: input, shape index: {}]   ;;  %s8566_s10 = inlined_call_operand.vmem [shape: bf16[120,84], index: 10, kind: input, shape index: {}]   ;;  %s8567_s11 = inlined_call_operand.vmem [shape: f32[1,84], index: 11, kind: input, shape index: {}]   ;;  %s8568_s12 = inlined_call_operand.vmem [shape: bf16[84,128], index: 12, kind: input, shape index: {}]   ;;  %s8569_s13 = inlined_call_operand.vmem [shape: f32[1,128], index: 13, kind: input, shape index: {}]   ;;  %s8570_s14 = inlined_call_operand.hbm [shape: f32[16,128], index: 14, kind: output, shape index: {}]  }
   0x1   :  { %8614 = sst [smem:[#allocation11_spill]] %s8556_s0 }
   0x2   :  { %8615 = sst [smem:[#allocation12_spill]] %s8557_s1 }
   0x3   :  { %8616 = sst [smem:[#allocation13_spill]] %s8558_s2 }
   0x4   :  { %8617 = sst [smem:[#allocation14_spill]] %s8559_s3 }
   0x5   :  { %8618 = sst [smem:[#allocation15_spill]] %s8560_s4 }
   0x6   :  { %8619 = sst [smem:[#allocation16_spill]] %s8561_s5 }
   0x7   :  { %8620 = sst [smem:[#allocation17_spill]] %s8562_s6 }
   0x8   :  { %8621 = sst [smem:[#allocation18_spill]] %s8563_s7 }
   0x9   :  { %19 = vsyncpa [#allocation3], 0 }
   0xa   :  { %21 = vsyncpa [#allocation3 + $0x1], 0  ;;  %s6685_s29 = smov 0   ;;  %s6687_s30 = smov 0  }
   0xb   :  { %s6689_s15 = smov 0   ;;  %s6691_s16 = smov 0  }
   0xc LB: > { %8622 = sst [smem:[#allocation5_spill]] %s6573_s29  ;;  %s6706_s17 = sadd.s32 4294967295, %s6585_s16   ;;  %s6585_s16 = sphi %s6691_s16, %s8668_s16   ;;  %s6581_s15 = sphi %s6689_s15, %s8670_s15   ;;  %s6577_s30 = sphi %s6687_s30, %s8672_s30   ;;  %s6573_s29 = sphi %s6685_s29, %s8671_s29  }
   0xd   : > { %8623 = sst [smem:[#allocation6_spill]] %s6581_s15  ;;  %s5218_s18 = sadd.s32 4294967294, %s6585_s16  }
   0xe   : > { %8624 = sst [smem:[#allocation7_spill]] %s6585_s16  ;;  %s6710_s19 = sadd.s32 1, %s6585_s16  }
   0xf   : > { %8625 = sst [smem:[#allocation8_spill]] %s6710_s19  ;;  %s333_s20 = sadd.s32 1, %s6581_s15 }
  0x10   : > { %s330_s21 = ssub.s32 %s6585_s16, %s6710_s19  ;;  %p343_p0 = scmp.ne.s32.totalorder %s6581_s15, %s6577_s30 }
  0x11   : > { %p331_p1 = scmp.eq.s32.totalorder %s330_s21, 0  ;;  %p344_p2 = scmp.eq.s32.totalorder %s6706_s17, 1 }
  0x12   : > { %p349_p3 = scmp.ne.s32.totalorder %s6577_s30, %s6573_s29  ;;  %p350_p4 = scmp.eq.s32.totalorder %s5218_s18, 1 }
  0x13   : > { %s6721_s22 = scalar_select %p331_p1, %s6581_s15, %s333_s20  }
  0x14   : > { %p6723_p5 = por %p344_p2, %p343_p0  ;;  %p6727_p6 = por %p350_p4, %p349_p3 }
  0x15   : > { %8626 = sst [smem:[#allocation9_spill]] %s6721_s22  ;;  %p5221_p7 = scmp.ge.s32.totalorder %s6585_s16, 1 }
  0x16   : > { %s8628_s24 = scalar_select %p6727_p6, 1, 0 }
  0x17   : > { %p417_p8 = scmp.lt.s32.totalorder %s6585_s16, 3 }
  0x18   : > { %8629 = sst [smem:[#allocation10_spill]] %s8628_s24 }
  0x19   : > { %p418_p9 = pnand %p5221_p7, %p417_p8 }
  0x1a   : > { %s5223_s25 = sshll.u32 (!%p418_p9), %s6706_s17, 3  ;;  %s8630_s1 = sld [smem:[#allocation12_spill]] (!%p418_p9)  ;;  %vm8603_vm0 = vcmask (!%p418_p9), 130048   ;;  %v6587_v2 = vmov (!%p418_p9), 0   ;;  %vm1398_vm1 = vcmask (!%p418_p9), 1040384   ;;  %vm8602_vm2 = vcmask (!%p418_p9), 1041408  }
  0x1b   : > { %421 = sbr.rel (%p418_p9) target bundleno = 2332 (0x91c), region = 76  ;;  %p465_p10 = scmp.lt.s32.totalorder (!%p418_p9), %s5223_s25, 15  ;;  %6433 = vset.pattern.permute.xlu0 (!%p418_p9), %v6587_v2  ;;  %6434 = vset.pattern.permute.xlu1 (!%p418_p9), %v6587_v2  ;;  %v6588_v36 = vmov (!%p418_p9), 65535   ;;  %vm1301_vm3 = vcmask (!%p418_p9), 941056   ;;  %vm8609_vm4 = vmmov (!%p418_p9), 0   ;;  %vm2589_vm5 = vcmask (!%p418_p9), 523264  }
  0x1c   : > { %s8631_s2 = sld [smem:[#allocation13_spill]] (!%p418_p9)  ;;  %s8632_s0 = sld [smem:[#allocation11_spill]] (!%p418_p9)  ;;  %v1400_v37 = vsel (!%p418_p9), %vm1398_vm1, 4294967295, %v6588_v36  ;;  %vm3326_vm6 = vcmask (!%p418_p9), 1042432   ;;  %vm3301_vm7 = vcmask (!%p418_p9), 433152   ;;  %vm4426_vm8 = vcmask (!%p418_p9), 154624  }
  0x1d   : > { %s8633_s3 = sld [smem:[#allocation14_spill]] (!%p418_p9)  ;;  %s8634_s4 = sld [smem:[#allocation15_spill]] (!%p418_p9)  ;;  %v1401_v38 = vsel (!%p418_p9), %vm8602_vm2, %v1400_v37, 0  ;;  %vm4341_vm9 = vcmask (!%p418_p9), 179200   ;;  %vm4358_vm10 = vcmask (!%p418_p9), 384000   ;;  %vm4443_vm11 = vcmask (!%p418_p9), 359424  }
  0x1e   : > { %s8600_s27 = smov (!%p418_p9), 125   ;;  %s6590_s22 = smov (!%p418_p9), 126   ;;  %vm4460_vm12 = vcmask (!%p418_p9), 564224   ;;  %vm4256_vm13 = vcmask (!%p418_p9), 203776   ;;  %vm4273_vm14 = vcmask (!%p418_p9), 408576   ;;  %vm4375_vm15 = vcmask (!%p418_p9), 588800  }
  0x1f   : > { %s6593_s18 = smov (!%p418_p9), 127   ;;  %s8635_s5 = sld [smem:[#allocation16_spill]] (!%p418_p9)  ;;  %vm8612_vm1 = vcmask (!%p418_p9), 613376  }
  0x20   : > { %v6737_v0 = vld [vmem:[%s8630_s1] sm:$0xff] (!%p418_p9)   ;;  %v6744_v1 = vld [vmem:[%s8630_s1 + $0x10] sm:$0xff] (!%p418_p9)   ;;  %v6765_v6 = vld [vmem:[%s8630_s1 + $0x8] sm:$0xff] (!%p418_p9)   ;;  %s8636_s6 = sld [smem:[#allocation17_spill]] (!%p418_p9)  ;;  %s8637_s7 = sld [smem:[#allocation18_spill]] (!%p418_p9) }
  0x21   : > { %5904 = vmatprep.mubr.msk.bf16.mxu0 (!%p418_p9), %vm8603_vm0, %v6737_v0  ;;  %5908 = vmatprep.mubr.msk.bf16.mxu1 (!%p418_p9), %vm8603_vm0, %v6744_v1  ;;  %v6770_v7 = vld [vmem:[%s8630_s1 + $0x18] sm:$0xff] (!%p418_p9)   ;;  %s8598_s20 = smov (!%p418_p9), 25   ;;  %s8572_s21 = smov (!%p418_p9), 72  }
  0x22   : > { %s8674_s25 = smov (!%p465_p10, %s5223_s25), 15  ;;  %v496_v3 = vld [vmem:[%s8631_s2] sm:$0xff]  ;;  %v498_v4 = vld [vmem:[%s8631_s2 + $0x10] sm:$0xff]  ;;  %v497_v8 = vld [vmem:[%s8631_s2 + $0x8] sm:$0xff]  ;;  %s8580_s26 = smov 94  }
  0x23   : > { %s5479_s28 = sshll.u32 %s8674_s25, 3  ;;  %506 = vperm.xlu0 %6433, %v496_v3   ;;  %516 = vperm.xlu1 %6434, %v498_v4   ;;  %v499_v9 = vld [vmem:[%s8631_s2 + $0x18] sm:$0xff]  ;;  %v500_v14 = vld [vmem:[%s8631_s2 + $0x20] sm:$0xff]  ;;  %v501_v15 = vld [vmem:[%s8631_s2 + $0x28] sm:$0xff]  ;;  %s8596_s25 = smov 22  }
  0x24   : > { %s6759_s15 = scalar_lea.vmem %s8632_s0, %s5479_s28  ;;  %v502_v18 = vld [vmem:[%s8631_s2 + $0x30] sm:$0xff]  ;;  %v503_v19 = vld [vmem:[%s8631_s2 + $0x38] sm:$0xff]  ;;  %v6447_v21 = vld [vmem:[%s8633_s3] sm:$0xff]   ;;  %s6592_s28 = smov 124  }
  0x25   : > { %v6435_v5 = vld [vmem:[%s6759_s15] sm:$0xff]   ;;  %v6440_v10 = vld [vmem:[%s6759_s15 + $0x8] sm:$0xff]   ;;  %v6441_v11 = vld [vmem:[%s6759_s15 + $0x10] sm:$0xff]   ;;  %s8644_s0 = smov 47   ;;  %s8648_s1 = smov 97  }
  0x26   : > { %5902 = vmatprep.subr.bf16.mxu0 %v6435_v5  ;;  %6370 = vmatprep.subr.bf16.mxu1 %v6435_v5  ;;  %v6442_v12 = vld [vmem:[%s6759_s15 + $0x18] sm:$0xff]   ;;  %v6443_v13 = vld [vmem:[%s6759_s15 + $0x20] sm:$0xff]   ;;  %v6444_v16 = vld [vmem:[%s6759_s15 + $0x28] sm:$0xff]   ;;  %s8649_s2 = smov 19   ;;  %s461_s24 = sand.u32 1, %s6577_s30  }
  0x27   : > { %5903 = vmatpush3.bf16.msra.mxu0 %v6435_v5  ;;  %6371 = vmatpush3.bf16.msra.mxu1 %v6435_v5  ;;  %v6445_v17 = vld [vmem:[%s6759_s15 + $0x30] sm:$0xff]   ;;  %v6446_v20 = vld [vmem:[%s6759_s15 + $0x38] sm:$0xff]   ;;  %v6448_v22 = vld [vmem:[%s8634_s4] sm:$0xff]   ;;  %s8578_s15 = smov 44  }
  0x28   : > { %5912 = vmatprep.subr.bf16.mxu1 %v6440_v10  ;;  %5922 = vmatprep.subr.bf16.mxu0 %v6441_v11  ;;  %v6449_v23 = vld [vmem:[%s8633_s3 + $0x8] sm:$0xff]   ;;  %v6451_v24 = vld [vmem:[%s8633_s3 + $0x10] sm:$0xff]   ;;  %v6453_v25 = vld [vmem:[%s8633_s3 + $0x18] sm:$0xff]  }
  0x29   : > { %511 = vperm.xlu0 %6433, %v497_v8   ;;  %521 = vperm.xlu1 %6434, %v499_v9   ;;  %v6455_v26 = vld [vmem:[%s8633_s3 + $0x20] sm:$0xff]   ;;  %v6450_v27 = vld [vmem:[%s8634_s4 + $0x8] sm:$0xff]   ;;  %v6452_v29 = vld [vmem:[%s8634_s4 + $0x10] sm:$0xff]  }
  0x2a   : > { %5905 = vmatmul.mubr.msk.bf16.vlgmr.msra.gmra.mrb[0].mxu0 %vm8603_vm0, %v6765_v6  ;;  %5909 = vmatmul.mubr.msk.bf16.vlgmr.msra.gmra.mrb[0].mxu1 %vm8603_vm0, %v6770_v7  ;;  %v6457_v28 = vld [vmem:[%s8633_s3 + $0x28] sm:$0xff]   ;;  %v6454_v30 = vld [vmem:[%s8634_s4 + $0x18] sm:$0xff]   ;;  %v6456_v31 = vld [vmem:[%s8634_s4 + $0x20] sm:$0xff]  }
  0x2b   : > { %5913 = vmatpush3.bf16.msra.mxu1 %v6440_v10  ;;  %5923 = vmatpush3.bf16.msra.mxu0 %v6441_v11  ;;  %v6458_v32 = vld [vmem:[%s8634_s4 + $0x28] sm:$0xff]   ;;  %v6459_v33 = vld [vmem:[%s8633_s3 + $0x30] sm:$0xff]   ;;  %v6461_v35 = vld [vmem:[%s8633_s3 + $0x38] ss:$0 sps:$4 sm:$0x33]   ;;  %s8650_s3 = smov 125  }
  0x2c   : > { %5914 = vmatprep.mubr.msk.bf16.mxu1 %vm8603_vm0, %v6737_v0  ;;  %5924 = vmatprep.mubr.msk.bf16.mxu0 %vm8603_vm0, %v6737_v0  ;;  %v6460_v34 = vld [vmem:[%s8634_s4 + $0x30] sm:$0xff]   ;;  %v6462_v39 = vld [vmem:[%s8634_s4 + $0x38] ss:$0 sps:$4 sm:$0x33]   ;;  %v1403_v40 = vand.u32 %v6461_v35, %v1401_v38  ;;  %s8651_s4 = smov 22  }
  0x2d   : > { %5932 = vmatprep.subr.bf16.mxu1 %v6442_v12  ;;  %5942 = vmatprep.subr.bf16.mxu0 %v6443_v13  ;;  %v1755_v41 = vand.u32 %v6462_v39, %v1401_v38 }
  0x2e   : > { %526 = vperm.xlu0 %6433, %v500_v14   ;;  %531 = vperm.xlu1 %6434, %v501_v15  }
  0x32   : > { %5915 = vmatmul.mubr.msk.bf16.vlgmr.msra.gmra.mrb[4].mxu1 %vm8603_vm0, %v6765_v6  ;;  %5925 = vmatmul.mubr.msk.bf16.vlgmr.msra.gmra.mrb[4].mxu0 %vm8603_vm0, %v6765_v6 }
  0x33   : > { %5918 = vmatprep.mubr.msk.bf16.mxu1 %vm8603_vm0, %v6744_v1  ;;  %5928 = vmatprep.mubr.msk.bf16.mxu0 %vm8603_vm0, %v6744_v1 }
  0x34   : > { %5933 = vmatpush3.bf16.msra.mxu1 %v6442_v12  ;;  %5943 = vmatpush3.bf16.msra.mxu0 %v6443_v13 }
  0x35   : > { %5952 = vmatprep.subr.bf16.mxu1 %v6444_v16  ;;  %5962 = vmatprep.subr.bf16.mxu0 %v6445_v17 }
  0x36   : > { %536 = vperm.xlu0 %6433, %v502_v18   ;;  %541 = vperm.xlu1 %6434, %v503_v19  }
  0x3a   : > { %5919 = vmatmul.mubr.msk.bf16.gmra.mrb[8].mxu1 %vm8603_vm0, %v6770_v7  ;;  %5929 = vmatmul.mubr.msk.bf16.gmra.mrb[8].mxu0 %vm8603_vm0, %v6770_v7 }
  0x3b   : > { %5934 = vmatprep.mubr.msk.bf16.mxu1 %vm8603_vm0, %v6737_v0  ;;  %5944 = vmatprep.mubr.msk.bf16.mxu0 %vm8603_vm0, %v6737_v0 }
  0x42   : > { %5935 = vmatmul.mubr.msk.bf16.vlgmr.msra.gmra.mrb[12].mxu1 %vm8603_vm0, %v6765_v6  ;;  %5945 = vmatmul.mubr.msk.bf16.vlgmr.msra.gmra.mrb[12].mxu0 %vm8603_vm0, %v6765_v6 }
  0x43   : > { %5938 = vmatprep.mubr.msk.bf16.mxu1 %vm8603_vm0, %v6744_v1  ;;  %5948 = vmatprep.mubr.msk.bf16.mxu0 %vm8603_vm0, %v6744_v1 }
  0x44   : > { %5953 = vmatpush3.bf16.msra.mxu1 %v6444_v16  ;;  %5963 = vmatpush3.bf16.msra.mxu0 %v6445_v17 }
  0x45   : > { %5972 = vmatprep.subr.bf16.mxu1 %v6446_v20  ;;  %5982 = vmatprep.subr.bf16.mxu0 %v6447_v21 }
  0x4a   : > { %5939 = vmatmul.mubr.msk.bf16.gmra.mrb[16].mxu1 %vm8603_vm0, %v6770_v7  ;;  %5949 = vmatmul.mubr.msk.bf16.gmra.mrb[16].mxu0 %vm8603_vm0, %v6770_v7 }
  0x4b   : > { %5954 = vmatprep.mubr.msk.bf16.mxu1 %vm8603_vm0, %v6737_v0  ;;  %5964 = vmatprep.mubr.msk.bf16.mxu0 %vm8603_vm0, %v6737_v0 }
  0x52   : > { %5955 = vmatmul.mubr.msk.bf16.vlgmr.msra.gmra.mrb[20].mxu1 %vm8603_vm0, %v6765_v6  ;;  %5965 = vmatmul.mubr.msk.bf16.vlgmr.msra.gmra.mrb[20].mxu0 %vm8603_vm0, %v6765_v6 }
  0x53   : > { %5958 = vmatprep.mubr.msk.bf16.mxu1 %vm8603_vm0, %v6744_v1  ;;  %5968 = vmatprep.mubr.msk.bf16.mxu0 %vm8603_vm0, %v6744_v1 }
  0x54   : > { %5973 = vmatpush3.bf16.msra.mxu1 %v6446_v20  ;;  %5983 = vmatpush3.bf16.msra.mxu0 %v6447_v21 }
  0x55   : > { %6062 = vmatprep.subr.bf16.mxu1 %v6448_v22  ;;  %5984 = vmatprep.subr.bf16.mxu0 %v6449_v23 }
  0x58   : > { %5985 = vmatpush3.bf16.msra.mxu0 %v6449_v23 }
  0x59   : > { %5986 = vmatprep.subr.bf16.mxu0 %v6451_v24 }
  0x5a   : > { %5959 = vmatmul.mubr.msk.bf16.gmra.mrb[24].mxu1 %vm8603_vm0, %v6770_v7  ;;  %5969 = vmatmul.mubr.msk.bf16.gmra.mrb[24].mxu0 %vm8603_vm0, %v6770_v7 }
  0x5b   : > { %5974 = vmatprep.mubr.msk.bf16.mxu1 %vm8603_vm0, %v6737_v0 }
  0x5c   : > { %5987 = vmatpush3.bf16.msra.mxu0 %v6451_v24 }
  0x5d   : > { %5988 = vmatprep.subr.bf16.mxu0 %v6453_v25 }
  0x60   : > { %5989 = vmatpush3.bf16.msra.mxu0 %v6453_v25 }
  0x61   : > { %5990 = vmatprep.subr.bf16.mxu0 %v6455_v26 }
  0x62   : > { %5975 = vmatmul.mubr.msk.bf16.vlgmr.msra.gmra.mrb[28].mxu1 %vm8603_vm0, %v6765_v6 }
  0x63   : > { %5978 = vmatprep.mubr.msk.bf16.mxu1 %vm8603_vm0, %v6744_v1  ;;  %6063 = vmatpush3.bf16.msra.mxu1 %v6448_v22 }
  0x64   : > { %6064 = vmatprep.subr.bf16.mxu1 %v6450_v27  ;;  %5991 = vmatpush3.bf16.msra.mxu0 %v6455_v26 }
  0x65   : > { %5992 = vmatprep.subr.bf16.mxu0 %v6457_v28 }
  0x67   : > { %6065 = vmatpush3.bf16.msra.mxu1 %v6450_v27 }
  0x68   : > { %6066 = vmatprep.subr.bf16.mxu1 %v6452_v29  ;;  %5993 = vmatpush3.bf16.msra.mxu0 %v6457_v28 }
  0x69   : > { %5994 = vmatprep.subr.bf16.mxu0 %v6459_v33 }
  0x6a   : > { %5979 = vmatmul.mubr.msk.bf16.gmra.mrb[32].mxu1 %vm8603_vm0, %v6770_v7  ;;  %vm4625_vm0 = vcmask 1041409  }
  0x6b   : > { %6067 = vmatpush3.bf16.msra.mxu1 %v6452_v29 }
  0x6c   : > { %6068 = vmatprep.subr.bf16.mxu1 %v6454_v30  ;;  %5995 = vmatpush3.bf16.msra.mxu0 %v6459_v33 }
  0x6d   : > { %5996 = vmatprep.subr.bf16.mxu0 %v1403_v40 }
  0x6f   : > { %6069 = vmatpush3.bf16.msra.mxu1 %v6454_v30 }
  0x70   : > { %6070 = vmatprep.subr.bf16.mxu1 %v6456_v31  ;;  %5997 = vmatpush3.bf16.msra.mxu0 %v1403_v40 }
  0x73   : > { %6071 = vmatpush3.bf16.msra.mxu1 %v6456_v31 }
  0x74   : > { %6072 = vmatprep.subr.bf16.mxu1 %v6458_v32 }
  0x77   : > { %6073 = vmatpush3.bf16.msra.mxu1 %v6458_v32 }
  0x78   : > { %6074 = vmatprep.subr.bf16.mxu1 %v6460_v34 }
  0x7b   : > { %6075 = vmatpush3.bf16.msra.mxu1 %v6460_v34 }
  0x7c   : > { %6076 = vmatprep.subr.bf16.mxu1 %v1755_v41 }
  0x7f   : > { %6077 = vmatpush3.bf16.msra.mxu1 %v1755_v41 }
  0xa2   : > { %v6907_v42 = vpop.permute.xlu0 %506  ;;  %v6909_v43 = vpop.permute.xlu1 %516 }
  0xa8   : > { %v6911_v44 = vpop.permute.xlu0 %511  ;;  %v6913_v45 = vpop.permute.xlu1 %521 }
  0xad   : > { %v6915_v46 = vpop.permute.xlu0 %526  ;;  %v6917_v47 = vpop.permute.xlu1 %531 }
  0xb5   : > { %v6919_v48 = vpop.permute.xlu0 %536  ;;  %v6921_v49 = vpop.permute.xlu1 %541 }
  0xfd   : > { %v5906_v50 = vpop.f32.mrb[0].mxu0  ;;  %v5910_v51 = vpop.f32.mrb[0].mxu1 }
  0xfe   : > { %v626_v52 = vadd.f32 %v5906_v50, %v6909_v43  ;;  %v642_v53 = vadd.f32 %v5910_v51, %v6919_v48  ;;  %v617_v54 = vpop.f32.mrb[1].mxu0  ;;  %v633_v55 = vpop.f32.mrb[1].mxu1 }
  0xff   : > { %v618_v56 = vadd.f32 %v617_v54, %v6907_v42  ;;  %v634_v57 = vadd.f32 %v633_v55, %v6915_v46  ;;  %v5907_v58 = vpop.f32.mrb[2].mxu0  ;;  %v5911_v59 = vpop.f32.mrb[2].mxu1 }
 0x100   : > { %v629_v60 = vadd.f32 %v5907_v58, %v6913_v45  ;;  %v645_v61 = vadd.f32 %v5911_v59, %v6921_v49  ;;  %v620_v62 = vpop.f32.mrb[3].mxu0  ;;  %v636_v63 = vpop.f32.mrb[3].mxu1  ;;  %v1147_v3 = vmax.f32 %v626_v52, 0.0  ;;  %v1151_v4 = vmax.f32 %v642_v53, 0.0 }
 0x101   : > { %v621_v0 = vadd.f32 %v620_v62, %v6911_v44  ;;  %v637_v1 = vadd.f32 %v636_v63, %v6917_v47  ;;  %v1145_v7 = vmax.f32 %v618_v56, 0.0  ;;  %v1149_v8 = vmax.f32 %v634_v57, 0.0 }
 0x102   : > { %v1148_v5 = vmax.f32 %v629_v60, 0.0  ;;  %v1152_v6 = vmax.f32 %v645_v61, 0.0 }
 0x103   : > { %v1146_v9 = vmax.f32 %v621_v0, 0.0  ;;  %v1150_v10 = vmax.f32 %v637_v1, 0.0 }
 0x104   : > { %v1210_v11 = vpack.c.bf16 %v1148_v5, %v1147_v3  ;;  %v1212_v12 = vpack.c.bf16 %v1152_v6, %v1151_v4 }
 0x105   : > { %v1209_v13 = vpack.c.bf16 %v1146_v9, %v1145_v7  ;;  %v1211_v14 = vpack.c.bf16 %v1150_v10, %v1149_v8  ;;  %v5916_v15 = vpop.f32.mrb[4].mxu1  ;;  %v5926_v16 = vpop.f32.mrb[4].mxu0 }
 0x106   : > { %v697_v17 = vadd.f32 %v5916_v15, %v6909_v43  ;;  %v768_v18 = vadd.f32 %v5926_v16, %v6909_v43  ;;  %v688_v19 = vpop.f32.mrb[5].mxu1  ;;  %v759_v20 = vpop.f32.mrb[5].mxu0 }
 0x107   : > { %v689_v21 = vadd.f32 %v688_v19, %v6907_v42  ;;  %v760_v22 = vadd.f32 %v759_v20, %v6907_v42  ;;  %v5917_v23 = vpop.f32.mrb[6].mxu1  ;;  %v5927_v24 = vpop.f32.mrb[6].mxu0  ;;  %5998 = vmatprep.mubr.msk.bf16.mxu0 %vm1301_vm3, %v1209_v13  ;;  %6078 = vmatprep.mubr.msk.bf16.mxu1 %vm1301_vm3, %v1209_v13 }
 0x108   : > { %v700_v25 = vadd.f32 %v5917_v23, %v6913_v45  ;;  %v771_v26 = vadd.f32 %v5927_v24, %v6913_v45  ;;  %v691_v27 = vpop.f32.mrb[7].mxu1  ;;  %v762_v28 = vpop.f32.mrb[7].mxu0  ;;  %5999 = vmatmul.mubr.msk.bf16.vlgmr.msra.gmra.mrb[28].mxu0 %vm1301_vm3, %v1210_v11  ;;  %6079 = vmatmul.mubr.msk.bf16.vlgmr.msra.gmra.mrb[36].mxu1 %vm1301_vm3, %v1210_v11  ;;  %v1155_v31 = vmax.f32 %v697_v17, 0.0  ;;  %v1163_v32 = vmax.f32 %v768_v18, 0.0 }
 0x109   : > { %v692_v29 = vadd.f32 %v691_v27, %v6911_v44  ;;  %v763_v30 = vadd.f32 %v762_v28, %v6911_v44  ;;  %6002 = vmatprep.mubr.msk.bf16.mxu0 %vm1301_vm3, %v1211_v14  ;;  %6082 = vmatprep.mubr.msk.bf16.mxu1 %vm1301_vm3, %v1211_v14  ;;  %v1153_v35 = vmax.f32 %v689_v21, 0.0  ;;  %v1161_v37 = vmax.f32 %v760_v22, 0.0 }
 0x10a   : > { %v1156_v33 = vmax.f32 %v700_v25, 0.0  ;;  %v1164_v34 = vmax.f32 %v771_v26, 0.0 }
 0x10b   : > { %v1154_v38 = vmax.f32 %v692_v29, 0.0  ;;  %v1162_v39 = vmax.f32 %v763_v30, 0.0 }
 0x10c   : > { %v1214_v40 = vpack.c.bf16 %v1156_v33, %v1155_v31  ;;  %v6945_v41 = vpack.c.bf16 %v1164_v34, %v1163_v32 }
 0x10d   : > { %v1213_v50 = vpack.c.bf16 %v1154_v38, %v1153_v35  ;;  %v6947_v51 = vpack.c.bf16 %v1162_v39, %v1161_v37  ;;  %v5920_v52 = vpop.f32.mrb[8].mxu1  ;;  %v5930_v53 = vpop.f32.mrb[8].mxu0 }
 0x10e   : > { %v713_v54 = vadd.f32 %v5920_v52, %v6919_v48  ;;  %v784_v55 = vadd.f32 %v5930_v53, %v6919_v48  ;;  %v704_v56 = vpop.f32.mrb[9].mxu1  ;;  %v775_v57 = vpop.f32.mrb[9].mxu0 }
 0x10f   : > { %v705_v58 = vadd.f32 %v704_v56, %v6915_v46  ;;  %v776_v59 = vadd.f32 %v775_v57, %v6915_v46  ;;  %v5921_v60 = vpop.f32.mrb[10].mxu1  ;;  %v5931_v61 = vpop.f32.mrb[10].mxu0 }
 0x110   : > { %v716_v62 = vadd.f32 %v5921_v60, %v6921_v49  ;;  %v787_v63 = vadd.f32 %v5931_v61, %v6921_v49  ;;  %v707_v0 = vpop.f32.mrb[11].mxu1  ;;  %v778_v1 = vpop.f32.mrb[11].mxu0  ;;  %6003 = vmatmul.mubr.msk.bf16.gmra.mrb[32].mxu0 %vm1301_vm3, %v1212_v12  ;;  %6083 = vmatmul.mubr.msk.bf16.gmra.mrb[40].mxu1 %vm1301_vm3, %v1212_v12  ;;  %v1159_v5 = vmax.f32 %v713_v54, 0.0  ;;  %v1167_v6 = vmax.f32 %v784_v55, 0.0 }
 0x111   : > { %v708_v3 = vadd.f32 %v707_v0, %v6917_v47  ;;  %v779_v4 = vadd.f32 %v778_v1, %v6917_v47  ;;  %6006 = vmatprep.mubr.msk.bf16.mxu0 %vm1301_vm3, %v1213_v50  ;;  %6086 = vmatprep.mubr.msk.bf16.mxu1 %vm1301_vm3, %v1213_v50  ;;  %v1157_v9 = vmax.f32 %v705_v58, 0.0  ;;  %v1165_v10 = vmax.f32 %v776_v59, 0.0 }
 0x112   : > { %v1160_v7 = vmax.f32 %v716_v62, 0.0  ;;  %v1168_v8 = vmax.f32 %v787_v63, 0.0 }
 0x113   : > { %v1158_v11 = vmax.f32 %v708_v3, 0.0  ;;  %v1166_v13 = vmax.f32 %v779_v4, 0.0 }
 0x114   : > { %v1216_v14 = vpack.c.bf16 %v1160_v7, %v1159_v5  ;;  %v6961_v15 = vpack.c.bf16 %v1168_v8, %v1167_v6 }
 0x115   : > { %v1215_v12 = vpack.c.bf16 %v1158_v11, %v1157_v9  ;;  %v6963_v16 = vpack.c.bf16 %v1166_v13, %v1165_v10  ;;  %v5936_v17 = vpop.f32.mrb[12].mxu1  ;;  %v5946_v18 = vpop.f32.mrb[12].mxu0 }
 0x116   : > { %v839_v19 = vadd.f32 %v5936_v17, %v6909_v43  ;;  %v910_v20 = vadd.f32 %v5946_v18, %v6909_v43  ;;  %v830_v21 = vpop.f32.mrb[13].mxu1  ;;  %v901_v22 = vpop.f32.mrb[13].mxu0 }
 0x117   : > { %v831_v23 = vadd.f32 %v830_v21, %v6907_v42  ;;  %v902_v24 = vadd.f32 %v901_v22, %v6907_v42  ;;  %v5937_v25 = vpop.f32.mrb[14].mxu1  ;;  %v5947_v26 = vpop.f32.mrb[14].mxu0 }
 0x118   : > { %v842_v27 = vadd.f32 %v5937_v25, %v6913_v45  ;;  %v913_v28 = vadd.f32 %v5947_v26, %v6913_v45  ;;  %v833_v29 = vpop.f32.mrb[15].mxu1  ;;  %v904_v30 = vpop.f32.mrb[15].mxu0  ;;  %6007 = vmatmul.mubr.msk.bf16.gmra.mrb[36].mxu0 %vm1301_vm3, %v1214_v40  ;;  %6087 = vmatmul.mubr.msk.bf16.gmra.mrb[44].mxu1 %vm1301_vm3, %v1214_v40  ;;  %v1171_v33 = vmax.f32 %v839_v19, 0.0  ;;  %v1179_v34 = vmax.f32 %v910_v20, 0.0 }
 0x119   : > { %v834_v31 = vadd.f32 %v833_v29, %v6911_v44  ;;  %v905_v32 = vadd.f32 %v904_v30, %v6911_v44  ;;  %6010 = vmatprep.mubr.msk.bf16.mxu0 %vm1301_vm3, %v1215_v12  ;;  %6090 = vmatprep.mubr.msk.bf16.mxu1 %vm1301_vm3, %v1215_v12  ;;  %v1169_v38 = vmax.f32 %v831_v23, 0.0  ;;  %v1177_v39 = vmax.f32 %v902_v24, 0.0 }
 0x11a   : > { %v1172_v35 = vmax.f32 %v842_v27, 0.0  ;;  %v1180_v37 = vmax.f32 %v913_v28, 0.0 }
 0x11b   : > { %v1170_v50 = vmax.f32 %v834_v31, 0.0  ;;  %v1178_v52 = vmax.f32 %v905_v32, 0.0 }
 0x11c   : > { %v6977_v53 = vpack.c.bf16 %v1172_v35, %v1171_v33  ;;  %v6979_v54 = vpack.c.bf16 %v1180_v37, %v1179_v34 }
 0x11d   : > { %v6981_v40 = vpack.c.bf16 %v1170_v50, %v1169_v38  ;;  %v6983_v55 = vpack.c.bf16 %v1178_v52, %v1177_v39  ;;  %v5940_v56 = vpop.f32.mrb[16].mxu1  ;;  %v5950_v57 = vpop.f32.mrb[16].mxu0 }
 0x11e   : > { %v855_v58 = vadd.f32 %v5940_v56, %v6919_v48  ;;  %v926_v59 = vadd.f32 %v5950_v57, %v6919_v48  ;;  %v846_v60 = vpop.f32.mrb[17].mxu1  ;;  %v917_v61 = vpop.f32.mrb[17].mxu0 }
 0x11f   : > { %v847_v62 = vadd.f32 %v846_v60, %v6915_v46  ;;  %v918_v63 = vadd.f32 %v917_v61, %v6915_v46  ;;  %v5941_v0 = vpop.f32.mrb[18].mxu1  ;;  %v5951_v1 = vpop.f32.mrb[18].mxu0 }
 0x120   : > { %v858_v3 = vadd.f32 %v5941_v0, %v6921_v49  ;;  %v929_v4 = vadd.f32 %v5951_v1, %v6921_v49  ;;  %v849_v5 = vpop.f32.mrb[19].mxu1  ;;  %v920_v6 = vpop.f32.mrb[19].mxu0  ;;  %6011 = vmatmul.mubr.msk.bf16.gmra.mrb[40].mxu0 %vm1301_vm3, %v1216_v14  ;;  %6091 = vmatmul.mubr.msk.bf16.gmra.mrb[48].mxu1 %vm1301_vm3, %v1216_v14  ;;  %v1175_v9 = vmax.f32 %v855_v58, 0.0  ;;  %v1183_v10 = vmax.f32 %v926_v59, 0.0 }
 0x121   : > { %v850_v7 = vadd.f32 %v849_v5, %v6917_v47  ;;  %v921_v8 = vadd.f32 %v920_v6, %v6917_v47  ;;  %6014 = vmatprep.mubr.msk.bf16.mxu0 %vm1301_vm3, %v6947_v51  ;;  %6094 = vmatprep.mubr.msk.bf16.mxu1 %vm1301_vm3, %v6947_v51  ;;  %v1173_v12 = vmax.f32 %v847_v62, 0.0  ;;  %v1181_v17 = vmax.f32 %v918_v63, 0.0 }
 0x122   : > { %v1176_v11 = vmax.f32 %v858_v3, 0.0  ;;  %v1184_v13 = vmax.f32 %v929_v4, 0.0 }
 0x123   : > { %v1174_v18 = vmax.f32 %v850_v7, 0.0  ;;  %v1182_v19 = vmax.f32 %v921_v8, 0.0 }
 0x124   : > { %v6999_v20 = vpack.c.bf16 %v1176_v11, %v1175_v9  ;;  %v7001_v14 = vpack.c.bf16 %v1184_v13, %v1183_v10 }
 0x125   : > { %v7003_v21 = vpack.c.bf16 %v1174_v18, %v1173_v12  ;;  %v7005_v22 = vpack.c.bf16 %v1182_v19, %v1181_v17  ;;  %v5956_v23 = vpop.f32.mrb[20].mxu1  ;;  %v5966_v24 = vpop.f32.mrb[20].mxu0 }
 0x126   : > { %v981_v51 = vadd.f32 %v5956_v23, %v6909_v43  ;;  %v1052_v25 = vadd.f32 %v5966_v24, %v6909_v43  ;;  %v972_v26 = vpop.f32.mrb[21].mxu1  ;;  %v1043_v27 = vpop.f32.mrb[21].mxu0 }
 0x127   : > { %v973_v28 = vadd.f32 %v972_v26, %v6907_v42  ;;  %v1044_v29 = vadd.f32 %v1043_v27, %v6907_v42  ;;  %v5957_v30 = vpop.f32.mrb[22].mxu1  ;;  %v5967_v31 = vpop.f32.mrb[22].mxu0 }
 0x128   : > { %v984_v32 = vadd.f32 %v5957_v30, %v6913_v45  ;;  %v1055_v33 = vadd.f32 %v5967_v31, %v6913_v45  ;;  %v975_v34 = vpop.f32.mrb[23].mxu1  ;;  %v1046_v35 = vpop.f32.mrb[23].mxu0  ;;  %6015 = vmatmul.mubr.msk.bf16.gmra.mrb[44].mxu0 %vm1301_vm3, %v6945_v41  ;;  %6095 = vmatmul.mubr.msk.bf16.gmra.mrb[52].mxu1 %vm1301_vm3, %v6945_v41  ;;  %v1187_v39 = vmax.f32 %v981_v51, 0.0  ;;  %v1195_v50 = vmax.f32 %v1052_v25, 0.0 }
 0x129   : > { %v976_v37 = vadd.f32 %v975_v34, %v6911_v44  ;;  %v1047_v38 = vadd.f32 %v1046_v35, %v6911_v44  ;;  %6018 = vmatprep.mubr.msk.bf16.mxu0 %vm1301_vm3, %v6963_v16  ;;  %6098 = vmatprep.mubr.msk.bf16.mxu1 %vm1301_vm3, %v6963_v16  ;;  %v1185_v57 = vmax.f32 %v973_v28, 0.0  ;;  %v1193_v58 = vmax.f32 %v1044_v29, 0.0 }
 0x12a   : > { %v1188_v52 = vmax.f32 %v984_v32, 0.0  ;;  %v1196_v56 = vmax.f32 %v1055_v33, 0.0 }
 0x12b   : > { %v1186_v59 = vmax.f32 %v976_v37, 0.0  ;;  %v1194_v60 = vmax.f32 %v1047_v38, 0.0 }
 0x12c   : > { %v7023_v61 = vpack.c.bf16 %v1188_v52, %v1187_v39  ;;  %v7025_v41 = vpack.c.bf16 %v1196_v56, %v1195_v50 }
 0x12d   : > { %v7027_v62 = vpack.c.bf16 %v1186_v59, %v1185_v57  ;;  %v7029_v63 = vpack.c.bf16 %v1194_v60, %v1193_v58  ;;  %v5960_v0 = vpop.f32.mrb[24].mxu1  ;;  %v5970_v1 = vpop.f32.mrb[24].mxu0 }
 0x12e   : > { %v997_v16 = vadd.f32 %v5960_v0, %v6919_v48  ;;  %v1068_v3 = vadd.f32 %v5970_v1, %v6919_v48  ;;  %v988_v4 = vpop.f32.mrb[25].mxu1  ;;  %v1059_v5 = vpop.f32.mrb[25].mxu0 }
 0x12f   : > { %v989_v6 = vadd.f32 %v988_v4, %v6915_v46  ;;  %v1060_v7 = vadd.f32 %v1059_v5, %v6915_v46  ;;  %v5961_v8 = vpop.f32.mrb[26].mxu1  ;;  %v5971_v9 = vpop.f32.mrb[26].mxu0 }
 0x130   : > { %v1000_v10 = vadd.f32 %v5961_v8, %v6921_v49  ;;  %v1071_v11 = vadd.f32 %v5971_v9, %v6921_v49  ;;  %v991_v13 = vpop.f32.mrb[27].mxu1  ;;  %v1062_v12 = vpop.f32.mrb[27].mxu0  ;;  %6019 = vmatmul.mubr.msk.bf16.gmra.mrb[48].mxu0 %vm1301_vm3, %v6961_v15  ;;  %6099 = vmatmul.mubr.msk.bf16.gmra.mrb[56].mxu1 %vm1301_vm3, %v6961_v15  ;;  %v1191_v19 = vmax.f32 %v997_v16, 0.0  ;;  %v1199_v23 = vmax.f32 %v1068_v3, 0.0 }
 0x131   : > { %v992_v17 = vadd.f32 %v991_v13, %v6917_v47  ;;  %v1063_v18 = vadd.f32 %v1062_v12, %v6917_v47  ;;  %6022 = vmatprep.mubr.msk.bf16.mxu0 %vm1301_vm3, %v6981_v40  ;;  %6102 = vmatprep.mubr.msk.bf16.mxu1 %vm1301_vm3, %v6981_v40  ;;  %v1189_v25 = vmax.f32 %v989_v6, 0.0  ;;  %v1197_v26 = vmax.f32 %v1060_v7, 0.0 }
 0x132   : > { %v1192_v24 = vmax.f32 %v1000_v10, 0.0  ;;  %v1200_v51 = vmax.f32 %v1071_v11, 0.0  ;;  %v6591_v12 = vmov 0.0  }
 0x133   : > { %v1190_v27 = vmax.f32 %v992_v17, 0.0  ;;  %v1198_v28 = vmax.f32 %v1063_v18, 0.0  ;;  %6142 = vmatprep.subr.bf16.mxu1 %v6591_v12 }
 0x134   : > { %v1232_v29 = vpack.c.bf16 %v1192_v24, %v1191_v19  ;;  %v1236_v15 = vpack.c.bf16 %v1200_v51, %v1199_v23 }
 0x135   : > { %v1231_v30 = vpack.c.bf16 %v1190_v27, %v1189_v25  ;;  %v1235_v31 = vpack.c.bf16 %v1198_v28, %v1197_v26  ;;  %v5976_v32 = vpop.f32.mrb[28].mxu1 }
 0x136   : > { %v1123_v33 = vadd.f32 %v5976_v32, %v6909_v43  ;;  %v1114_v34 = vpop.f32.mrb[29].mxu1 }
 0x137   : > { %v1115_v35 = vadd.f32 %v1114_v34, %v6907_v42  ;;  %v5977_v37 = vpop.f32.mrb[30].mxu1 }
 0x138   : > { %v1126_v40 = vadd.f32 %v5977_v37, %v6913_v45  ;;  %v1117_v38 = vpop.f32.mrb[31].mxu1  ;;  %6023 = vmatmul.mubr.msk.bf16.gmra.mrb[52].mxu0 %vm1301_vm3, %v6977_v53  ;;  %6103 = vmatmul.mubr.msk.bf16.gmra.mrb[60].mxu1 %vm1301_vm3, %v6977_v53  ;;  %v1203_v43 = vmax.f32 %v1123_v33, 0.0 }
 0x139   : > { %v1118_v39 = vadd.f32 %v1117_v38, %v6911_v44  ;;  %6026 = vmatprep.mubr.msk.bf16.mxu0 %vm1301_vm3, %v7003_v21  ;;  %6106 = vmatprep.mubr.msk.bf16.mxu1 %vm1301_vm3, %v7003_v21  ;;  %v1201_v50 = vmax.f32 %v1115_v35, 0.0 }
 0x13a   : > { %v1204_v42 = vmax.f32 %v1126_v40, 0.0 }
 0x13b   : > { %v1202_v52 = vmax.f32 %v1118_v39, 0.0 }
 0x13c   : > { %v1238_v45 = vpack.c.bf16 %v1204_v42, %v1203_v43 }
 0x13d   : > { %v1237_v56 = vpack.c.bf16 %v1202_v52, %v1201_v50  ;;  %v5980_v57 = vpop.f32.mrb[32].mxu1 }
 0x13e   : > { %v1139_v58 = vadd.f32 %v5980_v57, %v6919_v48  ;;  %v1130_v59 = vpop.f32.mrb[33].mxu1 }
 0x13f   : > { %v1131_v53 = vadd.f32 %v1130_v59, %v6915_v46  ;;  %v5981_v60 = vpop.f32.mrb[34].mxu1 }
 0x140   : > { %v1142_v44 = vadd.f32 %v5981_v60, %v6921_v49  ;;  %v1133_v0 = vpop.f32.mrb[35].mxu1  ;;  %6027 = vmatmul.mubr.msk.bf16.gmra.mrb[56].mxu0 %vm1301_vm3, %v6999_v20  ;;  %6107 = vmatmul.mubr.msk.bf16.gmra.mrb[64].mxu1 %vm1301_vm3, %v6999_v20  ;;  %v1207_v48 = vmax.f32 %v1139_v58, 0.0 }
 0x141   : > { %v1134_v21 = vadd.f32 %v1133_v0, %v6917_v47  ;;  %6030 = vmatprep.mubr.msk.bf16.mxu0 %vm1301_vm3, %v6983_v55  ;;  %6110 = vmatprep.mubr.msk.bf16.mxu1 %vm1301_vm3, %v6983_v55  ;;  %v1205_v1 = vmax.f32 %v1131_v53, 0.0 }
 0x142   : > { %v1208_v46 = vmax.f32 %v1142_v44, 0.0 }
 0x143   : > { %v1206_v16 = vmax.f32 %v1134_v21, 0.0 }
 0x144   : > { %v1240_v49 = vpack.c.bf16 %v1208_v46, %v1207_v48 }
 0x145   : > { %v1239_v3 = vpack.c.bf16 %v1206_v16, %v1205_v1 }
 0x148   : > { %6031 = vmatmul.mubr.msk.bf16.gmra.mrb[60].mxu0 %vm1301_vm3, %v6979_v54  ;;  %6111 = vmatmul.mubr.msk.bf16.gmra.mrb[68].mxu1 %vm1301_vm3, %v6979_v54 }
 0x149   : > { %6034 = vmatprep.mubr.msk.bf16.mxu0 %vm1301_vm3, %v7005_v22  ;;  %6114 = vmatprep.mubr.msk.bf16.mxu1 %vm1301_vm3, %v7005_v22 }
 0x150   : > { %6035 = vmatmul.mubr.msk.bf16.gmra.mrb[64].mxu0 %vm1301_vm3, %v7001_v14  ;;  %6115 = vmatmul.mubr.msk.bf16.gmra.mrb[72].mxu1 %vm1301_vm3, %v7001_v14 }
 0x151   : > { %6038 = vmatprep.mubr.msk.bf16.mxu0 %vm1301_vm3, %v7027_v62  ;;  %6118 = vmatprep.mubr.msk.bf16.mxu1 %vm1301_vm3, %v7027_v62 }
 0x158   : > { %6039 = vmatmul.mubr.msk.bf16.gmra.mrb[68].mxu0 %vm1301_vm3, %v7023_v61  ;;  %6119 = vmatmul.mubr.msk.bf16.gmra.mrb[76].mxu1 %vm1301_vm3, %v7023_v61 }
 0x159   : > { %6042 = vmatprep.mubr.msk.bf16.mxu0 %vm1301_vm3, %v1231_v30  ;;  %6122 = vmatprep.mubr.msk.bf16.mxu1 %vm1301_vm3, %v1231_v30 }
 0x160   : > { %6043 = vmatmul.mubr.msk.bf16.gmra.mrb[72].mxu0 %vm1301_vm3, %v1232_v29  ;;  %6123 = vmatmul.mubr.msk.bf16.gmra.mrb[80].mxu1 %vm1301_vm3, %v1232_v29 }
 0x161   : > { %6046 = vmatprep.mubr.msk.bf16.mxu0 %vm1301_vm3, %v7029_v63  ;;  %6126 = vmatprep.mubr.msk.bf16.mxu1 %vm1301_vm3, %v7029_v63 }
 0x168   : > { %6047 = vmatmul.mubr.msk.bf16.gmra.mrb[76].mxu0 %vm1301_vm3, %v7025_v41  ;;  %6127 = vmatmul.mubr.msk.bf16.gmra.mrb[84].mxu1 %vm1301_vm3, %v7025_v41 }
 0x169   : > { %6050 = vmatprep.mubr.msk.bf16.mxu0 %vm1301_vm3, %v1235_v31  ;;  %6130 = vmatprep.mubr.msk.bf16.mxu1 %vm1301_vm3, %v1235_v31 }
 0x170   : > { %6051 = vmatmul.mubr.msk.bf16.gmra.mrb[80].mxu0 %vm1301_vm3, %v1236_v15  ;;  %6131 = vmatmul.mubr.msk.bf16.gmra.mrb[88].mxu1 %vm1301_vm3, %v1236_v15 }
 0x171   : > { %6054 = vmatprep.mubr.msk.bf16.mxu0 %vm1301_vm3, %v1237_v56  ;;  %6134 = vmatprep.mubr.msk.bf16.mxu1 %vm1301_vm3, %v1237_v56 }
 0x178   : > { %6055 = vmatmul.mubr.msk.bf16.gmra.mrb[84].mxu0 %vm1301_vm3, %v1238_v45  ;;  %6135 = vmatmul.mubr.msk.bf16.gmra.mrb[92].mxu1 %vm1301_vm3, %v1238_v45 }
 0x179   : > { %6058 = vmatprep.mubr.msk.bf16.mxu0 %vm1301_vm3, %v1239_v3  ;;  %6138 = vmatprep.mubr.msk.bf16.mxu1 %vm1301_vm3, %v1239_v3 }
 0x180   : > { %6059 = vmatmul.mubr.msk.bf16.gmra.mrb[88].mxu0 %vm1301_vm3, %v1240_v49  ;;  %6139 = vmatmul.mubr.msk.bf16.gmra.mrb[96].mxu1 %vm1301_vm3, %v1240_v49  ;;  %vm8613_vm3 = vcmask 793600  }
 0x181   : > { %6150 = vmatprep.mubr.msk.bf16.mxu1 %vm8609_vm4, %v6591_v12 }
 0x1db   : > { %v6000_v47 = vpop.f32.mrb[28].mxu0  ;;  %v6080_v54 = vpop.f32.mrb[36].mxu1 }
 0x1dc   : > { %v2048_v55 = vmax.f32 %v6000_v47, %v6080_v54  ;;  %v1439_v20 = vpop.f32.mrb[29].mxu0  ;;  %v1791_v14 = vpop.f32.mrb[37].mxu1 }
 0x1dd   : > { %v2046_v22 = vmax.f32 %v1439_v20, %v1791_v14  ;;  %v6001_v61 = vpop.f32.mrb[30].mxu0  ;;  %v6081_v41 = vpop.f32.mrb[38].mxu1 }
 0x1de   : > { %v2049_v62 = vmax.f32 %v6001_v61, %v6081_v41  ;;  %v1442_v63 = vpop.f32.mrb[31].mxu0  ;;  %v1794_v4 = vpop.f32.mrb[39].mxu1 }
 0x1df   : > { %v2047_v5 = vmax.f32 %v1442_v63, %v1794_v4 }
 0x1e0   : > { %v7115_v6 = vpack.c.bf16 %v2049_v62, %v2048_v55 }
 0x1e1   : > { %v7117_v7 = vpack.c.bf16 %v2047_v5, %v2046_v22 }
 0x1e2   : > { %2368 = vrot.lane.b32.xlu0 %v7115_v6, %s8600_s27  ;;  %2272 = vrot.lane.b32.xlu1 %v7115_v6, %s6590_s22 }
 0x1e3   : > { %v6004_v8 = vpop.f32.mrb[32].mxu0  ;;  %v6084_v9 = vpop.f32.mrb[40].mxu1 }
 0x1e4   : > { %v2052_v10 = vmax.f32 %v6004_v8, %v6084_v9  ;;  %v1455_v11 = vpop.f32.mrb[33].mxu0  ;;  %v1807_v13 = vpop.f32.mrb[41].mxu1 }
 0x1e5   : > { %v2050_v17 = vmax.f32 %v1455_v11, %v1807_v13  ;;  %v6005_v18 = vpop.f32.mrb[34].mxu0  ;;  %v6085_v19 = vpop.f32.mrb[42].mxu1 }
 0x1e6   : > { %v2053_v23 = vmax.f32 %v6005_v18, %v6085_v19  ;;  %v1810_v24 = vpop.f32.mrb[43].mxu1  ;;  %2464 = vrot.lane.b32.xlu0 %v7115_v6, %s6592_s28  ;;  %2176 = vrot.lane.b32.xlu1 %v7115_v6, %s6593_s18  ;;  %v1458_v51 = vpop.f32.mrb[35].mxu0 }
 0x1e7   : > { %v2051_v25 = vmax.f32 %v1458_v51, %v1810_v24 }
 0x1e8   : > { %v7128_v26 = vpack.c.bf16 %v2053_v23, %v2052_v10  ;;  %v7177_v10 = vld [vmem:[%s8635_s5 + $0x4] ss:$12 sps:$4 sm:$0xff]  }
 0x1e9   : > { %v7130_v27 = vpack.c.bf16 %v2051_v25, %v2050_v17  ;;  %2625 = vmatprep.mubr.bf16.mxu0 %v7177_v10 }
 0x1ea   : > { %2174 = vrot.lane.b32.xlu1 %v7117_v7, %s6593_s18  ;;  %2270 = vrot.lane.b32.xlu0 %v7117_v7, %s6590_s22 }
 0x1eb   : > { %v6008_v28 = vpop.f32.mrb[36].mxu0  ;;  %v6088_v29 = vpop.f32.mrb[44].mxu1 }
 0x1ec   : > { %v2056_v15 = vmax.f32 %v6008_v28, %v6088_v29  ;;  %v1471_v30 = vpop.f32.mrb[37].mxu0  ;;  %v1823_v31 = vpop.f32.mrb[45].mxu1 }
 0x1ed   : > { %v2054_v32 = vmax.f32 %v1471_v30, %v1823_v31  ;;  %v6009_v33 = vpop.f32.mrb[38].mxu0  ;;  %v6089_v34 = vpop.f32.mrb[46].mxu1 }
 0x1ee   : > { %v2057_v35 = vmax.f32 %v6009_v33, %v6089_v34  ;;  %v1826_v37 = vpop.f32.mrb[47].mxu1  ;;  %2366 = vrot.lane.b32.xlu0 %v7117_v7, %s8600_s27  ;;  %2276 = vrot.lane.b32.xlu1 %v7128_v26, %s6590_s22  ;;  %v1474_v40 = vpop.f32.mrb[39].mxu0 }
 0x1ef   : > { %v2055_v38 = vmax.f32 %v1474_v40, %v1826_v37 }
 0x1f0   : > { %v7140_v39 = vpack.c.bf16 %v2057_v35, %v2056_v15 }
 0x1f1   : > { %v7142_v43 = vpack.c.bf16 %v2055_v38, %v2054_v32 }
 0x1f2   : > { %2462 = vrot.lane.b32.xlu0 %v7117_v7, %s6592_s28  ;;  %2180 = vrot.lane.b32.xlu1 %v7128_v26, %s6593_s18 }
 0x1f3   : > { %v6012_v42 = vpop.f32.mrb[40].mxu0  ;;  %v6092_v50 = vpop.f32.mrb[48].mxu1 }
 0x1f4   : > { %v2060_v52 = vmax.f32 %v6012_v42, %v6092_v50  ;;  %v1487_v45 = vpop.f32.mrb[41].mxu0  ;;  %v1839_v56 = vpop.f32.mrb[49].mxu1 }
 0x1f5   : > { %v2058_v57 = vmax.f32 %v1487_v45, %v1839_v56  ;;  %v6013_v58 = vpop.f32.mrb[42].mxu0  ;;  %v6093_v59 = vpop.f32.mrb[50].mxu1 }
 0x1f6   : > { %v2061_v53 = vmax.f32 %v6013_v58, %v6093_v59  ;;  %v1842_v60 = vpop.f32.mrb[51].mxu1  ;;  %2372 = vrot.lane.b32.xlu0 %v7128_v26, %s8600_s27  ;;  %2468 = vrot.lane.b32.xlu1 %v7128_v26, %s6592_s28  ;;  %v1490_v44 = vpop.f32.mrb[43].mxu0 }
 0x1f7   : > { %v2059_v0 = vmax.f32 %v1490_v44, %v1842_v60 }
 0x1f8   : > { %v7152_v21 = vpack.c.bf16 %v2061_v53, %v2060_v52 }
 0x1f9   : > { %v7154_v48 = vpack.c.bf16 %v2059_v0, %v2058_v57 }
 0x1fa   : > { %2178 = vrot.lane.b32.xlu1 %v7130_v27, %s6593_s18  ;;  %2274 = vrot.lane.b32.xlu0 %v7130_v27, %s6590_s22 }
 0x1fb   : > { %v6016_v46 = vpop.f32.mrb[44].mxu0  ;;  %v6096_v1 = vpop.f32.mrb[52].mxu1 }
 0x1fc   : > { %v2064_v16 = vmax.f32 %v6016_v46, %v6096_v1  ;;  %v1503_v49 = vpop.f32.mrb[45].mxu0  ;;  %v1855_v3 = vpop.f32.mrb[53].mxu1 }
 0x1fd   : > { %v2062_v47 = vmax.f32 %v1503_v49, %v1855_v3  ;;  %v6017_v54 = vpop.f32.mrb[46].mxu0  ;;  %v6097_v55 = vpop.f32.mrb[54].mxu1 }
 0x1fe   : > { %v2065_v20 = vmax.f32 %v6017_v54, %v6097_v55  ;;  %v1858_v14 = vpop.f32.mrb[55].mxu1  ;;  %2370 = vrot.lane.b32.xlu0 %v7130_v27, %s8600_s27  ;;  %2280 = vrot.lane.b32.xlu1 %v7140_v39, %s6590_s22  ;;  %v1506_v22 = vpop.f32.mrb[47].mxu0 }
 0x1ff   : > { %v2063_v61 = vmax.f32 %v1506_v22, %v1858_v14 }
 0x200   : > { %v7164_v41 = vpack.c.bf16 %v2065_v20, %v2064_v16 }
 0x201   : > { %v7166_v62 = vpack.c.bf16 %v2063_v61, %v2062_v47 }
 0x202   : > { %2466 = vrot.lane.b32.xlu0 %v7130_v27, %s6592_s28  ;;  %2184 = vrot.lane.b32.xlu1 %v7140_v39, %s6593_s18 }
 0x203   : > { %v6020_v63 = vpop.f32.mrb[48].mxu0  ;;  %v6100_v4 = vpop.f32.mrb[56].mxu1 }
 0x204   : > { %v2068_v5 = vmax.f32 %v6020_v63, %v6100_v4  ;;  %v1519_v8 = vpop.f32.mrb[49].mxu0  ;;  %v1871_v9 = vpop.f32.mrb[57].mxu1 }
 0x205   : > { %v2066_v11 = vmax.f32 %v1519_v8, %v1871_v9  ;;  %v6021_v13 = vpop.f32.mrb[50].mxu0  ;;  %v6101_v17 = vpop.f32.mrb[58].mxu1 }
 0x206   : > { %v2069_v18 = vmax.f32 %v6021_v13, %v6101_v17  ;;  %v1874_v19 = vpop.f32.mrb[59].mxu1  ;;  %2376 = vrot.lane.b32.xlu0 %v7140_v39, %s8600_s27  ;;  %2472 = vrot.lane.b32.xlu1 %v7140_v39, %s6592_s28  ;;  %v1522_v23 = vpop.f32.mrb[51].mxu0 }
 0x207   : > { %v2067_v24 = vmax.f32 %v1522_v23, %v1874_v19 }
 0x208   : > { %v7184_v51 = vpack.c.bf16 %v2069_v18, %v2068_v5 }
 0x209   : > { %v7186_v25 = vpack.c.bf16 %v2067_v24, %v2066_v11 }
 0x20a   : > { %2374 = vrot.lane.b32.xlu1 %v7142_v43, %s8600_s27  ;;  %2278 = vrot.lane.b32.xlu0 %v7142_v43, %s6590_s22 }
 0x20b   : > { %v6024_v28 = vpop.f32.mrb[52].mxu0  ;;  %v6104_v29 = vpop.f32.mrb[60].mxu1 }
 0x20c   : > { %v2072_v15 = vmax.f32 %v6024_v28, %v6104_v29  ;;  %v1535_v30 = vpop.f32.mrb[53].mxu0  ;;  %v1887_v31 = vpop.f32.mrb[61].mxu1 }
 0x20d   : > { %v2070_v32 = vmax.f32 %v1535_v30, %v1887_v31  ;;  %v6025_v33 = vpop.f32.mrb[54].mxu0  ;;  %v6105_v34 = vpop.f32.mrb[62].mxu1 }
 0x20e   : > { %v2073_v35 = vmax.f32 %v6025_v33, %v6105_v34  ;;  %v1890_v37 = vpop.f32.mrb[63].mxu1  ;;  %2182 = vrot.lane.b32.xlu0 %v7142_v43, %s6593_s18  ;;  %2284 = vrot.lane.b32.xlu1 %v7152_v21, %s6590_s22  ;;  %v1538_v40 = vpop.f32.mrb[55].mxu0 }
 0x20f   : > { %v2071_v38 = vmax.f32 %v1538_v40, %v1890_v37 }
 0x210   : > { %v7196_v42 = vpack.c.bf16 %v2073_v35, %v2072_v15 }
 0x211   : > { %v7198_v50 = vpack.c.bf16 %v2071_v38, %v2070_v32 }
 0x212   : > { %2470 = vrot.lane.b32.xlu0 %v7142_v43, %s6592_s28  ;;  %2188 = vrot.lane.b32.xlu1 %v7152_v21, %s6593_s18 }
 0x213   : > { %v6028_v52 = vpop.f32.mrb[56].mxu0  ;;  %v6108_v45 = vpop.f32.mrb[64].mxu1 }
 0x214   : > { %v2076_v56 = vmax.f32 %v6028_v52, %v6108_v45  ;;  %v1551_v57 = vpop.f32.mrb[57].mxu0  ;;  %v1903_v58 = vpop.f32.mrb[65].mxu1 }
 0x215   : > { %v2074_v59 = vmax.f32 %v1551_v57, %v1903_v58  ;;  %v6029_v53 = vpop.f32.mrb[58].mxu0  ;;  %v6109_v60 = vpop.f32.mrb[66].mxu1 }
 0x216   : > { %v2077_v44 = vmax.f32 %v6029_v53, %v6109_v60  ;;  %v1906_v0 = vpop.f32.mrb[67].mxu1  ;;  %2380 = vrot.lane.b32.xlu0 %v7152_v21, %s8600_s27  ;;  %2282 = vrot.lane.b32.xlu1 %v7154_v48, %s6590_s22  ;;  %v1554_v46 = vpop.f32.mrb[59].mxu0 }
 0x217   : > { %v2075_v1 = vmax.f32 %v1554_v46, %v1906_v0 }
 0x218   : > { %v7208_v16 = vpack.c.bf16 %v2077_v44, %v2076_v56 }
 0x219   : > { %v7210_v49 = vpack.c.bf16 %v2075_v1, %v2074_v59 }
 0x21a   : > { %2476 = vrot.lane.b32.xlu0 %v7152_v21, %s6592_s28  ;;  %2378 = vrot.lane.b32.xlu1 %v7154_v48, %s8600_s27 }
 0x21b   : > { %v6032_v3 = vpop.f32.mrb[60].mxu0  ;;  %v6112_v47 = vpop.f32.mrb[68].mxu1 }
 0x21c   : > { %v2080_v54 = vmax.f32 %v6032_v3, %v6112_v47  ;;  %v1567_v55 = vpop.f32.mrb[61].mxu0  ;;  %v1919_v20 = vpop.f32.mrb[69].mxu1 }
 0x21d   : > { %v2078_v14 = vmax.f32 %v1567_v55, %v1919_v20  ;;  %v6033_v22 = vpop.f32.mrb[62].mxu0  ;;  %v6113_v61 = vpop.f32.mrb[70].mxu1 }
 0x21e   : > { %v2081_v63 = vmax.f32 %v6033_v22, %v6113_v61  ;;  %v1922_v4 = vpop.f32.mrb[71].mxu1  ;;  %2186 = vrot.lane.b32.xlu0 %v7154_v48, %s6593_s18  ;;  %2288 = vrot.lane.b32.xlu1 %v7164_v41, %s6590_s22  ;;  %v1570_v5 = vpop.f32.mrb[63].mxu0 }
 0x21f   : > { %v2079_v8 = vmax.f32 %v1570_v5, %v1922_v4 }
 0x220   : > { %v7220_v9 = vpack.c.bf16 %v2081_v63, %v2080_v54 }
 0x221   : > { %v7222_v11 = vpack.c.bf16 %v2079_v8, %v2078_v14 }
 0x222   : > { %2474 = vrot.lane.b32.xlu0 %v7154_v48, %s6592_s28  ;;  %2384 = vrot.lane.b32.xlu1 %v7164_v41, %s8600_s27 }
 0x223   : > { %v6036_v13 = vpop.f32.mrb[64].mxu0  ;;  %v6116_v17 = vpop.f32.mrb[72].mxu1 }
 0x224   : > { %v2084_v18 = vmax.f32 %v6036_v13, %v6116_v17  ;;  %v1583_v19 = vpop.f32.mrb[65].mxu0  ;;  %v1935_v23 = vpop.f32.mrb[73].mxu1 }
 0x225   : > { %v2082_v24 = vmax.f32 %v1583_v19, %v1935_v23  ;;  %v6037_v28 = vpop.f32.mrb[66].mxu0  ;;  %v6117_v29 = vpop.f32.mrb[74].mxu1 }
 0x226   : > { %v2085_v15 = vmax.f32 %v6037_v28, %v6117_v29  ;;  %v1938_v30 = vpop.f32.mrb[75].mxu1  ;;  %2480 = vrot.lane.b32.xlu0 %v7164_v41, %s6592_s28  ;;  %2478 = vrot.lane.b32.xlu1 %v7166_v62, %s6592_s28  ;;  %v1586_v31 = vpop.f32.mrb[67].mxu0 }
 0x227   : > { %v2083_v32 = vmax.f32 %v1586_v31, %v1938_v30 }
 0x228   : > { %v7232_v33 = vpack.c.bf16 %v2085_v15, %v2084_v18 }
 0x229   : > { %v7234_v34 = vpack.c.bf16 %v2083_v32, %v2082_v24 }
 0x22a   : > { %2192 = vrot.lane.b32.xlu0 %v7164_v41, %s6593_s18  ;;  %2286 = vrot.lane.b32.xlu1 %v7166_v62, %s6590_s22 }
 0x22b   : > { %v6040_v35 = vpop.f32.mrb[68].mxu0  ;;  %v6120_v37 = vpop.f32.mrb[76].mxu1 }
 0x22c   : > { %v2088_v40 = vmax.f32 %v6040_v35, %v6120_v37  ;;  %v1599_v38 = vpop.f32.mrb[69].mxu0  ;;  %v1951_v52 = vpop.f32.mrb[77].mxu1 }
 0x22d   : > { %v2086_v45 = vmax.f32 %v1599_v38, %v1951_v52  ;;  %v6041_v56 = vpop.f32.mrb[70].mxu0  ;;  %v6121_v57 = vpop.f32.mrb[78].mxu1 }
 0x22e   : > { %v2089_v58 = vmax.f32 %v6041_v56, %v6121_v57  ;;  %v1954_v59 = vpop.f32.mrb[79].mxu1  ;;  %2382 = vrot.lane.b32.xlu0 %v7166_v62, %s8600_s27  ;;  %2190 = vrot.lane.b32.xlu1 %v7166_v62, %s6593_s18  ;;  %v1602_v53 = vpop.f32.mrb[71].mxu0 }
 0x22f   : > { %v2087_v60 = vmax.f32 %v1602_v53, %v1954_v59 }
 0x230   : > { %v7244_v44 = vpack.c.bf16 %v2089_v58, %v2088_v40 }
 0x231   : > { %v7246_v0 = vpack.c.bf16 %v2087_v60, %v2086_v45 }
 0x232   : > { %2196 = vrot.lane.b32.xlu1 %v7184_v51, %s6593_s18  ;;  %2484 = vrot.lane.b32.xlu0 %v7184_v51, %s6592_s28 }
 0x233   : > { %v6044_v46 = vpop.f32.mrb[72].mxu0  ;;  %v6124_v1 = vpop.f32.mrb[80].mxu1 }
 0x234   : > { %v2092_v3 = vmax.f32 %v6044_v46, %v6124_v1  ;;  %v1615_v47 = vpop.f32.mrb[73].mxu0  ;;  %v1967_v54 = vpop.f32.mrb[81].mxu1 }
 0x235   : > { %v2090_v55 = vmax.f32 %v1615_v47, %v1967_v54  ;;  %v6045_v20 = vpop.f32.mrb[74].mxu0  ;;  %v6125_v14 = vpop.f32.mrb[82].mxu1 }
 0x236   : > { %v2093_v22 = vmax.f32 %v6045_v20, %v6125_v14  ;;  %v1970_v61 = vpop.f32.mrb[83].mxu1  ;;  %2292 = vrot.lane.b32.xlu0 %v7184_v51, %s6590_s22  ;;  %2290 = vrot.lane.b32.xlu1 %v7186_v25, %s6590_s22  ;;  %v1618_v63 = vpop.f32.mrb[75].mxu0 }
 0x237   : > { %v2091_v4 = vmax.f32 %v1618_v63, %v1970_v61 }
 0x238   : > { %v7256_v5 = vpack.c.bf16 %v2093_v22, %v2092_v3 }
 0x239   : > { %v7258_v8 = vpack.c.bf16 %v2091_v4, %v2090_v55 }
 0x23a   : > { %2388 = vrot.lane.b32.xlu0 %v7184_v51, %s8600_s27  ;;  %2194 = vrot.lane.b32.xlu1 %v7186_v25, %s6593_s18 }
 0x23b   : > { %v6048_v13 = vpop.f32.mrb[76].mxu0  ;;  %v6128_v17 = vpop.f32.mrb[84].mxu1 }
 0x23c   : > { %v2096_v18 = vmax.f32 %v6048_v13, %v6128_v17  ;;  %v1631_v19 = vpop.f32.mrb[77].mxu0  ;;  %v1983_v23 = vpop.f32.mrb[85].mxu1 }
 0x23d   : > { %v2094_v24 = vmax.f32 %v1631_v19, %v1983_v23  ;;  %v6049_v28 = vpop.f32.mrb[78].mxu0  ;;  %v6129_v29 = vpop.f32.mrb[86].mxu1 }
 0x23e   : > { %v2097_v15 = vmax.f32 %v6049_v28, %v6129_v29  ;;  %v1986_v30 = vpop.f32.mrb[87].mxu1  ;;  %2482 = vrot.lane.b32.xlu0 %v7186_v25, %s6592_s28  ;;  %2296 = vrot.lane.b32.xlu1 %v7196_v42, %s6590_s22  ;;  %v1634_v31 = vpop.f32.mrb[79].mxu0 }
 0x23f   : > { %v2095_v32 = vmax.f32 %v1634_v31, %v1986_v30 }
 0x240   : > { %v7268_v35 = vpack.c.bf16 %v2097_v15, %v2096_v18 }
 0x241   : > { %v7270_v37 = vpack.c.bf16 %v2095_v32, %v2094_v24 }
 0x242   : > { %2386 = vrot.lane.b32.xlu0 %v7186_v25, %s8600_s27  ;;  %2200 = vrot.lane.b32.xlu1 %v7196_v42, %s6593_s18 }
 0x243   : > { %v6052_v40 = vpop.f32.mrb[80].mxu0  ;;  %v6132_v38 = vpop.f32.mrb[88].mxu1 }
 0x244   : > { %v2100_v52 = vmax.f32 %v6052_v40, %v6132_v38  ;;  %v1647_v45 = vpop.f32.mrb[81].mxu0  ;;  %v1999_v56 = vpop.f32.mrb[89].mxu1 }
 0x245   : > { %v2098_v57 = vmax.f32 %v1647_v45, %v1999_v56  ;;  %v6053_v58 = vpop.f32.mrb[82].mxu0  ;;  %v6133_v59 = vpop.f32.mrb[90].mxu1 }
 0x246   : > { %v2101_v53 = vmax.f32 %v6053_v58, %v6133_v59  ;;  %v2002_v60 = vpop.f32.mrb[91].mxu1  ;;  %2392 = vrot.lane.b32.xlu0 %v7196_v42, %s8600_s27  ;;  %2488 = vrot.lane.b32.xlu1 %v7196_v42, %s6592_s28  ;;  %v1650_v46 = vpop.f32.mrb[83].mxu0 }
 0x247   : > { %v2099_v1 = vmax.f32 %v1650_v46, %v2002_v60 }
 0x248   : > { %v7280_v3 = vpack.c.bf16 %v2101_v53, %v2100_v52 }
 0x249   : > { %v7282_v47 = vpack.c.bf16 %v2099_v1, %v2098_v57 }
 0x24a   : > { %2390 = vrot.lane.b32.xlu0 %v7198_v50, %s8600_s27  ;;  %2294 = vrot.lane.b32.xlu1 %v7198_v50, %s6590_s22 }
 0x24b   : > { %v6056_v54 = vpop.f32.mrb[84].mxu0  ;;  %v6136_v55 = vpop.f32.mrb[92].mxu1 }
 0x24c   : > { %v2104_v20 = vmax.f32 %v6056_v54, %v6136_v55  ;;  %v1663_v14 = vpop.f32.mrb[85].mxu0  ;;  %v2015_v22 = vpop.f32.mrb[93].mxu1 }
 0x24d   : > { %v2102_v61 = vmax.f32 %v1663_v14, %v2015_v22  ;;  %v6057_v63 = vpop.f32.mrb[86].mxu0  ;;  %v6137_v4 = vpop.f32.mrb[94].mxu1 }
 0x24e   : > { %v2105_v13 = vmax.f32 %v6057_v63, %v6137_v4  ;;  %v2018_v17 = vpop.f32.mrb[95].mxu1  ;;  %2486 = vrot.lane.b32.xlu0 %v7198_v50, %s6592_s28  ;;  %2198 = vrot.lane.b32.xlu1 %v7198_v50, %s6593_s18  ;;  %v1666_v18 = vpop.f32.mrb[87].mxu0 }
 0x24f   : > { %v2103_v19 = vmax.f32 %v1666_v18, %v2018_v17 }
 0x250   : > { %v7292_v23 = vpack.c.bf16 %v2105_v13, %v2104_v20 }
 0x251   : > { %v7294_v24 = vpack.c.bf16 %v2103_v19, %v2102_v61  ;;  %v7352_v19 = vld [vmem:[%s8635_s5 + $0x8] ss:$12 sps:$4 sm:$0xff]  }
 0x252   : > { %2396 = vrot.lane.b32.xlu0 %v7208_v16, %s8600_s27  ;;  %2300 = vrot.lane.b32.xlu1 %v7208_v16, %s6590_s22 }
 0x253   : > { %v6060_v28 = vpop.f32.mrb[88].mxu0  ;;  %v6140_v29 = vpop.f32.mrb[96].mxu1 }
 0x254   : > { %v2108_v15 = vmax.f32 %v6060_v28, %v6140_v29  ;;  %v2031_v30 = vpop.f32.mrb[97].mxu1  ;;  %v2369_v31 = vpop.permute.xlu0 %2368 }
 0x255   : > { %v2273_v32 = vpop.permute.xlu1 %2272  ;;  %v1679_v40 = vpop.f32.mrb[89].mxu0 }
 0x256   : > { %v2106_v38 = vmax.f32 %v1679_v40, %v2031_v30  ;;  %v6061_v52 = vpop.f32.mrb[90].mxu0  ;;  %v6141_v45 = vpop.f32.mrb[98].mxu1  ;;  %2492 = vrot.lane.b32.xlu0 %v7208_v16, %s6592_s28  ;;  %2204 = vrot.lane.b32.xlu1 %v7208_v16, %s6593_s18 }
 0x257   : > { %v2109_v56 = vmax.f32 %v6061_v52, %v6141_v45  ;;  %v2034_v57 = vpop.f32.mrb[99].mxu1  ;;  %v1682_v58 = vpop.f32.mrb[91].mxu0 }
 0x258   : > { %v2107_v59 = vmax.f32 %v1682_v58, %v2034_v57  ;;  %v2465_v53 = vpop.permute.xlu0 %2464 }
 0x259   : > { %v7304_v60 = vpack.c.bf16 %v2109_v56, %v2108_v15  ;;  %v2177_v46 = vpop.permute.xlu1 %2176 }
 0x25a   : > { %v7306_v1 = vpack.c.bf16 %v2107_v59, %v2106_v38  ;;  %2394 = vrot.lane.b32.xlu1 %v7210_v49, %s8600_s27  ;;  %2298 = vrot.lane.b32.xlu0 %v7210_v49, %s6590_s22 }
 0x25c   : > { %v2271_v54 = vpop.permute.xlu0 %2270 }
 0x25d   : > { %v2175_v55 = vpop.permute.xlu1 %2174  ;;  %5600 = vmatprep.subr.bf16.mxu0 %v2271_v54 }
 0x25e   : > { %5601 = vmatpush3.bf16.msra.mxu0 %v7117_v7  ;;  %2202 = vrot.lane.b32.xlu0 %v7210_v49, %s6593_s18 }
 0x25f   : > { %2304 = vrot.lane.b32.xlu1 %v7220_v9, %s6590_s22  ;;  %5602 = vmatprep.subr.bf16.mxu0 %v2273_v32  ;;  %v7370_v32 = vld [vmem:[%s8635_s5] ss:$12 sps:$4 sm:$0xff]  }
 0x260   : > { %v2367_v20 = vpop.permute.xlu0 %2366 }
 0x261   : > { %v2277_v14 = vpop.permute.xlu1 %2276 }
 0x262   : > { %5603 = vmatpush3.bf16.msra.mxu0 %v7115_v6  ;;  %2490 = vrot.lane.b32.xlu0 %v7210_v49, %s6592_s28 }
 0x263   : > { %2400 = vrot.lane.b32.xlu1 %v7220_v9, %s8600_s27 }
 0x264   : > { %v2463_v22 = vpop.permute.xlu0 %2462 }
 0x265   : > { %v2181_v61 = vpop.permute.xlu1 %2180  ;;  %6143 = vmatpush3.bf16.msra.mxu1 %v2463_v22 }
 0x266   : > { %2496 = vrot.lane.b32.xlu0 %v7220_v9, %s6592_s28  ;;  %6144 = vmatprep.subr.bf16.mxu1 %v6591_v12 }
 0x267   : > { %2494 = vrot.lane.b32.xlu1 %v7222_v11, %s6592_s28 }
 0x268   : > { %v2373_v7 = vpop.permute.xlu0 %2372 }
 0x269   : > { %v2469_v63 = vpop.permute.xlu1 %2468  ;;  %6145 = vmatpush3.bf16.msra.mxu1 %v2465_v53 }
 0x26a   : > { %2208 = vrot.lane.b32.xlu0 %v7220_v9, %s6593_s18  ;;  %6146 = vmatprep.subr.bf16.mxu1 %v6591_v12 }
 0x26b   : > { %2302 = vrot.lane.b32.xlu1 %v7222_v11, %s6590_s22 }
 0x26c   : > { %v2275_v6 = vpop.permute.xlu0 %2274 }
 0x26d   : > { %v2179_v4 = vpop.permute.xlu1 %2178  ;;  %5604 = vmatprep.subr.bf16.mxu0 %v2275_v6 }
 0x26e   : > { %5605 = vmatpush3.bf16.msra.mxu0 %v7130_v27  ;;  %2398 = vrot.lane.b32.xlu0 %v7222_v11, %s8600_s27 }
 0x26f   : > { %2206 = vrot.lane.b32.xlu1 %v7222_v11, %s6593_s18  ;;  %5606 = vmatprep.subr.bf16.mxu0 %v2277_v14 }
 0x270   : > { %v2371_v13 = vpop.permute.xlu0 %2370 }
 0x271   : > { %v2281_v17 = vpop.permute.xlu1 %2280 }
 0x272   : > { %5607 = vmatpush3.bf16.msra.mxu0 %v7128_v26  ;;  %2500 = vrot.lane.b32.xlu0 %v7232_v33, %s6592_s28 }
 0x273   : > { %2212 = vrot.lane.b32.xlu1 %v7232_v33, %s6593_s18  ;;  %5608 = vmatprep.subr.bf16.mxu0 %v2367_v20 }
 0x274   : > { %v2467_v18 = vpop.permute.xlu0 %2466 }
 0x275   : > { %v7342_v27 = vpop.permute.xlu1 %2184  ;;  %6147 = vmatpush3.bf16.msra.mxu1 %v2467_v18 }
 0x276   : > { %5609 = vmatpush3.bf16.msra.mxu0 %v2175_v55  ;;  %2308 = vrot.lane.b32.xlu0 %v7232_v33, %s6590_s22 }
 0x277   : > { %2306 = vrot.lane.b32.xlu1 %v7234_v34, %s6590_s22  ;;  %5610 = vmatprep.subr.bf16.mxu0 %v2369_v31 }
 0x278   : > { %6148 = vmatprep.subr.bf16.mxu1 %v6591_v12  ;;  %v2377_v26 = vpop.permute.xlu0 %2376 }
 0x279   : > { %v2473_v28 = vpop.permute.xlu1 %2472  ;;  %6149 = vmatpush3.bf16.msra.mxu1 %v2469_v63 }
 0x27a   : > { %5611 = vmatpush3.bf16.msra.mxu0 %v2177_v46  ;;  %2404 = vrot.lane.b32.xlu0 %v7232_v33, %s8600_s27 }
 0x27b   : > { %2210 = vrot.lane.b32.xlu1 %v7234_v34, %s6593_s18  ;;  %5612 = vmatprep.subr.bf16.mxu0 %v2371_v13 }
 0x27c   : > { %v2279_v29 = vpop.permute.xlu0 %2278  ;;  %6154 = vmatprep.subr.bf16.mxu1 %v6591_v12  ;;  %6151 = vmatmul.mubr.msk.bf16.vlgmr.msra.gmra.mrb[100].mxu1 %vm2589_vm5, %v7352_v19 }
 0x27d   : > { %v2375_v15 = vpop.permute.xlu1 %2374  ;;  %6162 = vmatprep.mubr.msk.bf16.mxu1 %vm8609_vm4, %v6591_v12 }
 0x27e   : > { %5613 = vmatpush3.bf16.msra.mxu0 %v2179_v4  ;;  %2498 = vrot.lane.b32.xlu0 %v7234_v34, %s6592_s28 }
 0x27f   : > { %2312 = vrot.lane.b32.xlu1 %v7244_v44, %s6590_s22  ;;  %5614 = vmatprep.subr.bf16.mxu0 %v2373_v7 }
 0x280   : > { %v2183_v30 = vpop.permute.xlu0 %2182 }
 0x281   : > { %v2285_v31 = vpop.permute.xlu1 %2284 }
 0x282   : > { %5615 = vmatpush3.bf16.msra.mxu0 %v2181_v61  ;;  %2402 = vrot.lane.b32.xlu0 %v7234_v34, %s8600_s27 }
 0x283   : > { %2216 = vrot.lane.b32.xlu1 %v7244_v44, %s6593_s18  ;;  %5627 = vmatprep.subr.bf16.mxu0 %v2279_v29 }
 0x284   : > { %v2471_v40 = vpop.permute.xlu0 %2470 }
 0x285   : > { %v2189_v38 = vpop.permute.xlu1 %2188  ;;  %6155 = vmatpush3.bf16.msra.mxu1 %v2471_v40  ;;  %2626 = vmatmul.mubr.bf16.vlgmr.msra.gmra.mrb[92].mxu0 %v7370_v32 }
 0x286   : > { %5628 = vmatpush3.bf16.msra.mxu0 %v7142_v43  ;;  %2408 = vrot.lane.b32.xlu0 %v7244_v44, %s8600_s27 }
 0x287   : > { %2504 = vrot.lane.b32.xlu1 %v7244_v44, %s6592_s28  ;;  %5629 = vmatprep.subr.bf16.mxu0 %v2281_v17 }
 0x288   : > { %6156 = vmatprep.subr.bf16.mxu1 %v6591_v12  ;;  %v2381_v52 = vpop.permute.xlu0 %2380  ;;  %2707 = vmatprep.mubr.bf16.mxu0 %v7177_v10 }
 0x289   : > { %v2283_v45 = vpop.permute.xlu1 %2282  ;;  %6157 = vmatpush3.bf16.msra.mxu1 %v2473_v28 }
 0x28a   : > { %5630 = vmatpush3.bf16.msra.mxu0 %v7140_v39  ;;  %2406 = vrot.lane.b32.xlu0 %v7246_v0, %s8600_s27 }
 0x28b   : > { %2310 = vrot.lane.b32.xlu1 %v7246_v0, %s6590_s22  ;;  %5631 = vmatprep.subr.bf16.mxu0 %v2283_v45 }
 0x28c   : > { %v2477_v43 = vpop.permute.xlu0 %2476  ;;  %6158 = vmatprep.subr.bf16.mxu1 %v6591_v12 }
 0x28d   : > { %v2379_v56 = vpop.permute.xlu1 %2378 }
 0x28e   : > { %5632 = vmatpush3.bf16.msra.mxu0 %v7154_v48  ;;  %2502 = vrot.lane.b32.xlu0 %v7246_v0, %s6592_s28 }
 0x28f   : > { %2214 = vrot.lane.b32.xlu1 %v7246_v0, %s6593_s18  ;;  %5633 = vmatprep.subr.bf16.mxu0 %v2285_v31 }
 0x290   : > { %v2187_v39 = vpop.permute.xlu0 %2186 }
 0x291   : > { %v2289_v57 = vpop.permute.xlu1 %2288 }
 0x292   : > { %5634 = vmatpush3.bf16.msra.mxu0 %v7152_v21  ;;  %2412 = vrot.lane.b32.xlu0 %v7256_v5, %s8600_s27 }
 0x293   : > { %2316 = vrot.lane.b32.xlu1 %v7256_v5, %s6590_s22  ;;  %5635 = vmatprep.subr.bf16.mxu0 %v2375_v15 }
 0x294   : > { %v2475_v58 = vpop.permute.xlu0 %2474 }
 0x295   : > { %v2385_v48 = vpop.permute.xlu1 %2384  ;;  %6159 = vmatpush3.bf16.msra.mxu1 %v2475_v58 }
 0x296   : > { %5636 = vmatpush3.bf16.msra.mxu0 %v2183_v30  ;;  %2314 = vrot.lane.b32.xlu0 %v7258_v8, %s6590_s22 }
 0x297   : > { %2220 = vrot.lane.b32.xlu1 %v7256_v5, %s6593_s18  ;;  %5637 = vmatprep.subr.bf16.mxu0 %v2377_v26 }
 0x298   : > { %6160 = vmatprep.subr.bf16.mxu1 %v6591_v12  ;;  %v2481_v21 = vpop.permute.xlu0 %2480 }
 0x299   : > { %v2479_v59 = vpop.permute.xlu1 %2478  ;;  %6161 = vmatpush3.bf16.msra.mxu1 %v2477_v43 }
 0x29a   : > { %5638 = vmatpush3.bf16.msra.mxu0 %v7342_v27  ;;  %2508 = vrot.lane.b32.xlu0 %v7256_v5, %s6592_s28 }
 0x29b   : > { %2410 = vrot.lane.b32.xlu1 %v7258_v8, %s8600_s27  ;;  %5639 = vmatprep.subr.bf16.mxu0 %v2379_v56 }
 0x29c   : > { %v2193_v53 = vpop.permute.xlu0 %2192  ;;  %6163 = vmatmul.mubr.msk.bf16.vlgmr.msra.gmra.mrb[104].mxu1 %vm2589_vm5, %v7352_v19 }
 0x29d   : > { %v2287_v46 = vpop.permute.xlu1 %2286  ;;  %2789 = vmatprep.mubr.bf16.mxu1 %v7177_v10 }
 0x29e   : > { %5654 = vmatprep.subr.bf16.mxu1 %v2287_v46  ;;  %5640 = vmatpush3.bf16.msra.mxu0 %v2187_v39  ;;  %v2563_v39 = vld [vmem:[%s8636_s6 + $0x8] sm:$0xff] }
 0x29f   : > { %5655 = vmatpush3.bf16.msra.mxu1 %v7166_v62  ;;  %2218 = vrot.lane.b32.xlu0 %v7258_v8, %s6593_s18 }
 0x2a0   : > { %2320 = vrot.lane.b32.xlu1 %v7268_v35, %s6590_s22  ;;  %5641 = vmatprep.subr.bf16.mxu0 %v2381_v52  ;;  %v2383_v54 = vpop.permute.xlu0 %2382 }
 0x2a1   : > { %5656 = vmatprep.subr.bf16.mxu1 %v2289_v57  ;;  %v2191_v55 = vpop.permute.xlu1 %2190  ;;  %v2562_v57 = vld [vmem:[%s8636_s6] sm:$0xff] }
 0x2a2   : > { %5642 = vmatpush3.bf16.msra.mxu0 %v2189_v38 }
 0x2a3   : > { %5657 = vmatpush3.bf16.msra.mxu1 %v7164_v41  ;;  %2506 = vrot.lane.b32.xlu0 %v7258_v8, %s6592_s28 }
 0x2a4   : > { %2416 = vrot.lane.b32.xlu1 %v7268_v35, %s8600_s27  ;;  %v2485_v62 = vpop.permute.xlu0 %2484  ;;  %6166 = vmatprep.subr.bf16.mxu0 %v6591_v12 }
 0x2a5   : > { %v2197_v20 = vpop.permute.xlu1 %2196  ;;  %2708 = vmatmul.mubr.bf16.vlgmr.msra.gmra.mrb[96].mxu0 %v7370_v32 }
 0x2a6   : > { %6167 = vmatpush3.bf16.msra.mxu0 %v2479_v59  ;;  %6174 = vmatprep.mubr.msk.bf16.mxu0 %vm8609_vm4, %v6591_v12 }
 0x2a7   : > { %2512 = vrot.lane.b32.xlu0 %v7268_v35, %s6592_s28  ;;  %6168 = vmatprep.subr.bf16.mxu0 %v6591_v12 }
 0x2a8   : > { %2510 = vrot.lane.b32.xlu1 %v7270_v37, %s6592_s28  ;;  %v2293_v41 = vpop.permute.xlu0 %2292 }
 0x2a9   : > { %v2291_v14 = vpop.permute.xlu1 %2290 }
 0x2aa   : > { %5658 = vmatprep.subr.bf16.mxu1 %v2291_v14  ;;  %6169 = vmatpush3.bf16.msra.mxu0 %v2481_v21 }
 0x2ab   : > { %5659 = vmatpush3.bf16.msra.mxu1 %v7186_v25  ;;  %2414 = vrot.lane.b32.xlu0 %v7270_v37, %s8600_s27 }
 0x2ac   : > { %2318 = vrot.lane.b32.xlu1 %v7270_v37, %s6590_s22  ;;  %5660 = vmatprep.subr.bf16.mxu1 %v2293_v41  ;;  %v2389_v22 = vpop.permute.xlu0 %2388 }
 0x2ad   : > { %v2195_v61 = vpop.permute.xlu1 %2194  ;;  %6170 = vmatprep.subr.bf16.mxu0 %v6591_v12 }
 0x2af   : > { %5661 = vmatpush3.bf16.msra.mxu1 %v7184_v51  ;;  %2516 = vrot.lane.b32.xlu0 %v7280_v3, %s6592_s28 }
 0x2b0   : > { %2222 = vrot.lane.b32.xlu1 %v7270_v37, %s6593_s18  ;;  %5662 = vmatprep.subr.bf16.mxu1 %v2383_v54  ;;  %v2483_v25 = vpop.permute.xlu0 %2482 }
 0x2b1   : > { %v2297_v7 = vpop.permute.xlu1 %2296  ;;  %6171 = vmatpush3.bf16.msra.mxu0 %v2483_v25 }
 0x2b2   : > { %6172 = vmatprep.subr.bf16.mxu0 %v6591_v12 }
 0x2b3   : > { %5663 = vmatpush3.bf16.msra.mxu1 %v2191_v55  ;;  %2324 = vrot.lane.b32.xlu0 %v7280_v3, %s6590_s22 }
 0x2b4   : > { %2322 = vrot.lane.b32.xlu1 %v7282_v47, %s6590_s22  ;;  %5664 = vmatprep.subr.bf16.mxu1 %v2385_v48  ;;  %v2387_v51 = vpop.permute.xlu0 %2386 }
 0x2b5   : > { %v7448_v63 = vpop.permute.xlu1 %2200  ;;  %6173 = vmatpush3.bf16.msra.mxu0 %v2485_v62 }
 0x2b7   : > { %5665 = vmatpush3.bf16.msra.mxu1 %v2193_v53  ;;  %2514 = vrot.lane.b32.xlu0 %v7282_v47, %s6592_s28 }
 0x2b8   : > { %2328 = vrot.lane.b32.xlu1 %v7292_v23, %s6590_s22  ;;  %5666 = vmatprep.subr.bf16.mxu1 %v2387_v51  ;;  %v2393_v6 = vpop.permute.xlu0 %2392 }
 0x2b9   : > { %v2489_v4 = vpop.permute.xlu1 %2488  ;;  %6175 = vmatmul.mubr.msk.bf16.vlgmr.msra.gmra.mrb[100].mxu0 %vm2589_vm5, %v7352_v19 }
 0x2ba   : > { %2871 = vmatprep.mubr.bf16.mxu0 %v7177_v10 }
 0x2bb   : > { %5667 = vmatpush3.bf16.msra.mxu1 %v2195_v61  ;;  %2224 = vrot.lane.b32.xlu0 %v7268_v35, %s6593_s18 }
 0x2bc   : > { %2326 = vrot.lane.b32.xlu1 %v7294_v24, %s6590_s22  ;;  %5668 = vmatprep.subr.bf16.mxu1 %v2389_v22  ;;  %v2391_v13 = vpop.permute.xlu0 %2390 }
 0x2bd   : > { %v2295_v17 = vpop.permute.xlu1 %2294 }
 0x2be   : > { %5681 = vmatprep.subr.bf16.mxu0 %v2295_v17  ;;  %v6522_v17 = vld [vmem:[%s8635_s5 + $0x4] ss:$12 sps:$4 sm:$0xff]   ;;  %s8652_s5 = smov 25  }
 0x2bf   : > { %5669 = vmatpush3.bf16.msra.mxu1 %v2197_v20  ;;  %5682 = vmatpush3.bf16.msra.mxu0 %v7198_v50 }
 0x2c0   : > { %2418 = vrot.lane.b32.xlu0 %v7282_v47, %s8600_s27  ;;  %2226 = vrot.lane.b32.xlu1 %v7282_v47, %s6593_s18  ;;  %v2487_v18 = vpop.permute.xlu0 %2486 }
 0x2c1   : > { %5683 = vmatprep.subr.bf16.mxu0 %v2297_v7  ;;  %v2199_v27 = vpop.permute.xlu1 %2198  ;;  %6178 = vmatprep.subr.bf16.mxu1 %v6591_v12 }
 0x2c2   : > { %2790 = vmatmul.mubr.bf16.vlgmr.msra.gmra.mrb[108].mxu1 %v7370_v32 }
 0x2c3   : > { %5684 = vmatpush3.bf16.msra.mxu0 %v7196_v42  ;;  %6179 = vmatpush3.bf16.msra.mxu1 %v2487_v18 }
 0x2c4   : > { %2422 = vrot.lane.b32.xlu0 %v7294_v24, %s8600_s27  ;;  %2230 = vrot.lane.b32.xlu1 %v7294_v24, %s6593_s18  ;;  %v2397_v50 = vpop.permute.xlu0 %2396 }
 0x2c5   : > { %v2301_v26 = vpop.permute.xlu1 %2300  ;;  %6180 = vmatprep.subr.bf16.mxu1 %v6591_v12  ;;  %6186 = vmatprep.mubr.msk.bf16.mxu1 %vm8609_vm4, %v6591_v12 }
 0x2c7   : > { %6181 = vmatpush3.bf16.msra.mxu1 %v2489_v4 }
 0x2c8   : > { %2332 = vrot.lane.b32.xlu1 %v7304_v60, %s6590_s22  ;;  %2330 = vrot.lane.b32.xlu0 %v7306_v1, %s6590_s22  ;;  %v2493_v42 = vpop.permute.xlu0 %2492  ;;  %s8582_s22 = smov 50  }
 0x2c9   : > { %v2205_v28 = vpop.permute.xlu1 %2204  ;;  %6182 = vmatprep.subr.bf16.mxu1 %v6591_v12 }
 0x2cc   : > { %2228 = vrot.lane.b32.xlu1 %v7280_v3, %s6593_s18  ;;  %2420 = vrot.lane.b32.xlu0 %v7280_v3, %s8600_s27  ;;  %v2299_v29 = vpop.permute.xlu0 %2298 }
 0x2cd   : > { %v2395_v15 = vpop.permute.xlu1 %2394  ;;  %5685 = vmatprep.subr.bf16.mxu0 %v2299_v29 }
 0x2ce   : > { %5686 = vmatpush3.bf16.msra.mxu0 %v7210_v49 }
 0x2cf   : > { %5687 = vmatprep.subr.bf16.mxu0 %v2301_v26 }
 0x2d0   : > { %2232 = vrot.lane.b32.xlu1 %v7292_v23, %s6593_s18  ;;  %2424 = vrot.lane.b32.xlu0 %v7292_v23, %s8600_s27  ;;  %v2203_v30 = vpop.permute.xlu0 %2202 }
 0x2d1   : > { %v2305_v31 = vpop.permute.xlu1 %2304 }
 0x2d2   : > { %5688 = vmatpush3.bf16.msra.mxu0 %v7208_v16 }
 0x2d3   : > { %5689 = vmatprep.subr.bf16.mxu0 %v2391_v13 }
 0x2d4   : > { %2426 = vrot.lane.b32.xlu1 %v7306_v1, %s8600_s27  ;;  %2518 = vrot.lane.b32.xlu0 %v7294_v24, %s6592_s28  ;;  %v2491_v40 = vpop.permute.xlu0 %2490 }
 0x2d5   : > { %v2401_v49 = vpop.permute.xlu1 %2400  ;;  %6183 = vmatpush3.bf16.msra.mxu1 %v2491_v40 }
 0x2d6   : > { %5690 = vmatpush3.bf16.msra.mxu0 %v2199_v27  ;;  %6184 = vmatprep.subr.bf16.mxu1 %v6591_v12 }
 0x2d7   : > { %5691 = vmatprep.subr.bf16.mxu0 %v2393_v6 }
 0x2d8   : > { %2520 = vrot.lane.b32.xlu1 %v7292_v23, %s6592_s28  ;;  %2234 = vrot.lane.b32.xlu0 %v7306_v1, %s6593_s18  ;;  %v2497_v16 = vpop.permute.xlu0 %2496 }
 0x2d9   : > { %v2495_v38 = vpop.permute.xlu1 %2494  ;;  %6185 = vmatpush3.bf16.msra.mxu1 %v2493_v42 }
 0x2da   : > { %5692 = vmatpush3.bf16.msra.mxu0 %v7448_v63 }
 0x2db   : > { %5693 = vmatprep.subr.bf16.mxu0 %v2395_v15 }
 0x2dc   : > { %2236 = vrot.lane.b32.xlu1 %v7304_v60, %s6593_s18  ;;  %2428 = vrot.lane.b32.xlu0 %v7304_v60, %s8600_s27  ;;  %v2209_v52 = vpop.permute.xlu0 %2208  ;;  %s8576_s18 = smov 100  }
 0x2dd   : > { %v2303_v45 = vpop.permute.xlu1 %2302  ;;  %6187 = vmatmul.mubr.msk.bf16.vlgmr.msra.gmra.mrb[112].mxu1 %vm2589_vm5, %v7352_v19 }
 0x2de   : > { %5708 = vmatprep.subr.bf16.mxu1 %v2303_v45  ;;  %5694 = vmatpush3.bf16.msra.mxu0 %v2203_v30 }
 0x2df   : > { %5709 = vmatpush3.bf16.msra.mxu1 %v7222_v11  ;;  %5695 = vmatprep.subr.bf16.mxu0 %v2397_v50 }
 0x2e0   : > { %2524 = vrot.lane.b32.xlu1 %v7304_v60, %s6592_s28  ;;  %2522 = vrot.lane.b32.xlu0 %v7306_v1, %s6592_s28  ;;  %v2399_v43 = vpop.permute.xlu0 %2398  ;;  %s8574_s28 = smov 122  }
 0x2e1   : > { %5710 = vmatprep.subr.bf16.mxu1 %v2305_v31  ;;  %v2207_v56 = vpop.permute.xlu1 %2206  ;;  %2953 = vmatprep.mubr.bf16.mxu1 %v7177_v10 }
 0x2e2   : > { %5696 = vmatpush3.bf16.msra.mxu0 %v2205_v28 }
 0x2e3   : > { %5711 = vmatpush3.bf16.msra.mxu1 %v7220_v9  ;;  %6190 = vmatprep.subr.bf16.mxu0 %v6591_v12 }
 0x2e4   : > { %2571 = vperm.xlu1 %6434, %v2563_v39   ;;  %2566 = vperm.xlu0 %6433, %v2562_v57   ;;  %v2501_v11 = vpop.permute.xlu0 %2500 }
 0x2e5   : > { %v2213_v58 = vpop.permute.xlu1 %2212  ;;  %2872 = vmatmul.mubr.bf16.vlgmr.msra.gmra.mrb[104].mxu0 %v7370_v32 }
 0x2e6   : > { %6191 = vmatpush3.bf16.msra.mxu0 %v2495_v38  ;;  %6198 = vmatprep.mubr.msk.bf16.mxu0 %vm8609_vm4, %v6591_v12 }
 0x2e7   : > { %6192 = vmatprep.subr.bf16.mxu0 %v6591_v12 }
 0x2e8   : > { %v2309_v48 = vpop.permute.xlu0 %2308 }
 0x2e9   : > { %v2307_v21 = vpop.permute.xlu1 %2306 }
 0x2ea   : > { %5712 = vmatprep.subr.bf16.mxu1 %v2307_v21  ;;  %6193 = vmatpush3.bf16.msra.mxu0 %v2497_v16 }
 0x2eb   : > { %5713 = vmatpush3.bf16.msra.mxu1 %v7234_v34  ;;  %6194 = vmatprep.subr.bf16.mxu0 %v6591_v12 }
 0x2ec   : > { %5714 = vmatprep.subr.bf16.mxu1 %v2309_v48  ;;  %v2405_v9 = vpop.permute.xlu0 %2404  ;;  %v3327_v48 = vsel %vm8602_vm2, 4294967295, %v6588_v36  ;;  %v6474_v36 = vld [vmem:[%s8637_s7 + $0x34] ss:$0 sps:$4 sm:$0x77]   ;;  %vm4324_vm2 = vcmask 1022976  }
 0x2ed   : > { %v2211_v59 = vpop.permute.xlu1 %2210 }
 0x2ef   : > { %5715 = vmatpush3.bf16.msra.mxu1 %v7232_v33 }
 0x2f0   : > { %5716 = vmatprep.subr.bf16.mxu1 %v2399_v43  ;;  %v2499_v53 = vpop.permute.xlu0 %2498 }
 0x2f1   : > { %v2313_v46 = vpop.permute.xlu1 %2312  ;;  %6195 = vmatpush3.bf16.msra.mxu0 %v2499_v53  ;;  %v7590_v53 = vsel %vm3326_vm6, %v3327_v48, 0  ;;  %v6476_v48 = vld [vmem:[%s8637_s7 + $0x54] sm:$0xff]   ;;  %vm4494_vm6 = vcmask 973824  }
 0x2f2   : > { %6196 = vmatprep.subr.bf16.mxu0 %v6591_v12 }
 0x2f3   : > { %5717 = vmatpush3.bf16.msra.mxu1 %v2207_v56 }
 0x2f4   : > { %5718 = vmatprep.subr.bf16.mxu1 %v2401_v49  ;;  %v2403_v54 = vpop.permute.xlu0 %2402 }
 0x2f5   : > { %v2217_v55 = vpop.permute.xlu1 %2216  ;;  %6197 = vmatpush3.bf16.msra.mxu0 %v2501_v11  ;;  %v6470_v11 = vld [vmem:[%s8637_s7 + $0x24] sm:$0xff]  }
 0x2f7   : > { %5719 = vmatpush3.bf16.msra.mxu1 %v2209_v52  ;;  %v6468_v52 = vld [vmem:[%s8637_s7 + $0x1c] sm:$0xff]  }
 0x2f8   : > { %5720 = vmatprep.subr.bf16.mxu1 %v2403_v54  ;;  %v2409_v34 = vpop.permute.xlu0 %2408  ;;  %6199 = vmatmul.mubr.msk.bf16.vlgmr.msra.gmra.mrb[108].mxu0 %vm2589_vm5, %v7352_v19  ;;  %v6469_v54 = vld [vmem:[%s8637_s7 + $0x8] sm:$0xff]  }
 0x2f9   : > { %v2505_v62 = vpop.permute.xlu1 %2504  ;;  %3035 = vmatprep.mubr.bf16.mxu0 %v7177_v10 }
 0x2fb   : > { %5721 = vmatpush3.bf16.msra.mxu1 %v2211_v59  ;;  %v6472_v59 = vld [vmem:[%s8637_s7 + $0x2c] sm:$0xff]  }
 0x2fc   : > { %5722 = vmatprep.subr.bf16.mxu1 %v2405_v9  ;;  %v2407_v33 = vpop.permute.xlu0 %2406  ;;  %v6467_v9 = vld [vmem:[%s8637_s7] sm:$0xff]  }
 0x2fd   : > { %v2311_v20 = vpop.permute.xlu1 %2310 }
 0x2fe   : > { %5735 = vmatprep.subr.bf16.mxu0 %v2311_v20 }
 0x2ff   : > { %5723 = vmatpush3.bf16.msra.mxu1 %v2213_v58  ;;  %5736 = vmatpush3.bf16.msra.mxu0 %v7246_v0 }
 0x300   : > { %5737 = vmatprep.subr.bf16.mxu0 %v2313_v46  ;;  %v2503_v41 = vpop.permute.xlu0 %2502  ;;  %6202 = vmatprep.subr.bf16.mxu1 %v6591_v12 }
 0x301   : > { %v2215_v14 = vpop.permute.xlu1 %2214 }
 0x302   : > { %2954 = vmatmul.mubr.bf16.vlgmr.msra.gmra.mrb[116].mxu1 %v7370_v32 }
 0x303   : > { %5738 = vmatpush3.bf16.msra.mxu0 %v7244_v44  ;;  %6203 = vmatpush3.bf16.msra.mxu1 %v2503_v41 }
 0x304   : > { %v2413_v22 = vpop.permute.xlu0 %2412  ;;  %6204 = vmatprep.subr.bf16.mxu1 %v6591_v12  ;;  %6210 = vmatprep.mubr.msk.bf16.mxu1 %vm8609_vm4, %v6591_v12 }
 0x305   : > { %v2317_v10 = vpop.permute.xlu1 %2316 }
 0x307   : > { %6205 = vmatpush3.bf16.msra.mxu1 %v2505_v62 }
 0x308   : > { %v2315_v61 = vpop.permute.xlu0 %2314  ;;  %6206 = vmatprep.subr.bf16.mxu1 %v6591_v12 }
 0x309   : > { %v2221_v0 = vpop.permute.xlu1 %2220  ;;  %5739 = vmatprep.subr.bf16.mxu0 %v2315_v61 }
 0x30a   : > { %5740 = vmatpush3.bf16.msra.mxu0 %v7258_v8 }
 0x30b   : > { %5741 = vmatprep.subr.bf16.mxu0 %v2317_v10 }
 0x30c   : > { %v2509_v25 = vpop.permute.xlu0 %2508 }
 0x30d   : > { %v2411_v7 = vpop.permute.xlu1 %2410 }
 0x30e   : > { %5742 = vmatpush3.bf16.msra.mxu0 %v7256_v5 }
 0x30f   : > { %5743 = vmatprep.subr.bf16.mxu0 %v2407_v33 }
 0x311   : > { %v2219_v44 = vpop.permute.xlu0 %2218 }
 0x312   : > { %v2321_v51 = vpop.permute.xlu1 %2320  ;;  %5744 = vmatpush3.bf16.msra.mxu0 %v2215_v14  ;;  %v6471_v14 = vld [vmem:[%s8637_s7 + $0x10] sm:$0xff]  }
 0x313   : > { %5745 = vmatprep.subr.bf16.mxu0 %v2409_v34  ;;  %v3459_v34 = vand.u32 %v6474_v36, %v7590_v53 }
 0x315   : > { %v2507_v63 = vpop.permute.xlu0 %2506 }
 0x316   : > { %v2417_v6 = vpop.permute.xlu1 %2416  ;;  %6207 = vmatpush3.bf16.msra.mxu1 %v2507_v63  ;;  %5746 = vmatpush3.bf16.msra.mxu0 %v2217_v55 }
 0x317   : > { %5747 = vmatprep.subr.bf16.mxu0 %v2411_v7  ;;  %6208 = vmatprep.subr.bf16.mxu1 %v6591_v12 }
 0x319   : > { %v2513_v4 = vpop.permute.xlu0 %2512 }
 0x31a   : > { %v2511_v13 = vpop.permute.xlu1 %2510  ;;  %6209 = vmatpush3.bf16.msra.mxu1 %v2509_v25  ;;  %5748 = vmatpush3.bf16.msra.mxu0 %v2219_v44 }
 0x31b   : > { %5749 = vmatprep.subr.bf16.mxu0 %v2413_v22  ;;  %v6473_v22 = vld [vmem:[%s8637_s7 + $0x18] ss:$0 sps:$4 sm:$0x77]  }
 0x31d   : > { %v2415_v8 = vpop.permute.xlu0 %2414  ;;  %6211 = vmatmul.mubr.msk.bf16.vlgmr.msra.gmra.mrb[120].mxu1 %vm2589_vm5, %v7352_v19 }
 0x31e   : > { %v2319_v5 = vpop.permute.xlu1 %2318  ;;  %5750 = vmatpush3.bf16.msra.mxu0 %v2221_v0  ;;  %3117 = vmatprep.mubr.bf16.mxu1 %v6522_v17 }
 0x31f   : > { %5762 = vmatprep.subr.bf16.mxu1 %v2319_v5  ;;  %6214 = vmatprep.subr.bf16.mxu0 %v6591_v12 }
 0x320   : > { %5763 = vmatpush3.bf16.msra.mxu1 %v7270_v37 }
 0x321   : > { %5764 = vmatprep.subr.bf16.mxu1 %v2321_v51  ;;  %v2517_v18 = vpop.permute.xlu0 %2516  ;;  %3036 = vmatmul.mubr.bf16.vlgmr.msra.gmra.mrb[112].mxu0 %v7370_v32 }
 0x322   : > { %v2223_v27 = vpop.permute.xlu1 %2222  ;;  %6215 = vmatpush3.bf16.msra.mxu0 %v2511_v13  ;;  %6222 = vmatprep.mubr.msk.bf16.mxu0 %vm8609_vm4, %v6591_v12 }
 0x323   : > { %6216 = vmatprep.subr.bf16.mxu0 %v6591_v12 }
 0x324   : > { %5765 = vmatpush3.bf16.msra.mxu1 %v7268_v35 }
 0x325   : > { %v2325_v50 = vpop.permute.xlu0 %2324 }
 0x326   : > { %v2323_v26 = vpop.permute.xlu1 %2322  ;;  %6217 = vmatpush3.bf16.msra.mxu0 %v2513_v4 }
 0x327   : > { %5766 = vmatprep.subr.bf16.mxu1 %v2323_v26  ;;  %6218 = vmatprep.subr.bf16.mxu0 %v6591_v12 }
 0x328   : > { %5767 = vmatpush3.bf16.msra.mxu1 %v7282_v47 }
 0x329   : > { %5768 = vmatprep.subr.bf16.mxu1 %v2325_v50  ;;  %v2515_v37 = vpop.permute.xlu0 %2514 }
 0x32a   : > { %v2329_v42 = vpop.permute.xlu1 %2328  ;;  %6219 = vmatpush3.bf16.msra.mxu0 %v2515_v37 }
 0x32b   : > { %6220 = vmatprep.subr.bf16.mxu0 %v6591_v12 }
 0x32c   : > { %5769 = vmatpush3.bf16.msra.mxu1 %v7280_v3 }
 0x32d   : > { %5770 = vmatprep.subr.bf16.mxu1 %v2415_v8  ;;  %v2225_v28 = vpop.permute.xlu0 %2224 }
 0x32e   : > { %v2327_v29 = vpop.permute.xlu1 %2326  ;;  %6221 = vmatpush3.bf16.msra.mxu0 %v2517_v18 }
 0x32f   : > { %5789 = vmatprep.subr.bf16.mxu0 %v2327_v29 }
 0x330   : > { %5771 = vmatpush3.bf16.msra.mxu1 %v2223_v27 }
 0x331   : > { %5772 = vmatprep.subr.bf16.mxu1 %v2417_v6  ;;  %6223 = vmatmul.mubr.msk.bf16.vlgmr.msra.gmra.mrb[116].mxu0 %vm2589_vm5, %v7352_v19 }
 0x332   : > { %v2419_v35 = vpop.permute.xlu0 %2418  ;;  %v2227_v47 = vpop.permute.xlu1 %2226  ;;  %5790 = vmatpush3.bf16.msra.mxu0 %v7294_v24  ;;  %3199 = vmatprep.mubr.bf16.mxu0 %v6522_v17 }
 0x333   : > { %5791 = vmatprep.subr.bf16.mxu0 %v2329_v42 }
 0x334   : > { %5773 = vmatpush3.bf16.msra.mxu1 %v2225_v28 }
 0x335   : > { %5774 = vmatprep.subr.bf16.mxu1 %v2419_v35 }
 0x336   : > { %v2423_v15 = vpop.permute.xlu0 %2422  ;;  %v2231_v3 = vpop.permute.xlu1 %2230  ;;  %5792 = vmatpush3.bf16.msra.mxu0 %v7292_v23 }
 0x338   : > { %5775 = vmatpush3.bf16.msra.mxu1 %v2227_v47 }
 0x33a   : > { %v2333_v30 = vpop.permute.xlu1 %2332  ;;  %v2331_v31 = vpop.permute.xlu0 %2330 }
 0x33b   : > { %5793 = vmatprep.subr.bf16.mxu0 %v2331_v31 }
 0x33c   : > { %5794 = vmatpush3.bf16.msra.mxu0 %v7306_v1 }
 0x33d   : > { %5795 = vmatprep.subr.bf16.mxu0 %v2333_v30 }
 0x33e   : > { %v2229_v40 = vpop.permute.xlu1 %2228  ;;  %v2421_v49 = vpop.permute.xlu0 %2420 }
 0x33f   : > { %5776 = vmatprep.subr.bf16.mxu1 %v2421_v49 }
 0x340   : > { %5777 = vmatpush3.bf16.msra.mxu1 %v2229_v40  ;;  %5796 = vmatpush3.bf16.msra.mxu0 %v7304_v60 }
 0x341   : > { %5797 = vmatprep.subr.bf16.mxu0 %v2423_v15  ;;  %6226 = vmatprep.subr.bf16.mxu1 %v6591_v12 }
 0x342   : > { %v2233_v24 = vpop.permute.xlu1 %2232  ;;  %v2425_v16 = vpop.permute.xlu0 %2424 }
 0x343   : > { %3118 = vmatmul.mubr.bf16.vlgmr.msra.gmra.mrb[124].mxu1 %v7370_v32 }
 0x344   : > { %5798 = vmatpush3.bf16.msra.mxu0 %v2231_v3  ;;  %6234 = vmatprep.mubr.msk.bf16.mxu1 %vm8609_vm4, %v6591_v12  ;;  %vm4409_vm4 = vcmask 998400  }
 0x345   : > { %5799 = vmatprep.subr.bf16.mxu0 %v2425_v16 }
 0x346   : > { %v2427_v23 = vpop.permute.xlu1 %2426  ;;  %v2519_v1 = vpop.permute.xlu0 %2518 }
 0x347   : > { %6227 = vmatpush3.bf16.msra.mxu1 %v2519_v1 }
 0x348   : > { %5800 = vmatpush3.bf16.msra.mxu0 %v2233_v24  ;;  %6228 = vmatprep.subr.bf16.mxu1 %v6591_v12 }
 0x349   : > { %5801 = vmatprep.subr.bf16.mxu0 %v2427_v23 }
 0x34a   : > { %v2521_v60 = vpop.permute.xlu1 %2520  ;;  %v2235_v38 = vpop.permute.xlu0 %2234 }
 0x34b   : > { %6229 = vmatpush3.bf16.msra.mxu1 %v2521_v60 }
 0x34c   : > { %5802 = vmatpush3.bf16.msra.mxu0 %v2235_v38  ;;  %6230 = vmatprep.subr.bf16.mxu1 %v6591_v12 }
 0x34e   : > { %v2237_v45 = vpop.permute.xlu1 %2236  ;;  %v2429_v43 = vpop.permute.xlu0 %2428 }
 0x34f   : > { %5803 = vmatprep.subr.bf16.mxu0 %v2429_v43  ;;  %v2668_v56 = vpop.f32.mrb[100].mxu1 }
 0x350   : > { %5804 = vmatpush3.bf16.msra.mxu0 %v2237_v45  ;;  %v6152_v39 = vpop.f32.mrb[101].mxu1 }
 0x351   : > { %v2671_v57 = vpop.f32.mrb[102].mxu1  ;;  %6262 = vmatprep.subr.bf16.mxu0 %v6468_v52 }
 0x352   : > { %v2523_v58 = vpop.permute.xlu0 %2522  ;;  %v6153_v21 = vpop.f32.mrb[103].mxu1 }
 0x353   : > { %3200 = vmatmul.mubr.bf16.vlgmr.msra.gmra.mrb[120].mxu0 %v7370_v32  ;;  %6231 = vmatpush3.bf16.msra.mxu1 %v2523_v58  ;;  %v2525_v32 = vpop.permute.xlu1 %2524  ;;  %v6475_v58 = vld [vmem:[%s8637_s7 + $0x38] sm:$0xff]  }
 0x354   : > { %6232 = vmatprep.subr.bf16.mxu1 %v6591_v12  ;;  %6263 = vmatpush3.bf16.msra.mxu0 %v6468_v52 }
 0x355   : > { %6264 = vmatprep.subr.bf16.mxu0 %v6470_v11 }
 0x357   : > { %6233 = vmatpush3.bf16.msra.mxu1 %v2525_v32 }
 0x358   : > { %v5616_v46 = vpop.f32.mrb[92].mxu0  ;;  %6238 = vmatprep.subr.bf16.mxu1 %v6467_v9  ;;  %6265 = vmatpush3.bf16.msra.mxu0 %v6470_v11 }
 0x359   : > { %v5617_v55 = vpop.f32.mrb[93].mxu0  ;;  %6266 = vmatprep.subr.bf16.mxu0 %v6472_v59 }
 0x35a   : > { %6235 = vmatmul.mubr.msk.bf16.vlgmr.msra.gmra.mrb[128].mxu1 %vm2589_vm5, %v7352_v19  ;;  %v5618_v62 = vadd.f32 %v5617_v55, %v5616_v46  ;;  %v5619_v33 = vpop.f32.mrb[94].mxu0  ;;  %v3330_v19 = vand.u32 %v6473_v22, %v7590_v53  ;;  %v6480_v55 = vld [vmem:[%s8637_s7 + $0x64] sm:$0xff]   ;;  %vm4477_vm5 = vcmask 769024  }
 0x35b   : > { %v5620_v20 = vpop.f32.mrb[95].mxu0  ;;  %6239 = vmatpush3.bf16.msra.mxu1 %v6467_v9  ;;  %v6477_v9 = vld [vmem:[%s8637_s7 + $0x40] sm:$0xff]  }
 0x35c   : > { %v5621_v41 = vadd.f32 %v5620_v20, %v5619_v33  ;;  %6240 = vmatprep.subr.bf16.mxu1 %v6469_v54  ;;  %6267 = vmatpush3.bf16.msra.mxu0 %v6472_v59  ;;  %v6478_v59 = vld [vmem:[%s8637_s7 + $0x5c] sm:$0xff]  }
 0x35d   : > { %6268 = vmatprep.subr.bf16.mxu0 %v3459_v34 }
 0x35f   : > { %6241 = vmatpush3.bf16.msra.mxu1 %v6469_v54  ;;  %v6479_v54 = vld [vmem:[%s8637_s7 + $0x48] sm:$0xff]  }
 0x360   : > { %6242 = vmatprep.subr.bf16.mxu1 %v6471_v14  ;;  %6269 = vmatpush3.bf16.msra.mxu0 %v3459_v34  ;;  %v6481_v34 = vld [vmem:[%s8637_s7 + $0x50] ss:$0 sps:$4 sm:$0x77]  }
 0x361   : > { %6310 = vmatprep.subr.bf16.mxu0 %v6476_v48  ;;  %v3604_v20 = vand.u32 %v6481_v34, %v7590_v53 }
 0x363   : > { %v7605_v10 = vpop.permute.xlu1 %2571  ;;  %v7607_v61 = vpop.permute.xlu0 %2566  ;;  %6243 = vmatpush3.bf16.msra.mxu1 %v6471_v14 }
 0x364   : > { %v2628_v0 = vadd.f32 %v5618_v62, %v7607_v61  ;;  %v2631_v25 = vadd.f32 %v5621_v41, %v7605_v10  ;;  %6244 = vmatprep.subr.bf16.mxu1 %v3330_v19  ;;  %v6482_v62 = vld [vmem:[%s8637_s7 + $0x6c] ss:$0 sps:$4 sm:$0x77]  }
 0x365   : > { %v3749_v41 = vand.u32 %v6482_v62, %v7590_v53 }
 0x366   : > { %v2669_v7 = vadd.f32 %v2668_v56, %v2628_v0  ;;  %v2672_v44 = vadd.f32 %v2671_v57, %v2631_v25 }
 0x367   : > { %6245 = vmatpush3.bf16.msra.mxu1 %v3330_v19 }
 0x368   : > { %v3249_v51 = vmax.f32 %v2669_v7, 0.0  ;;  %v3250_v63 = vmax.f32 %v2672_v44, 0.0  ;;  %6286 = vmatprep.subr.bf16.mxu1 %v6475_v58 }
 0x36a   : > { %v7611_v6 = vpack.c.bf16 %v3250_v63, %v3249_v51 }
 0x36c   : > { %6246 = vmatprep.mubr.msk.bf16.mxu1 %vm3301_vm7, %v7611_v6  ;;  %6270 = vmatprep.mubr.msk.bf16.mxu0 %vm3301_vm7, %v7611_v6 }
 0x36f   : > { %v2750_v4 = vpop.f32.mrb[104].mxu1 }
 0x370   : > { %v6164_v13 = vpop.f32.mrb[105].mxu1 }
 0x371   : > { %v2753_v8 = vpop.f32.mrb[106].mxu1 }
 0x372   : > { %v6165_v5 = vpop.f32.mrb[107].mxu1 }
 0x378   : > { %v5643_v17 = vpop.f32.mrb[96].mxu0 }
 0x379   : > { %v5644_v18 = vpop.f32.mrb[97].mxu0 }
 0x37a   : > { %v5645_v27 = vadd.f32 %v5644_v18, %v5643_v17  ;;  %v5646_v50 = vpop.f32.mrb[98].mxu0 }
 0x37b   : > { %v5647_v26 = vpop.f32.mrb[99].mxu0 }
 0x37c   : > { %v5648_v37 = vadd.f32 %v5647_v26, %v5646_v50  ;;  %v2710_v42 = vadd.f32 %v5645_v27, %v7607_v61 }
 0x37e   : > { %v2751_v28 = vadd.f32 %v2750_v4, %v2710_v42  ;;  %v2713_v29 = vadd.f32 %v5648_v37, %v7605_v10 }
 0x380   : > { %v2754_v35 = vadd.f32 %v2753_v8, %v2713_v29  ;;  %v3251_v47 = vmax.f32 %v2751_v28, 0.0 }
 0x382   : > { %v3252_v15 = vmax.f32 %v2754_v35, 0.0 }
 0x384   : > { %v7619_v3 = vpack.c.bf16 %v3252_v15, %v3251_v47 }
 0x386   : > { %6247 = vmatmul.mubr.msk.bf16.vlgmr.msra.gmra.mrb[132].mxu1 %vm3301_vm7, %v7619_v3  ;;  %6271 = vmatmul.mubr.msk.bf16.vlgmr.msra.gmra.mrb[124].mxu0 %vm3301_vm7, %v7619_v3 }
 0x387   : > { %6287 = vmatpush3.bf16.msra.mxu1 %v6475_v58  ;;  %6311 = vmatpush3.bf16.msra.mxu0 %v6476_v48 }
 0x388   : > { %6288 = vmatprep.subr.bf16.mxu1 %v6477_v9  ;;  %6312 = vmatprep.subr.bf16.mxu0 %v6478_v59 }
 0x38b   : > { %6289 = vmatpush3.bf16.msra.mxu1 %v6477_v9  ;;  %6313 = vmatpush3.bf16.msra.mxu0 %v6478_v59 }
 0x38c   : > { %v2832_v30 = vpop.f32.mrb[100].mxu0  ;;  %6290 = vmatprep.subr.bf16.mxu1 %v6479_v54  ;;  %6314 = vmatprep.subr.bf16.mxu0 %v6480_v55 }
 0x38d   : > { %v6176_v31 = vpop.f32.mrb[101].mxu0 }
 0x38e   : > { %v2835_v40 = vpop.f32.mrb[102].mxu0 }
 0x38f   : > { %v6177_v49 = vpop.f32.mrb[103].mxu0  ;;  %6291 = vmatpush3.bf16.msra.mxu1 %v6479_v54  ;;  %6315 = vmatpush3.bf16.msra.mxu0 %v6480_v55 }
 0x390   : > { %6292 = vmatprep.subr.bf16.mxu1 %v3604_v20  ;;  %6316 = vmatprep.subr.bf16.mxu0 %v3749_v41 }
 0x393   : > { %6293 = vmatpush3.bf16.msra.mxu1 %v3604_v20  ;;  %6317 = vmatpush3.bf16.msra.mxu0 %v3749_v41 }
 0x394   : > { %4887 = vmatprep.subr.bf16.mxu0 %v6587_v2 }
 0x395   : > { %v5670_v24 = vpop.f32.mrb[108].mxu1 }
 0x396   : > { %v5671_v16 = vpop.f32.mrb[109].mxu1 }
 0x397   : > { %v5672_v23 = vadd.f32 %v5671_v16, %v5670_v24  ;;  %v5673_v1 = vpop.f32.mrb[110].mxu1 }
 0x398   : > { %v5674_v60 = vpop.f32.mrb[111].mxu1 }
 0x399   : > { %v5675_v38 = vadd.f32 %v5674_v60, %v5673_v1  ;;  %v2792_v52 = vadd.f32 %v5672_v23, %v7607_v61 }
 0x39b   : > { %v2833_v45 = vadd.f32 %v2832_v30, %v2792_v52  ;;  %v2795_v43 = vadd.f32 %v5675_v38, %v7605_v10 }
 0x39d   : > { %v2836_v56 = vadd.f32 %v2835_v40, %v2795_v43  ;;  %v3253_v39 = vmax.f32 %v2833_v45, 0.0 }
 0x39f   : > { %v3254_v57 = vmax.f32 %v2836_v56, 0.0 }
 0x3a1   : > { %v7627_v11 = vpack.c.bf16 %v3254_v57, %v3253_v39 }
 0x3a3   : > { %6250 = vmatprep.mubr.msk.bf16.mxu1 %vm3301_vm7, %v7627_v11  ;;  %6274 = vmatprep.mubr.msk.bf16.mxu0 %vm3301_vm7, %v7627_v11 }
 0x3b0   : > { %v2914_v21 = vpop.f32.mrb[112].mxu1 }
 0x3b1   : > { %v6188_v36 = vpop.f32.mrb[113].mxu1 }
 0x3b2   : > { %v2917_v32 = vpop.f32.mrb[114].mxu1 }
 0x3b3   : > { %v6189_v46 = vpop.f32.mrb[115].mxu1 }
 0x3b8   : > { %v5697_v33 = vpop.f32.mrb[104].mxu0 }
 0x3b9   : > { %v5698_v14 = vpop.f32.mrb[105].mxu0 }
 0x3ba   : > { %v5699_v22 = vadd.f32 %v5698_v14, %v5697_v33  ;;  %v5700_v19 = vpop.f32.mrb[106].mxu0 }
 0x3bb   : > { %v5701_v0 = vpop.f32.mrb[107].mxu0 }
 0x3bc   : > { %v5702_v25 = vadd.f32 %v5701_v0, %v5700_v19  ;;  %v2874_v7 = vadd.f32 %v5699_v22, %v7607_v61 }
 0x3be   : > { %v2915_v44 = vadd.f32 %v2914_v21, %v2874_v7  ;;  %v2877_v51 = vadd.f32 %v5702_v25, %v7605_v10 }
 0x3c0   : > { %v2918_v63 = vadd.f32 %v2917_v32, %v2877_v51  ;;  %v3255_v4 = vmax.f32 %v2915_v44, 0.0 }
 0x3c2   : > { %v3256_v13 = vmax.f32 %v2918_v63, 0.0 }
 0x3c4   : > { %v7662_v53 = vpack.c.bf16 %v3256_v13, %v3255_v4 }
 0x3c6   : > { %6251 = vmatmul.mubr.msk.bf16.gmra.mrb[136].mxu1 %vm3301_vm7, %v7662_v53  ;;  %6275 = vmatmul.mubr.msk.bf16.gmra.mrb[128].mxu0 %vm3301_vm7, %v7662_v53 }
 0x3cb   : > { %v2996_v8 = vpop.f32.mrb[108].mxu0 }
 0x3cc   : > { %v6200_v5 = vpop.f32.mrb[109].mxu0 }
 0x3cd   : > { %v2999_v17 = vpop.f32.mrb[110].mxu0 }
 0x3ce   : > { %v6201_v18 = vpop.f32.mrb[111].mxu0 }
 0x3d5   : > { %v5724_v27 = vpop.f32.mrb[116].mxu1 }
 0x3d6   : > { %v5725_v50 = vpop.f32.mrb[117].mxu1 }
 0x3d7   : > { %v5726_v26 = vadd.f32 %v5725_v50, %v5724_v27  ;;  %v5727_v37 = vpop.f32.mrb[118].mxu1 }
 0x3d8   : > { %v5728_v42 = vpop.f32.mrb[119].mxu1 }
 0x3d9   : > { %v5729_v28 = vadd.f32 %v5728_v42, %v5727_v37  ;;  %v2956_v29 = vadd.f32 %v5726_v26, %v7607_v61 }
 0x3db   : > { %v2997_v35 = vadd.f32 %v2996_v8, %v2956_v29  ;;  %v2959_v47 = vadd.f32 %v5729_v28, %v7605_v10 }
 0x3dd   : > { %v3000_v15 = vadd.f32 %v2999_v17, %v2959_v47  ;;  %v3257_v30 = vmax.f32 %v2997_v35, 0.0 }
 0x3df   : > { %v3258_v31 = vmax.f32 %v3000_v15, 0.0 }
 0x3e1   : > { %v7670_v40 = vpack.c.bf16 %v3258_v31, %v3257_v30 }
 0x3e3   : > { %6254 = vmatprep.mubr.msk.bf16.mxu1 %vm3301_vm7, %v7670_v40  ;;  %6278 = vmatprep.mubr.msk.bf16.mxu0 %vm3301_vm7, %v7670_v40 }
 0x3f0   : > { %v3078_v49 = vpop.f32.mrb[120].mxu1 }
 0x3f1   : > { %v6212_v24 = vpop.f32.mrb[121].mxu1 }
 0x3f2   : > { %v3081_v16 = vpop.f32.mrb[122].mxu1 }
 0x3f3   : > { %v6213_v23 = vpop.f32.mrb[123].mxu1 }
 0x3f4   : > { %v5751_v1 = vpop.f32.mrb[112].mxu0 }
 0x3f5   : > { %v5752_v60 = vpop.f32.mrb[113].mxu0 }
 0x3f6   : > { %v5753_v38 = vadd.f32 %v5752_v60, %v5751_v1  ;;  %v5754_v52 = vpop.f32.mrb[114].mxu0 }
 0x3f7   : > { %v5755_v45 = vpop.f32.mrb[115].mxu0 }
 0x3f8   : > { %v5756_v43 = vadd.f32 %v5755_v45, %v5754_v52  ;;  %v3038_v56 = vadd.f32 %v5753_v38, %v7607_v61 }
 0x3fa   : > { %v3079_v39 = vadd.f32 %v3078_v49, %v3038_v56  ;;  %v3041_v57 = vadd.f32 %v5756_v43, %v7605_v10 }
 0x3fc   : > { %v3082_v58 = vadd.f32 %v3081_v16, %v3041_v57  ;;  %v3259_v48 = vmax.f32 %v3079_v39, 0.0 }
 0x3fe   : > { %v3260_v21 = vmax.f32 %v3082_v58, 0.0 }
 0x400   : > { %v3270_v9 = vpack.c.bf16 %v3260_v21, %v3259_v48 }
 0x402   : > { %6255 = vmatmul.mubr.msk.bf16.gmra.mrb[140].mxu1 %vm3301_vm7, %v3270_v9  ;;  %6279 = vmatmul.mubr.msk.bf16.gmra.mrb[132].mxu0 %vm3301_vm7, %v3270_v9 }
 0x404   : > { %v3160_v59 = vpop.f32.mrb[116].mxu0 }
 0x405   : > { %v6224_v36 = vpop.f32.mrb[117].mxu0 }
 0x406   : > { %v3163_v32 = vpop.f32.mrb[118].mxu0 }
 0x407   : > { %v6225_v46 = vpop.f32.mrb[119].mxu0 }
 0x416   : > { %v5778_v54 = vpop.f32.mrb[124].mxu1 }
 0x417   : > { %v5779_v55 = vpop.f32.mrb[125].mxu1 }
 0x418   : > { %v5780_v34 = vadd.f32 %v5779_v55, %v5778_v54  ;;  %v5781_v62 = vpop.f32.mrb[126].mxu1 }
 0x419   : > { %v5782_v33 = vpop.f32.mrb[127].mxu1 }
 0x41a   : > { %v5783_v20 = vadd.f32 %v5782_v33, %v5781_v62  ;;  %v3120_v41 = vadd.f32 %v5780_v34, %v7607_v61 }
 0x41c   : > { %v3161_v14 = vadd.f32 %v3160_v59, %v3120_v41  ;;  %v3123_v22 = vadd.f32 %v5783_v20, %v7605_v10 }
 0x41e   : > { %v3164_v19 = vadd.f32 %v3163_v32, %v3123_v22  ;;  %v3261_v0 = vmax.f32 %v3161_v14, 0.0 }
 0x420   : > { %v3262_v25 = vmax.f32 %v3164_v19, 0.0 }
 0x422   : > { %v3271_v7 = vpack.c.bf16 %v3262_v25, %v3261_v0 }
 0x424   : > { %6258 = vmatprep.mubr.msk.bf16.mxu1 %vm3301_vm7, %v3271_v7  ;;  %6282 = vmatprep.mubr.msk.bf16.mxu0 %vm3301_vm7, %v3271_v7 }
 0x426   : > { %v5805_v44 = vpop.f32.mrb[120].mxu0 }
 0x427   : > { %v5806_v51 = vpop.f32.mrb[121].mxu0 }
 0x428   : > { %v5807_v63 = vadd.f32 %v5806_v51, %v5805_v44  ;;  %v5808_v4 = vpop.f32.mrb[122].mxu0 }
 0x429   : > { %v5809_v13 = vpop.f32.mrb[123].mxu0 }
 0x42a   : > { %v5810_v8 = vadd.f32 %v5809_v13, %v5808_v4  ;;  %v3202_v5 = vadd.f32 %v5807_v63, %v7607_v61 }
 0x42c   : > { %v3205_v50 = vadd.f32 %v5810_v8, %v7605_v10 }
 0x42d   : > { %v3242_v17 = vpop.f32.mrb[128].mxu1 }
 0x42e   : > { %v3243_v18 = vadd.f32 %v3242_v17, %v3202_v5  ;;  %v6236_v27 = vpop.f32.mrb[129].mxu1 }
 0x42f   : > { %v3245_v26 = vpop.f32.mrb[130].mxu1 }
 0x430   : > { %v3246_v37 = vadd.f32 %v3245_v26, %v3205_v50  ;;  %v6237_v42 = vpop.f32.mrb[131].mxu1  ;;  %v3263_v28 = vmax.f32 %v3243_v18, 0.0 }
 0x432   : > { %v3264_v29 = vmax.f32 %v3246_v37, 0.0 }
 0x434   : > { %v3272_v35 = vpack.c.bf16 %v3264_v29, %v3263_v28 }
 0x436   : > { %6259 = vmatmul.mubr.msk.bf16.gmra.mrb[144].mxu1 %vm3301_vm7, %v3272_v35  ;;  %6283 = vmatmul.mubr.msk.bf16.gmra.mrb[136].mxu0 %vm3301_vm7, %v3272_v35 }
 0x437   : > { %6294 = vmatprep.mubr.msk.bf16.mxu1 %vm3301_vm7, %v7611_v6  ;;  %6318 = vmatprep.mubr.msk.bf16.mxu0 %vm3301_vm7, %v7611_v6 }
 0x43e   : > { %6295 = vmatmul.mubr.msk.bf16.vlgmr.msra.gmra.mrb[148].mxu1 %vm3301_vm7, %v7619_v3  ;;  %6319 = vmatmul.mubr.msk.bf16.vlgmr.msra.gmra.mrb[140].mxu0 %vm3301_vm7, %v7619_v3 }
 0x43f   : > { %6298 = vmatprep.mubr.msk.bf16.mxu1 %vm3301_vm7, %v7627_v11  ;;  %6322 = vmatprep.mubr.msk.bf16.mxu0 %vm3301_vm7, %v7627_v11 }
 0x446   : > { %6299 = vmatmul.mubr.msk.bf16.gmra.mrb[152].mxu1 %vm3301_vm7, %v7662_v53  ;;  %6323 = vmatmul.mubr.msk.bf16.gmra.mrb[144].mxu0 %vm3301_vm7, %v7662_v53 }
 0x447   : > { %6302 = vmatprep.mubr.msk.bf16.mxu1 %vm3301_vm7, %v7670_v40  ;;  %6326 = vmatprep.mubr.msk.bf16.mxu0 %vm3301_vm7, %v7670_v40 }
 0x44e   : > { %6303 = vmatmul.mubr.msk.bf16.gmra.mrb[156].mxu1 %vm3301_vm7, %v3270_v9  ;;  %6327 = vmatmul.mubr.msk.bf16.gmra.mrb[148].mxu0 %vm3301_vm7, %v3270_v9 }
 0x44f   : > { %6306 = vmatprep.mubr.msk.bf16.mxu1 %vm3301_vm7, %v3271_v7  ;;  %6330 = vmatprep.mubr.msk.bf16.mxu0 %vm3301_vm7, %v3271_v7 }
 0x456   : > { %6307 = vmatmul.mubr.msk.bf16.gmra.mrb[160].mxu1 %vm3301_vm7, %v3272_v35  ;;  %6331 = vmatmul.mubr.msk.bf16.gmra.mrb[152].mxu0 %vm3301_vm7, %v3272_v35  ;;  %vm8611_vm7 = vcmask 818176  }
 0x459   : > { %v6248_v10 = vpop.f32.mrb[132].mxu1  ;;  %v6272_v61 = vpop.f32.mrb[124].mxu0 }
 0x45a   : > { %v3560_v6 = vmax.f32 %v6248_v10, %v6272_v61  ;;  %v3366_v3 = vpop.f32.mrb[133].mxu1  ;;  %v3495_v11 = vpop.f32.mrb[125].mxu0 }
 0x45b   : > { %v3558_v53 = vmax.f32 %v3366_v3, %v3495_v11  ;;  %v6249_v47 = vpop.f32.mrb[134].mxu1  ;;  %v6273_v15 = vpop.f32.mrb[126].mxu0 }
 0x45c   : > { %v3561_v30 = vmax.f32 %v6249_v47, %v6273_v15  ;;  %v3369_v31 = vpop.f32.mrb[135].mxu1  ;;  %v3498_v40 = vpop.f32.mrb[127].mxu0 }
 0x45d   : > { %v3559_v49 = vmax.f32 %v3369_v31, %v3498_v40 }
 0x499   : > { %v6252_v24 = vpop.f32.mrb[136].mxu1  ;;  %v6276_v16 = vpop.f32.mrb[128].mxu0 }
 0x49a   : > { %v3564_v23 = vmax.f32 %v6252_v24, %v6276_v16  ;;  %v3382_v1 = vpop.f32.mrb[137].mxu1  ;;  %v3511_v60 = vpop.f32.mrb[129].mxu0 }
 0x49b   : > { %v3562_v38 = vmax.f32 %v3382_v1, %v3511_v60  ;;  %v6253_v52 = vpop.f32.mrb[138].mxu1  ;;  %v6277_v45 = vpop.f32.mrb[130].mxu0 }
 0x49c   : > { %v3565_v43 = vmax.f32 %v6253_v52, %v6277_v45  ;;  %v7714_v56 = vpop.f32.mrb[139].mxu1  ;;  %v7716_v39 = vpop.f32.mrb[131].mxu0 }
 0x49d   : > { %v3563_v57 = vmax.f32 %v7714_v56, %v7716_v39 }
 0x4d5   : > { %v7720_v58 = vpop.f32.mrb[140].mxu1  ;;  %v7722_v48 = vpop.f32.mrb[132].mxu0 }
 0x4d6   : > { %v3568_v21 = vmax.f32 %v7720_v58, %v7722_v48  ;;  %v7726_v9 = vpop.f32.mrb[141].mxu1  ;;  %v7728_v59 = vpop.f32.mrb[133].mxu0 }
 0x4d7   : > { %v3566_v36 = vmax.f32 %v7726_v9, %v7728_v59  ;;  %v7732_v32 = vpop.f32.mrb[142].mxu1  ;;  %v7734_v46 = vpop.f32.mrb[134].mxu0 }
 0x4d8   : > { %v3569_v54 = vmax.f32 %v7732_v32, %v7734_v46  ;;  %v7738_v55 = vpop.f32.mrb[143].mxu1  ;;  %v7740_v34 = vpop.f32.mrb[135].mxu0 }
 0x4d9   : > { %v3567_v62 = vmax.f32 %v7738_v55, %v7740_v34 }
 0x509   : > { %v7744_v33 = vpop.f32.mrb[144].mxu1  ;;  %v7746_v20 = vpop.f32.mrb[136].mxu0 }
 0x50a   : > { %v3572_v41 = vmax.f32 %v7744_v33, %v7746_v20  ;;  %v7750_v14 = vpop.f32.mrb[145].mxu1  ;;  %v7752_v22 = vpop.f32.mrb[137].mxu0 }
 0x50b   : > { %v3570_v19 = vmax.f32 %v7750_v14, %v7752_v22  ;;  %v7756_v0 = vpop.f32.mrb[146].mxu1  ;;  %v7758_v25 = vpop.f32.mrb[138].mxu0 }
 0x50c   : > { %v3573_v7 = vmax.f32 %v7756_v0, %v7758_v25  ;;  %v7762_v44 = vpop.f32.mrb[147].mxu1  ;;  %v7764_v51 = vpop.f32.mrb[139].mxu0 }
 0x50d   : > { %v3571_v63 = vmax.f32 %v7762_v44, %v7764_v51 }
 0x511   : > { %v6296_v4 = vpop.f32.mrb[148].mxu1  ;;  %v6320_v13 = vpop.f32.mrb[140].mxu0 }
 0x512   : > { %v3705_v8 = vmax.f32 %v3560_v6, %v6296_v4  ;;  %v3640_v5 = vpop.f32.mrb[149].mxu1  ;;  %v3785_v17 = vpop.f32.mrb[141].mxu0 }
 0x513   : > { %v3703_v18 = vmax.f32 %v3558_v53, %v3640_v5  ;;  %v6297_v27 = vpop.f32.mrb[150].mxu1  ;;  %v6321_v50 = vpop.f32.mrb[142].mxu0 }
 0x514   : > { %v3850_v26 = vmax.f32 %v3705_v8, %v6320_v13  ;;  %v3706_v37 = vmax.f32 %v3561_v30, %v6297_v27  ;;  %v3643_v42 = vpop.f32.mrb[151].mxu1  ;;  %v3788_v28 = vpop.f32.mrb[143].mxu0 }
 0x515   : > { %v3848_v29 = vmax.f32 %v3703_v18, %v3785_v17  ;;  %v3704_v35 = vmax.f32 %v3559_v49, %v3643_v42 }
 0x516   : > { %v3851_v10 = vmax.f32 %v3706_v37, %v6321_v50 }
 0x517   : > { %v3849_v61 = vmax.f32 %v3704_v35, %v3788_v28 }
 0x518   : > { %v7768_v3 = vpack.c.bf16 %v3851_v10, %v3850_v26 }
 0x519   : > { %v7770_v11 = vpack.c.bf16 %v3849_v61, %v3848_v29  ;;  %v6300_v47 = vpop.f32.mrb[152].mxu1  ;;  %v6324_v15 = vpop.f32.mrb[144].mxu0 }
 0x51a   : > { %v3709_v6 = vmax.f32 %v3564_v23, %v6300_v47  ;;  %v3656_v31 = vpop.f32.mrb[153].mxu1  ;;  %v3801_v40 = vpop.f32.mrb[145].mxu0  ;;  %v4017_v53 = vrot.slane %v7768_v3, 3  ;;  %v7774_v24 = vshrl.u32 %v7768_v3, 16  ;;  %v3921_v4 = vrot.slane %v7768_v3, 1 }
 0x51b   : > { %v3707_v30 = vmax.f32 %v3562_v38, %v3656_v31  ;;  %v6301_v16 = vpop.f32.mrb[154].mxu1  ;;  %v6325_v1 = vpop.f32.mrb[146].mxu0  ;;  %v3969_v38 = vrot.slane %v7768_v3, 2  ;;  %v4065_v50 = vrot.slane %v7768_v3, 4  ;;  %v4161_v26 = vrot.slane %v7768_v3, 6 }
 0x51c   : > { %v3854_v49 = vmax.f32 %v3709_v6, %v6324_v15  ;;  %v3710_v60 = vmax.f32 %v3565_v43, %v6301_v16  ;;  %v3804_v52 = vpop.f32.mrb[147].mxu0  ;;  %4026 = vrot.lane.b32.xlu1 %v4017_v53, %s8596_s25  ;;  %3898 = vrot.lane.b32.xlu0 %v7774_v24, %s8598_s20  ;;  %v3659_v23 = vpop.f32.mrb[155].mxu1  ;;  %v4113_v59 = vrot.slane %v7768_v3, 5  ;;  %v4209_v15 = vrot.slane %v7768_v3, 7 }
 0x51d   : > { %v3852_v45 = vmax.f32 %v3707_v30, %v3801_v40  ;;  %v3708_v56 = vmax.f32 %v3563_v57, %v3659_v23  ;;  %v7816_v6 = vshrl.u32 %v7770_v11, 16  ;;  %v4208_v44 = vrot.slane %v7770_v11, 7 }
 0x51e   : > { %v3855_v39 = vmax.f32 %v3710_v60, %v6325_v1  ;;  %v4064_v1 = vrot.slane %v7770_v11, 4  ;;  %v4112_v60 = vrot.slane %v7770_v11, 5  ;;  %v4160_v51 = vrot.slane %v7770_v11, 6 }
 0x51f   : > { %v3853_v13 = vmax.f32 %v3708_v56, %v3804_v52  ;;  %v3993_v52 = vrot.slane %v7774_v24, 2  ;;  %v3945_v23 = vrot.slane %v7774_v24, 1  ;;  %v4089_v56 = vrot.slane %v7774_v24, 4 }
 0x520   : > { %v7781_v8 = vpack.c.bf16 %v3855_v39, %v3854_v49  ;;  %3930 = vrot.lane.b32.xlu1 %v3921_v4, %s8582_s22  ;;  %3978 = vrot.lane.b32.xlu0 %v3969_v38, %s8576_s18  ;;  %v3968_v49 = vrot.slane %v7770_v11, 2  ;;  %v4185_v39 = vrot.slane %v7774_v24, 6  ;;  %v4233_v4 = vrot.slane %v7774_v24, 7 }
 0x521   : > { %v7785_v43 = vpack.c.bf16 %v3853_v13, %v3852_v45  ;;  %v6304_v5 = vpop.f32.mrb[156].mxu1  ;;  %v6328_v17 = vpop.f32.mrb[148].mxu0  ;;  %v4137_v45 = vrot.slane %v7774_v24, 5  ;;  %v3992_v38 = vrot.slane %v7816_v6, 2  ;;  %v4088_v13 = vrot.slane %v7816_v6, 4 }
 0x522   : > { %v3713_v57 = vmax.f32 %v3568_v21, %v6304_v5  ;;  %v3672_v18 = vpop.f32.mrb[157].mxu1  ;;  %v3817_v27 = vpop.f32.mrb[149].mxu0  ;;  %v4040_v5 = vrot.slane %v7816_v6, 3 }
 0x523   : > { %v3711_v37 = vmax.f32 %v3566_v36, %v3672_v18  ;;  %v6305_v42 = vpop.f32.mrb[158].mxu1  ;;  %v6329_v28 = vpop.f32.mrb[150].mxu0  ;;  %v4016_v36 = vrot.slane %v7770_v11, 3  ;;  %v4019_v18 = vrot.slane %v7781_v8, 3 }
 0x524   : > { %v3858_v29 = vmax.f32 %v3713_v57, %v6328_v17  ;;  %v3714_v35 = vmax.f32 %v3569_v54, %v6305_v42  ;;  %v3820_v10 = vpop.f32.mrb[151].mxu0  ;;  %4074 = vrot.lane.b32.xlu1 %v4065_v50, %s8572_s21  ;;  %4170 = vrot.lane.b32.xlu0 %v4161_v26, %s8578_s15  ;;  %v3675_v58 = vpop.f32.mrb[159].mxu1  ;;  %v4136_v17 = vrot.slane %v7816_v6, 5  ;;  %v3944_v57 = vrot.slane %v7816_v6, 1 }
 0x525   : > { %v3856_v48 = vmax.f32 %v3711_v37, %v3817_v27  ;;  %v3712_v21 = vmax.f32 %v3567_v62, %v3675_v58  ;;  %v4232_v27 = vrot.slane %v7816_v6, 7  ;;  %v3882_v50 = vshrl.u32 %v7781_v8, 16 }
 0x526   : > { %v3859_v9 = vmax.f32 %v3714_v35, %v6329_v28  ;;  %v3923_v26 = vrot.slane %v7781_v8, 1  ;;  %v4067_v37 = vrot.slane %v7781_v8, 4  ;;  %v3971_v42 = vrot.slane %v7781_v8, 2 }
 0x527   : > { %v3857_v32 = vmax.f32 %v3712_v21, %v3820_v10  ;;  %v4115_v28 = vrot.slane %v7781_v8, 5  ;;  %v4163_v35 = vrot.slane %v7781_v8, 6  ;;  %v4114_v10 = vrot.slane %v7785_v43, 5 }
 0x528   : > { %v7805_v46 = vpack.c.bf16 %v3859_v9, %v3858_v29  ;;  %4122 = vrot.lane.b32.xlu1 %v4113_v59, %s8574_s28  ;;  %4024 = vrot.lane.b32.xlu0 %v4016_v36, %s8596_s25  ;;  %v4211_v29 = vrot.slane %v7781_v8, 7  ;;  %v4018_v58 = vrot.slane %v7785_v43, 3  ;;  %v3879_v21 = vshrl.u32 %v7785_v43, 16 }
 0x529   : > { %v7809_v54 = vpack.c.bf16 %v3857_v32, %v3856_v48  ;;  %v6308_v61 = vpop.f32.mrb[160].mxu1  ;;  %v6332_v47 = vpop.f32.mrb[152].mxu0  ;;  %v4162_v48 = vrot.slane %v7785_v43, 6  ;;  %v3995_v9 = vrot.slane %v3882_v50, 2  ;;  %v3922_v59 = vrot.slane %v7785_v43, 1 }
 0x52a   : > { %v3717_v55 = vmax.f32 %v3572_v41, %v6308_v61  ;;  %v3688_v34 = vpop.f32.mrb[161].mxu1  ;;  %v3833_v62 = vpop.f32.mrb[153].mxu0  ;;  %v4043_v36 = vrot.slane %v3882_v50, 3  ;;  %v4066_v32 = vrot.slane %v7785_v43, 4  ;;  %v3947_v61 = vrot.slane %v3882_v50, 1 }
 0x52b   : > { %v3715_v31 = vmax.f32 %v3570_v19, %v3688_v34  ;;  %v6309_v40 = vpop.f32.mrb[162].mxu1  ;;  %v6333_v53 = vpop.f32.mrb[154].mxu0  ;;  %v3920_v19 = vrot.slane %v7770_v11, 1  ;;  %v4210_v34 = vrot.slane %v7785_v43, 7 }
 0x52c   : > { %v3862_v30 = vmax.f32 %v3717_v55, %v6332_v47  ;;  %v3718_v16 = vmax.f32 %v3573_v7, %v6309_v40  ;;  %v3836_v33 = vpop.f32.mrb[155].mxu0  ;;  %4218 = vrot.lane.b32.xlu1 %v4209_v15, %s8580_s26  ;;  %3896 = vrot.lane.b32.xlu0 %v7816_v6, %s8598_s20  ;;  %v3691_v20 = vpop.f32.mrb[163].mxu1  ;;  %v3970_v47 = vrot.slane %v7785_v43, 2  ;;  %v4187_v55 = vrot.slane %v3882_v50, 6 }
 0x52d   : > { %v3860_v41 = vmax.f32 %v3715_v31, %v3833_v62  ;;  %v3716_v14 = vmax.f32 %v3571_v63, %v3691_v20  ;;  %v4041_v63 = vrot.slane %v7774_v24, 3  ;;  %v4184_v24 = vrot.slane %v7816_v6, 6 }
 0x52e   : > { %v3863_v22 = vmax.f32 %v3718_v16, %v6333_v53  ;;  %v4235_v62 = vrot.slane %v3882_v50, 7  ;;  %v4091_v15 = vrot.slane %v3882_v50, 4  ;;  %v4139_v6 = vrot.slane %v3882_v50, 5 }
 0x52f   : > { %v3861_v0 = vmax.f32 %v3716_v14, %v3836_v33  ;;  %v3994_v31 = vrot.slane %v3879_v21, 2  ;;  %v4042_v40 = vrot.slane %v3879_v21, 3  ;;  %v3946_v53 = vrot.slane %v3879_v21, 1 }
 0x530   : > { %v7832_v25 = vpack.c.bf16 %v3863_v22, %v3862_v30  ;;  %3928 = vrot.lane.b32.xlu1 %v3920_v19, %s8582_s22  ;;  %4072 = vrot.lane.b32.xlu0 %v4064_v1, %s8572_s21  ;;  %s8594_s21 = smov 47   ;;  %s8592_s22 = smov 119   ;;  %v4090_v30 = vrot.slane %v3879_v21, 4  ;;  %v4138_v16 = vrot.slane %v3879_v21, 5  ;;  %v4234_v14 = vrot.slane %v3879_v21, 7 }
 0x531   : > { %v7836_v7 = vpack.c.bf16 %v3861_v0, %v3860_v41  ;;  %v4186_v41 = vrot.slane %v3879_v21, 6  ;;  %v4021_v1 = vrot.slane %v7805_v46, 3  ;;  %v3925_v0 = vrot.slane %v7805_v46, 1 }
 0x534   : > { %3976 = vrot.lane.b32.xlu1 %v3968_v49, %s8576_s18  ;;  %4120 = vrot.lane.b32.xlu0 %v4112_v60, %s8574_s28  ;;  %s8590_s28 = smov 75   ;;  %s8584_s18 = smov 19  }
 0x538   : > { %4216 = vrot.lane.b32.xlu1 %v4208_v44, %s8580_s26  ;;  %4168 = vrot.lane.b32.xlu0 %v4160_v51, %s8578_s15  ;;  %s8586_s15 = smov 97   ;;  %s8588_s26 = smov 69   ;;  %v3973_v44 = vrot.slane %v7805_v46, 2  ;;  %v7938_v51 = vshrl.u32 %v7805_v46, 16 }
 0x53c   : > { %4050 = vrot.lane.b32.xlu1 %v4041_v63, %s8594_s21  ;;  %4002 = vrot.lane.b32.xlu0 %v3993_v52, %s8600_s27 }
 0x540   : > { %3954 = vrot.lane.b32.xlu1 %v3945_v23, %s8590_s28  ;;  %4146 = vrot.lane.b32.xlu0 %v4137_v45, %s8584_s18  ;;  %v4165_v23 = vrot.slane %v7805_v46, 6  ;;  %v4069_v45 = vrot.slane %v7805_v46, 4 }
 0x544   : > { %4098 = vrot.lane.b32.xlu1 %v4089_v56, %s8586_s15  ;;  %4194 = vrot.lane.b32.xlu0 %v4185_v39, %s8588_s26 }
 0x548   : > { %4242 = vrot.lane.b32.xlu1 %v4233_v4, %s8592_s22  ;;  %4000 = vrot.lane.b32.xlu0 %v3992_v38, %s8600_s27  ;;  %v4117_v4 = vrot.slane %v7805_v46, 5  ;;  %v4020_v38 = vrot.slane %v7809_v54, 3 }
 0x54c   : > { %4096 = vrot.lane.b32.xlu1 %v4088_v13, %s8586_s15  ;;  %4048 = vrot.lane.b32.xlu0 %v4040_v5, %s8594_s21  ;;  %s8639_s15 = smov 72   ;;  %s8643_s21 = smov 44  }
 0x550   : > { %4144 = vrot.lane.b32.xlu1 %v4136_v17, %s8584_s18  ;;  %3952 = vrot.lane.b32.xlu0 %v3944_v57, %s8590_s28  ;;  %s8638_s18 = smov 50   ;;  %s8641_s28 = smov 122   ;;  %v4213_v17 = vrot.slane %v7805_v46, 7  ;;  %v3924_v57 = vrot.slane %v7809_v54, 1 }
 0x554   : > { %4192 = vrot.lane.b32.xlu0 %v4184_v24, %s8588_s26  ;;  %4030 = vrot.lane.b32.xlu1 %v4019_v18, %s8596_s25  ;;  %s8640_s26 = smov 100  }
 0x558   : > { %4240 = vrot.lane.b32.xlu0 %v4232_v27, %s8592_s22  ;;  %3902 = vrot.lane.b32.xlu1 %v3882_v50, %s8598_s20  ;;  %s8642_s22 = smov 94   ;;  %v4164_v27 = vrot.slane %v7809_v54, 6  ;;  %v7969_v50 = vshrl.u32 %v7809_v54, 16 }
 0x55c   : > { %3934 = vrot.lane.b32.xlu0 %v3923_v26, %s8638_s18  ;;  %4078 = vrot.lane.b32.xlu1 %v4067_v37, %s8639_s15 }
 0x560   : > { %3982 = vrot.lane.b32.xlu0 %v3971_v42, %s8640_s26  ;;  %4126 = vrot.lane.b32.xlu1 %v4115_v28, %s8641_s28  ;;  %v4212_v42 = vrot.slane %v7809_v54, 7  ;;  %v4068_v28 = vrot.slane %v7809_v54, 4 }
 0x564   : > { %4222 = vrot.lane.b32.xlu0 %v4211_v29, %s8642_s22  ;;  %4174 = vrot.lane.b32.xlu1 %v4163_v35, %s8643_s21 }
 0x568   : > { %4124 = vrot.lane.b32.xlu1 %v4114_v10, %s8641_s28  ;;  %4028 = vrot.lane.b32.xlu0 %v4018_v58, %s8596_s25  ;;  %s8645_s25 = smov 75   ;;  %v3997_v10 = vrot.slane %v7938_v51, 2  ;;  %v3972_v58 = vrot.slane %v7809_v54, 2 }
 0x56c   : > { %4172 = vrot.lane.b32.xlu1 %v4162_v48, %s8643_s21  ;;  %3900 = vrot.lane.b32.xlu0 %v3879_v21, %s8598_s20  ;;  %s8646_s20 = smov 69  }
 0x570   : > { %4006 = vrot.lane.b32.xlu1 %v3995_v9, %s8600_s27  ;;  %3932 = vrot.lane.b32.xlu0 %v3922_v59, %s8638_s18  ;;  %s8647_s27 = smov 119   ;;  %v4045_v9 = vrot.slane %v7938_v51, 3  ;;  %v4116_v59 = vrot.slane %v7809_v54, 5 }
 0x574   : > { %4054 = vrot.lane.b32.xlu1 %v4043_v36, %s8644_s0  ;;  %4076 = vrot.lane.b32.xlu0 %v4066_v32, %s8639_s15 }
 0x578   : > { %3958 = vrot.lane.b32.xlu1 %v3947_v61, %s8645_s25  ;;  %3980 = vrot.lane.b32.xlu0 %v3970_v47, %s8640_s26  ;;  %v3949_v61 = vrot.slane %v7938_v51, 1  ;;  %v4141_v47 = vrot.slane %v7938_v51, 5 }
 0x57c   : > { %4198 = vrot.lane.b32.xlu1 %v4187_v55, %s8646_s20  ;;  %4220 = vrot.lane.b32.xlu0 %v4210_v34, %s8642_s22 }
 0x580   : > { %4246 = vrot.lane.b32.xlu1 %v4235_v62, %s8647_s27  ;;  %4102 = vrot.lane.b32.xlu0 %v4091_v15, %s8648_s1  ;;  %v4093_v62 = vrot.slane %v7938_v51, 4  ;;  %v4189_v15 = vrot.slane %v7938_v51, 6 }
 0x584   : > { %4150 = vrot.lane.b32.xlu0 %v4139_v6, %s8649_s2  ;;  %4004 = vrot.lane.b32.xlu1 %v3994_v31, %s8650_s3 }
 0x588   : > { %4052 = vrot.lane.b32.xlu0 %v4042_v40, %s8644_s0  ;;  %3956 = vrot.lane.b32.xlu1 %v3946_v53, %s8645_s25 }
 0x58c   : > { %4100 = vrot.lane.b32.xlu0 %v4090_v30, %s8648_s1  ;;  %4148 = vrot.lane.b32.xlu1 %v4138_v16, %s8649_s2  ;;  %v4237_v30 = vrot.slane %v7938_v51, 7  ;;  %v4044_v16 = vrot.slane %v7969_v50, 3 }
 0x58e   : > { %v7918_v33 = vpop.permute.xlu1 %4026  ;;  %v7920_v20 = vpop.permute.xlu0 %3898 }
 0x590   : > { %4196 = vrot.lane.b32.xlu0 %v4186_v41, %s8646_s20  ;;  %4244 = vrot.lane.b32.xlu1 %v4234_v14, %s8647_s27 }
 0x592   : > { %v7924_v22 = vpop.permute.xlu1 %3930  ;;  %v7926_v19 = vpop.permute.xlu0 %3978 }
 0x594   : > { %4034 = vrot.lane.b32.xlu0 %v4021_v1, %s8651_s4  ;;  %3938 = vrot.lane.b32.xlu1 %v3925_v0, %s8638_s18 }
 0x596   : > { %v7932_v49 = vpop.permute.xlu1 %4074  ;;  %v7934_v60 = vpop.permute.xlu0 %4170 }
 0x598   : > { %3986 = vrot.lane.b32.xlu1 %v3973_v44, %s8640_s26  ;;  %3906 = vrot.lane.b32.xlu0 %v7938_v51, %s8652_s5 }
 0x59a   : > { %v7943_v63 = vpop.permute.xlu1 %4122  ;;  %v4025_v52 = vpop.permute.xlu0 %4024 }
 0x59c   : > { %4178 = vrot.lane.b32.xlu1 %v4165_v23, %s8643_s21  ;;  %4082 = vrot.lane.b32.xlu0 %v4069_v45, %s8639_s15  ;;  %v4092_v45 = vrot.slane %v7969_v50, 4 }
 0x59e   : > { %v7949_v56 = vpop.permute.xlu1 %4218  ;;  %v7951_v39 = vpop.permute.xlu0 %3896 }
 0x59f   : > { %v4258_v0 = vsel %vm4256_vm13, %v7770_v11, %v7951_v39 }
 0x5a0   : > { %4130 = vrot.lane.b32.xlu0 %v4117_v4, %s8641_s28  ;;  %4032 = vrot.lane.b32.xlu1 %v4020_v38, %s8651_s4  ;;  %v3996_v4 = vrot.slane %v7969_v50, 2 }
 0x5a2   : > { %v7957_v13 = vpop.permute.xlu1 %3928  ;;  %v4073_v5 = vpop.permute.xlu0 %4072 }
 0x5a4   : > { %4226 = vrot.lane.b32.xlu0 %v4213_v17, %s8642_s22  ;;  %3936 = vrot.lane.b32.xlu1 %v3924_v57, %s8638_s18 }
 0x5a6   : > { %v7963_v24 = vpop.permute.xlu1 %3976  ;;  %v7965_v18 = vpop.permute.xlu0 %4120 }
 0x5a8   : > { %4176 = vrot.lane.b32.xlu1 %v4164_v27, %s8643_s21  ;;  %3904 = vrot.lane.b32.xlu0 %v7969_v50, %s8652_s5 }
 0x5aa   : > { %v7974_v26 = vpop.permute.xlu1 %4216  ;;  %v7976_v37 = vpop.permute.xlu0 %4168 }
 0x5ac   : > { %4224 = vrot.lane.b32.xlu1 %v4212_v42, %s8642_s22  ;;  %4080 = vrot.lane.b32.xlu0 %v4068_v28, %s8639_s15  ;;  %v3948_v28 = vrot.slane %v7969_v50, 1 }
 0x5ae   : > { %v7982_v29 = vpop.permute.xlu1 %4050  ;;  %v7984_v35 = vpop.permute.xlu0 %4002 }
 0x5b0   : > { %4010 = vrot.lane.b32.xlu1 %v3997_v10, %s8650_s3  ;;  %3984 = vrot.lane.b32.xlu0 %v3972_v58, %s8640_s26 }
 0x5b2   : > { %v7990_v48 = vpop.permute.xlu1 %3954  ;;  %v4147_v21 = vpop.permute.xlu0 %4146 }
 0x5b3   : > { %v4430_v6 = vsel %vm4426_vm8, %v7943_v63, %v4147_v21 }
 0x5b4   : > { %4058 = vrot.lane.b32.xlu1 %v4045_v9, %s8644_s0  ;;  %4128 = vrot.lane.b32.xlu0 %v4116_v59, %s8641_s28  ;;  %v4447_v14 = vsel %vm4443_vm11, %v4430_v6, %v7934_v60  ;;  %v4236_v59 = vrot.slane %v7969_v50, 7 }
 0x5b6   : > { %v7996_v36 = vpop.permute.xlu1 %4098  ;;  %v4195_v32 = vpop.permute.xlu0 %4194 }
 0x5b7   : > { %v4464_v44 = vsel %vm4460_vm12, %v4447_v14, %v4195_v32  ;;  %v4188_v32 = vrot.slane %v7969_v50, 6  ;;  %v3927_v14 = vrot.slane %v7832_v25, 1 }
 0x5b8   : > { %3962 = vrot.lane.b32.xlu1 %v3949_v61, %s8645_s25  ;;  %4154 = vrot.lane.b32.xlu0 %v4141_v47, %s8649_s2  ;;  %v4481_v38 = vsel %vm4477_vm5, %v4464_v44, %v7949_v56  ;;  %v4140_v56 = vrot.slane %v7969_v50, 5  ;;  %v3975_v44 = vrot.slane %v7832_v25, 2 }
 0x5ba   : > { %v4243_v55 = vpop.permute.xlu1 %4242  ;;  %v4001_v34 = vpop.permute.xlu0 %4000 }
 0x5bb   : > { %v4343_v31 = vsel %vm4341_vm9, %v4001_v34, %v4025_v52  ;;  %v4275_v52 = vsel %vm4273_vm14, %v4258_v0, %v7957_v13 }
 0x5bc   : > { %4106 = vrot.lane.b32.xlu1 %v4093_v62, %s8648_s1  ;;  %4202 = vrot.lane.b32.xlu0 %v4189_v15, %s8646_s20 }
 0x5be   : > { %v4097_v40 = vpop.permute.xlu1 %4096  ;;  %v4049_v53 = vpop.permute.xlu0 %4048 }
 0x5bf   : > { %v4360_v41 = vsel %vm4358_vm10, %v4343_v31, %v4049_v53  ;;  %v8067_v53 = vshrl.u32 %v7832_v25, 16 }
 0x5c0   : > { %v4377_v1 = vsel %vm4375_vm15, %v4360_v41, %v4073_v5  ;;  %4250 = vrot.lane.b32.xlu0 %v4237_v30, %s8647_s27  ;;  %4056 = vrot.lane.b32.xlu1 %v4044_v16, %s8644_s0  ;;  %v4498_v5 = vsel %vm4494_vm6, %v4481_v38, %v4243_v55 }
 0x5c1   : > { %v8022_v51 = vsel %vm8613_vm3, %v4377_v1, %v4097_v40  ;;  %v4598_v58 = vunpack.c.l.b16 %v4498_v5  ;;  %v4023_v40 = vrot.slane %v7832_v25, 3  ;;  %v4022_v5 = vrot.slane %v7836_v7, 3 }
 0x5c2   : > { %v4145_v60 = vpop.permute.xlu1 %4144  ;;  %v3953_v23 = vpop.permute.xlu0 %3952 }
 0x5c3   : > { %v4428_v11 = vsel %vm4426_vm8, %v7965_v18, %v4145_v60  ;;  %v4292_v39 = vsel %vm8612_vm1, %v4275_v52, %v3953_v23  ;;  %v4119_v52 = vrot.slane %v7832_v25, 5 }
 0x5c4   : > { %v4309_v13 = vsel %vm8611_vm7, %v4292_v39, %v7963_v24  ;;  %4104 = vrot.lane.b32.xlu1 %v4092_v45, %s8648_s1  ;;  %4008 = vrot.lane.b32.xlu0 %v3996_v4, %s8650_s3  ;;  %v4445_v57 = vsel %vm4443_vm11, %v4428_v11, %v7976_v37  ;;  %v4599_v24 = vunpack.c.l.b16 %v4243_v55  ;;  %v4167_v45 = vrot.slane %v7832_v25, 6  ;;  %v6483_v11 = vld [vmem:[%s8564_s8 + $0x40] sm:$0xff]  }
 0x5c5   : > { %v8039_v17 = vsel %vm4324_vm2, %v4309_v13, %v4001_v34  ;;  %v4659_v34 = vrot.slane %v4598_v58, 7  ;;  %v4215_v4 = vrot.slane %v7832_v25, 7  ;;  %5864 = vmatprep.subr.bf16.mxu1 %v6483_v11  ;;  %v4166_v13 = vrot.slane %v7836_v7, 6 }
 0x5c6   : > { %v4193_v27 = vpop.permute.xlu0 %4192  ;;  %v8043_v42 = vpop.permute.xlu1 %4030  ;;  %v4673_v61 = vrot.slane %v4599_v24, 7  ;;  %v4214_v58 = vrot.slane %v7836_v7, 7 }
 0x5c7   : > { %v4462_v10 = vsel %vm4460_vm12, %v4445_v57, %v4193_v27  ;;  %v6484_v57 = vld [vmem:[%s8564_s8] sm:$0xff]  }
 0x5c8   : > { %4152 = vrot.lane.b32.xlu1 %v4140_v56, %s8649_s2  ;;  %3960 = vrot.lane.b32.xlu0 %v3948_v28, %s8645_s25  ;;  %v4479_v21 = vsel %vm4477_vm5, %v4462_v10, %v7974_v26  ;;  %v6485_v27 = vld [vmem:[%s8564_s8 + $0x80] sm:$0xff]   ;;  %v6486_v56 = vld [vmem:[%s8564_s8 + $0x48] sm:$0xff]  }
 0x5c9   : > { %5865 = vmatpush3.bf16.msra.mxu1 %v6484_v57  ;;  %4888 = vmatpush1.bf16.msra.mxu0 %v6485_v27  ;;  %v6495_v57 = vld [vmem:[%s8564_s8 + $0x60] sm:$0xff]   ;;  %v4260_v27 = vsel %vm4256_vm13, %v7768_v3, %v7920_v20  ;;  %v4118_v3 = vrot.slane %v7836_v7, 5 }
 0x5ca   : > { %v4241_v9 = vpop.permute.xlu0 %4240  ;;  %v3903_v37 = vpop.permute.xlu1 %3902  ;;  %5866 = vmatprep.subr.bf16.mxu1 %v6486_v56  ;;  %4889 = vmatprep.subr.bf16.mxu0 %v6587_v2  ;;  %v4345_v56 = vsel %vm4341_vm9, %v7984_v35, %v7918_v33  ;;  %v6496_v33 = vld [vmem:[%s8564_s8 + $0x20] sm:$0xff]  }
 0x5cb   : > { %v4496_v47 = vsel %vm4494_vm6, %v4479_v21, %v4241_v9  ;;  %v4595_v55 = vunpack.c.l.b16 %v4241_v9  ;;  %v4264_v50 = vsel %vm4256_vm13, %v7781_v8, %v3903_v37  ;;  %v4071_v8 = vrot.slane %v7832_v25, 4  ;;  %v6497_v20 = vld [vmem:[%s8564_s8 + $0xa0] sm:$0xff]  }
 0x5cc   : > { %v4594_v62 = vunpack.c.l.b16 %v4496_v47  ;;  %4248 = vrot.lane.b32.xlu1 %v4236_v59, %s8647_s27  ;;  %4200 = vrot.lane.b32.xlu0 %v4188_v32, %s8646_s20  ;;  %v8121_v21 = vshrl.u32 %v7836_v7, 16  ;;  %v3999_v32 = vrot.slane %v8067_v53, 2 }
 0x5cd   : > { %v8058_v15 = vsel %vm4625_vm0, %v4673_v61, %v4595_v55  ;;  %v3926_v61 = vrot.slane %v7836_v7, 1  ;;  %v6487_v55 = vld [vmem:[%s8564_s8 + $0x8] sm:$0xff]  }
 0x5ce   : > { %v8061_v26 = vsel %vm4625_vm0, %v4659_v34, %v4594_v62  ;;  %v3935_v6 = vpop.permute.xlu0 %3934  ;;  %v4079_v31 = vpop.permute.xlu1 %4078  ;;  %v6488_v34 = vld [vmem:[%s8564_s8 + $0x88] sm:$0xff]   ;;  %v6489_v62 = vld [vmem:[%s8564_s8 + $0x50] sm:$0xff]   ;;  %5867 = vmatpush3.bf16.msra.mxu1 %v6487_v55  ;;  %v4143_v55 = vrot.slane %v8067_v53, 5 }
 0x5cf   : > { %v8070_v30 = vsel %vm4273_vm14, %v4264_v50, %v3935_v6  ;;  %4890 = vmatpush1.bf16.msra.mxu0 %v6488_v34  ;;  %5868 = vmatprep.subr.bf16.mxu1 %v6489_v62  ;;  %v3998_v34 = vrot.slane %v8121_v21, 2 }
 0x5d0   : > { %4038 = vrot.lane.b32.xlu0 %v4023_v40, %s8651_s4  ;;  %3910 = vrot.lane.b32.xlu1 %v8067_v53, %s8652_s5  ;;  %v4047_v40 = vrot.slane %v8067_v53, 3 }
 0x5d1   : > { %4891 = vmatprep.subr.bf16.mxu0 %v6587_v2 }
 0x5d2   : > { %v8075_v16 = vpop.permute.xlu0 %3982  ;;  %v8077_v41 = vpop.permute.xlu1 %4126 }
 0x5d4   : > { %4086 = vrot.lane.b32.xlu0 %v4071_v8, %s8639_s15  ;;  %3942 = vrot.lane.b32.xlu1 %v3927_v14, %s8638_s18  ;;  %v4070_v8 = vrot.slane %v7836_v7, 4  ;;  %v6490_v14 = vld [vmem:[%s8564_s8 + $0x10] sm:$0xff]  }
 0x5d5   : > { %5869 = vmatpush3.bf16.msra.mxu1 %v6490_v14 }
 0x5d6   : > { %v8083_v1 = vpop.permute.xlu0 %4222  ;;  %v8085_v0 = vpop.permute.xlu1 %4174 }
 0x5d8   : > { %3990 = vrot.lane.b32.xlu0 %v3975_v44, %s8640_s26  ;;  %4134 = vrot.lane.b32.xlu1 %v4119_v52, %s8641_s28  ;;  %v6491_v44 = vld [vmem:[%s8564_s8 + $0x90] sm:$0xff]   ;;  %v6492_v52 = vld [vmem:[%s8564_s8 + $0x58] sm:$0xff]  }
 0x5d9   : > { %4892 = vmatpush1.bf16.msra.mxu0 %v6491_v44  ;;  %5870 = vmatprep.subr.bf16.mxu1 %v6492_v52  ;;  %v4191_v44 = vrot.slane %v8067_v53, 6  ;;  %v4046_v52 = vrot.slane %v8121_v21, 3 }
 0x5da   : > { %v8091_v60 = vpop.permute.xlu1 %4124  ;;  %v8093_v23 = vpop.permute.xlu0 %4028  ;;  %4893 = vmatprep.subr.bf16.mxu0 %v6587_v2 }
 0x5dc   : > { %4182 = vrot.lane.b32.xlu0 %v4167_v45, %s8643_s21  ;;  %4230 = vrot.lane.b32.xlu1 %v4215_v4, %s8642_s22 }
 0x5de   : > { %v8102_v39 = vpop.permute.xlu1 %4172  ;;  %v3901_v38 = vpop.permute.xlu0 %3900 }
 0x5df   : > { %v4262_v28 = vsel %vm4256_vm13, %v7785_v43, %v3901_v38  ;;  %v3951_v38 = vrot.slane %v8067_v53, 1 }
 0x5e0   : > { %4180 = vrot.lane.b32.xlu1 %v4166_v13, %s8643_s21  ;;  %4036 = vrot.lane.b32.xlu0 %v4022_v5, %s8651_s4  ;;  %v3974_v13 = vrot.slane %v7836_v7, 2  ;;  %v6494_v5 = vld [vmem:[%s8564_s8 + $0x98] sm:$0xff]  }
 0x5e1   : > { %4894 = vmatpush1.bf16.msra.mxu0 %v6494_v5  ;;  %v4411_v5 = vsel %vm4409_vm4, %v8022_v51, %v7965_v18  ;;  %v3950_v18 = vrot.slane %v8121_v21, 1 }
 0x5e2   : > { %v4007_v24 = vpop.permute.xlu1 %4006  ;;  %v3933_v10 = vpop.permute.xlu0 %3932  ;;  %4895 = vmatprep.subr.bf16.mxu0 %v6587_v2 }
 0x5e3   : > { %v4349_v9 = vsel %vm4341_vm9, %v4007_v24, %v8043_v42  ;;  %v8127_v37 = vsel %vm4273_vm14, %v4262_v28, %v3933_v10  ;;  %v4277_v28 = vsel %vm4273_vm14, %v4260_v27, %v7924_v22  ;;  %v4362_v22 = vsel %vm4358_vm10, %v4345_v56, %v7982_v29 }
 0x5e4   : > { %4228 = vrot.lane.b32.xlu1 %v4214_v58, %s8642_s22  ;;  %3908 = vrot.lane.b32.xlu0 %v8121_v21, %s8652_s5  ;;  %v4094_v27 = vrot.slane %v8121_v21, 4  ;;  %v4592_v56 = vunpack.c.l.b16 %v8039_v17  ;;  %s5222_s22 = sshll.u32 %s461_s24, 3 }
 0x5e5   : > { %4896 = vmatpush1.bf16.msra.mxu0 %v6497_v20  ;;  %s463_s21 = scalar_lea.vmem [#allocation2], %s5222_s22 }
 0x5e6   : > { %v4055_v43 = vpop.permute.xlu1 %4054  ;;  %v8132_v59 = vpop.permute.xlu0 %4076  ;;  %4897 = vmatprep.subr.bf16.mxu0 %v6587_v2  ;;  %s5159_s6 = sshll.u32 %s463_s21, 4  ;;  %s8516_s6 = int_to_ptr.vmem [resolvable:$true] %s5159_s6 }
 0x5e7   : > { %v4366_v47 = vsel %vm4358_vm10, %v4349_v9, %v4055_v43  ;;  %v4095_v9 = vrot.slane %v8067_v53, 4  ;;  %v6498_v43 = vld [vmem:[%s8564_s8 + $0x68] sm:$0xff]  }
 0x5e8   : > { %4014 = vrot.lane.b32.xlu1 %v3999_v32, %s8650_s3  ;;  %3940 = vrot.lane.b32.xlu0 %v3926_v61, %s8638_s18  ;;  %v4383_v42 = vsel %vm4375_vm15, %v4366_v47, %v4079_v31  ;;  %v4379_v61 = vsel %vm4375_vm15, %v4362_v22, %v7932_v49 }
 0x5e9   : > { %v4396_v62 = vsel %vm8613_vm3, %v4379_v61, %v7996_v36  ;;  %v6499_v36 = vld [vmem:[%s8564_s8 + $0x28] sm:$0xff]  }
 0x5ea   : > { %v3959_v50 = vpop.permute.xlu1 %3958  ;;  %v8149_v6 = vpop.permute.xlu0 %3980 }
 0x5eb   : > { %v4298_v31 = vsel %vm8612_vm1, %v8070_v30, %v3959_v50 }
 0x5ec   : > { %v4315_v45 = vsel %vm8611_vm7, %v4298_v31, %v8075_v16  ;;  %4062 = vrot.lane.b32.xlu1 %v4047_v40, %s8644_s0  ;;  %4084 = vrot.lane.b32.xlu0 %v4070_v8, %s8639_s15  ;;  %v6493_v16 = vld [vmem:[%s8564_s8 + $0x18] sm:$0xff]  }
 0x5ed   : > { %v8170_v30 = vsel %vm4324_vm2, %v4315_v45, %v4007_v24  ;;  %v4294_v24 = vsel %vm8612_vm1, %v4277_v28, %v7990_v48  ;;  %5871 = vmatpush3.bf16.msra.mxu1 %v6493_v16  ;;  %v6502_v45 = vld [vmem:[%s8564_s8 + $0x30] sm:$0xff]   ;;  %v6504_v16 = vld [vmem:[%s8564_s8 + $0x78] sm:$0xff]  }
 0x5ee   : > { %v4199_v4 = vpop.permute.xlu1 %4198  ;;  %v8172_v11 = vpop.permute.xlu0 %4220  ;;  %5872 = vmatprep.subr.bf16.mxu1 %v6495_v57  ;;  %v4311_v29 = vsel %vm8611_vm7, %v4294_v24, %v7926_v19  ;;  %v4604_v28 = vunpack.c.l.b16 %v8170_v30 }
 0x5ef   : > { %v4328_v49 = vsel %vm4324_vm2, %v4311_v29, %v7984_v35  ;;  %v6501_v35 = vld [vmem:[%s8564_s8 + $0x70] sm:$0xff]   ;;  %v6506_v29 = vld [vmem:[%s8564_s8 + $0xb8] sm:$0xff]  }
 0x5f0   : > { %3966 = vrot.lane.b32.xlu1 %v3951_v38, %s8645_s25  ;;  %3988 = vrot.lane.b32.xlu0 %v3974_v13, %s8640_s26  ;;  %v4630_v61 = vrot.slane %v4604_v28, 5 }
 0x5f1   : > { %5873 = vmatpush3.bf16.msra.mxu1 %v6496_v33 }
 0x5f2   : > { %v8198_v10 = vpop.permute.xlu1 %4246  ;;  %v4103_v58 = vpop.permute.xlu0 %4102  ;;  %5874 = vmatprep.subr.bf16.mxu1 %v6498_v43  ;;  %v6505_v43 = vld [vmem:[%s8564_s8 + $0x38] sm:$0xff]  }
 0x5f3   : > { %v4400_v48 = vsel %vm8613_vm3, %v4383_v42, %v4103_v58 }
 0x5f4   : > { %v8217_v32 = vsel %vm4409_vm4, %v4400_v48, %v8077_v41  ;;  %4110 = vrot.lane.b32.xlu1 %v4095_v9, %s8648_s1  ;;  %4132 = vrot.lane.b32.xlu0 %v4118_v3, %s8641_s28 }
 0x5f5   : > { %5875 = vmatpush3.bf16.msra.mxu1 %v6499_v36  ;;  %v4605_v30 = vunpack.c.l.b16 %v8217_v32 }
 0x5f6   : > { %v4151_v47 = vpop.permute.xlu0 %4150  ;;  %v4005_v42 = vpop.permute.xlu1 %4004  ;;  %5876 = vmatprep.subr.bf16.mxu1 %v6501_v35 }
 0x5f7   : > { %v4434_v50 = vsel %vm4426_vm8, %v8077_v41, %v4151_v47  ;;  %v4347_v19 = vsel %vm4341_vm9, %v4005_v42, %v8093_v23  ;;  %v6500_v41 = vld [vmem:[%s8564_s8 + $0xa8] sm:$0xff]  }
 0x5f8   : > { %v4451_v40 = vsel %vm4443_vm11, %v4434_v50, %v8085_v0  ;;  %4158 = vrot.lane.b32.xlu0 %v4143_v55, %s8649_s2  ;;  %4012 = vrot.lane.b32.xlu1 %v3998_v34, %s8650_s3  ;;  %v4413_v0 = vsel %vm4409_vm4, %v4396_v62, %v7943_v63  ;;  %v4596_v63 = vunpack.c.l.b16 %v4328_v49  ;;  %v4607_v55 = vunpack.c.l.b16 %v8198_v10 }
 0x5f9   : > { %v4468_v23 = vsel %vm4460_vm12, %v4451_v40, %v4199_v4  ;;  %4898 = vmatpush1.bf16.msra.mxu0 %v6500_v41  ;;  %v6503_v4 = vld [vmem:[%s8564_s8 + $0xb0] sm:$0xff]   ;;  %v4597_v51 = vunpack.c.l.b16 %v4413_v0  ;;  %5877 = vmatpush3.bf16.msra.mxu1 %v6502_v45  ;;  %v4142_v50 = vrot.slane %v8121_v21, 5  ;;  %v4239_v0 = vrot.slane %v8067_v53, 7 }
 0x5fa   : > { %v4485_v8 = vsel %vm4477_vm5, %v4468_v23, %v8083_v1  ;;  %v4053_v31 = vpop.permute.xlu0 %4052  ;;  %v3957_v14 = vpop.permute.xlu1 %3956  ;;  %4899 = vmatprep.subr.bf16.mxu0 %v6587_v2  ;;  %v4624_v3 = vrot.slane %v4596_v63, 7  ;;  %5878 = vmatprep.subr.bf16.mxu1 %v6504_v16  ;;  %v4238_v63 = vrot.slane %v8121_v21, 7 }
 0x5fb   : > { %v8264_v1 = vsel %vm4494_vm6, %v4485_v8, %v8198_v10  ;;  %v4364_v38 = vsel %vm4358_vm10, %v4347_v19, %v4053_v31  ;;  %v4296_v13 = vsel %vm8612_vm1, %v8127_v37, %v3957_v14  ;;  %vm4631_vm1 = vcmask 1043459   ;;  %v6507_v19 = vld [vmem:[%s8564_s8 + $0xc0] sm:$0xff]  }
 0x5fc   : > { %v4313_v57 = vsel %vm8611_vm7, %v4296_v13, %v8149_v6  ;;  %4206 = vrot.lane.b32.xlu0 %v4191_v44, %s8646_s20  ;;  %4060 = vrot.lane.b32.xlu1 %v4046_v52, %s8644_s0  ;;  %v4381_v37 = vsel %vm4375_vm15, %v4364_v38, %v8132_v59  ;;  %vm4628_vm7 = vcmask 1042434   ;;  %v4593_v59 = vunpack.c.l.b16 %v4411_v5  ;;  %s5476_s0 = sshll.u32 %s6706_s17, 7  ;;  %s6523_s17 = scalar_lea.vmem %s8516_s6, 128 }
 0x5fd   : > { %v4330_v24 = vsel %vm4324_vm2, %v4313_v57, %v4005_v42  ;;  %4900 = vmatpush1.bf16.msra.mxu0 %v6503_v4  ;;  %v4626_v32 = vsel %vm4625_vm0, %v4624_v3, %v4592_v56  ;;  %v4645_v42 = vrot.slane %v4597_v51, 7  ;;  %5879 = vmatpush3.bf16.msra.mxu1 %v6505_v43  ;;  %v4649_v10 = vrot.slane %v4605_v30, 5  ;;  %p6524_p11 = scmp.ne.s32.totalorder %s8516_s6, %s6523_s17 }
 0x5fe   : > { %v4600_v58 = vunpack.c.l.b16 %v4330_v24  ;;  %v4101_v6 = vpop.permute.xlu0 %4100  ;;  %v4149_v9 = vpop.permute.xlu1 %4148  ;;  %4901 = vmatprep.subr.bf16.mxu0 %v6587_v2  ;;  %6334 = vmatprep.subr.bf16.mxu1 %v6591_v12  ;;  %v4606_v8 = vunpack.c.l.b16 %v8264_v1  ;;  %v4677_v44 = vrot.slane %v4607_v55, 5 }
 0x5ff   : > { %v4398_v33 = vsel %vm8613_vm3, %v4381_v37, %v4101_v6  ;;  %v4432_v17 = vsel %vm4426_vm8, %v8091_v60, %v4149_v9  ;;  %v4646_v23 = vsel %vm4625_vm0, %v4645_v42, %v4593_v59  ;;  %vm8653_vm0 = vcmask 613376   ;;  %p6525_p12 = pnand %p6524_p11, %p6723_p5 }
 0x600   : > { %v4627_v20 = vrot.slane %v4600_v58, 6  ;;  %v4415_v22 = vsel %vm4409_vm4, %v4398_v33, %v8091_v60  ;;  %4108 = vrot.lane.b32.xlu1 %v4094_v27, %s8648_s1  ;;  %3964 = vrot.lane.b32.xlu0 %v3950_v18, %s8645_s25  ;;  %v4449_v48 = vsel %vm4443_vm11, %v4432_v17, %v8102_v39  ;;  %v4190_v60 = vrot.slane %v8121_v21, 6  ;;  %s8514_s25 = scalar_lea.hbm %s8570_s14, %s5476_s0 }
 0x601   : > { %v4601_v47 = vunpack.c.l.b16 %v4415_v22  ;;  %4902 = vmatpush1.bf16.msra.mxu0 %v6506_v29  ;;  %v4663_v13 = vrot.slane %v4606_v8, 5  ;;  %p6526_p13 = pneg %p6525_p12 }
 0x602   : > { %v4629_v34 = vsel %vm4628_vm7, %v4627_v20, %v4626_v32  ;;  %v4197_v39 = vpop.permute.xlu0 %4196  ;;  %v4245_v62 = vpop.permute.xlu1 %4244  ;;  %4903 = vmatprep.subr.bf16.mxu0 %v6587_v2 }
 0x603   : > { %v4647_v49 = vrot.slane %v4601_v47, 6  ;;  %v4466_v40 = vsel %vm4460_vm12, %v4449_v48, %v4197_v39  ;;  %v4603_v36 = vunpack.c.l.b16 %v4245_v62  ;;  %v8314_v41 = vsel %vm4631_vm1, %v4630_v61, %v4629_v34 }
 0x604   : > { %v4483_v35 = vsel %vm4477_vm5, %v4466_v40, %v8172_v11  ;;  %4204 = vrot.lane.b32.xlu1 %v4190_v60, %s8646_s20  ;;  %4156 = vrot.lane.b32.xlu0 %v4142_v50, %s8649_s2  ;;  %s5146_s2 = scalar_lea.sflag [#allocation3], %s461_s24 }
 0x605   : > { %v4648_v31 = vsel %vm4628_vm7, %v4647_v49, %v4646_v23  ;;  %v4500_v2 = vsel %vm4494_vm6, %v4483_v35, %v4245_v62  ;;  %v4675_v14 = vrot.slane %v4603_v36, 6  ;;  %4904 = vmatpush1.bf16.msra.mxu0 %v6507_v19 }
 0x606   : > { %v8328_v52 = vsel %vm4631_vm1, %v4649_v10, %v4648_v31  ;;  %v4602_v45 = vunpack.c.l.b16 %v4500_v2  ;;  %v4035_v4 = vpop.permute.xlu0 %4034  ;;  %v3939_v11 = vpop.permute.xlu1 %3938  ;;  %6354 = vmatprep.subr.bf16.mxu0 %v6591_v12 }
 0x607   : > { %v4676_v53 = vsel %vm4628_vm7, %v4675_v14, %v8058_v15 }
 0x608   : > { %v4661_v1 = vrot.slane %v4602_v45, 6  ;;  %4254 = vrot.lane.b32.xlu1 %v4239_v0, %s8647_s27  ;;  %4252 = vrot.lane.b32.xlu0 %v4238_v63, %s8647_s27  ;;  %v8337_v38 = vsel %vm4631_vm1, %v4677_v44, %v4676_v53  ;;  %s6609_s27 = smov [#allocation2]  }
 0x609   : > { %s6527_s20 = sshll.u32 %s6609_s27, 4  ;;  %s6528_s20 = int_to_ptr.vmem [resolvable:$false] %s6527_s20 }
 0x60a   : > { %v4662_v16 = vsel %vm4628_vm7, %v4661_v1, %v8061_v26  ;;  %v3987_v5 = vpop.permute.xlu1 %3986  ;;  %v3907_v21 = vpop.permute.xlu0 %3906  ;;  %vm8655_vm7 = vmmov %vm8653_vm0  ;;  %s6529_s28 = scalar_lea.vmem %s6528_s20, 256  ;;  %p6530_p0 = scmp.lt.s32.totalorder %s8516_s6, %s6528_s20 }
 0x60b   : > { %v8342_v57 = vsel %vm4631_vm1, %v4663_v13, %v4662_v16  ;;  %v4268_v15 = vsel %vm4256_vm13, %v7805_v46, %v3907_v21  ;;  %vm8654_vm1 = vcmask 818176   ;;  %p6531_p1 = scmp.lt.s32.totalorder %s6529_s28, %s6523_s17 }
 0x60c   : > { %v4285_v37 = vsel %vm4273_vm14, %v4268_v15, %v3939_v11 }
 0x60d   : > { %p6532_p2 = por %p6531_p1, %p6530_p0 }
 0x60e   : > { %v4179_v27 = vpop.permute.xlu1 %4178  ;;  %v4083_v56 = vpop.permute.xlu0 %4082 }
 0x60f   : > { %p6533_p3 = pnand %p6532_p2, %p6526_p13 }
 0x612   : > { %v4131_v28 = vpop.permute.xlu0 %4130  ;;  %v4033_v24 = vpop.permute.xlu1 %4032 }
 0x616   : > { %v4227_v18 = vpop.permute.xlu0 %4226  ;;  %v3937_v51 = vpop.permute.xlu1 %3936 }
 0x61a   : > { %v4177_v58 = vpop.permute.xlu1 %4176  ;;  %v3905_v6 = vpop.permute.xlu0 %3904 }
 0x61b   : > { %v4266_v26 = vsel %vm4256_vm13, %v7809_v54, %v3905_v6 }
 0x61c   : > { %v4283_v9 = vsel %vm4273_vm14, %v4266_v26, %v3937_v51 }
 0x61e   : > { %v4225_v3 = vpop.permute.xlu1 %4224  ;;  %v4081_v59 = vpop.permute.xlu0 %4080 }
 0x622   : > { %v4011_v33 = vpop.permute.xlu1 %4010  ;;  %v3985_v17 = vpop.permute.xlu0 %3984 }
 0x623   : > { %v4353_v46 = vsel %vm4341_vm9, %v4011_v33, %v4035_v4 }
 0x626   : > { %v4059_v30 = vpop.permute.xlu1 %4058  ;;  %v4129_v20 = vpop.permute.xlu0 %4128 }
 0x627   : > { %v4370_v22 = vsel %vm4358_vm10, %v4353_v46, %v4059_v30 }
 0x628   : > { %v4387_v48 = vsel %vm4375_vm15, %v4370_v22, %v4083_v56 }
 0x62a   : > { %v3963_v43 = vpop.permute.xlu1 %3962  ;;  %v4155_v29 = vpop.permute.xlu0 %4154 }
 0x62b   : > { %v4302_v32 = vsel %vm8653_vm0, %v4285_v37, %v3963_v43  ;;  %v4438_v54 = vsel %vm4426_vm8, %v4131_v28, %v4155_v29  ;;  %vm8656_vm0 = vmmov %vm8654_vm1 }
 0x62c   : > { %v4319_v61 = vsel %vm8654_vm1, %v4302_v32, %v3987_v5  ;;  %v4455_v47 = vsel %vm4443_vm11, %v4438_v54, %v4179_v27  ;;  %vm4634_vm1 = vcmask 1044484  }
 0x62d   : > { %v4336_v60 = vsel %vm4324_vm2, %v4319_v61, %v4011_v33 }
 0x62e   : > { %v4107_v42 = vpop.permute.xlu1 %4106  ;;  %v4203_v55 = vpop.permute.xlu0 %4202  ;;  %v4612_v11 = vunpack.c.l.b16 %v4336_v60 }
 0x62f   : > { %v4404_v34 = vsel %vm8613_vm3, %v4387_v48, %v4107_v42  ;;  %v4472_v39 = vsel %vm4460_vm12, %v4455_v47, %v4203_v55 }
 0x630   : > { %v4421_v62 = vsel %vm4409_vm4, %v4404_v34, %v4131_v28  ;;  %v4489_v50 = vsel %vm4477_vm5, %v4472_v39, %v4227_v18 }
 0x631   : > { %v4613_v14 = vunpack.c.l.b16 %v4421_v62 }
 0x632   : > { %v4251_v19 = vpop.permute.xlu0 %4250  ;;  %v4057_v49 = vpop.permute.xlu1 %4056 }
 0x633   : > { %v4506_v40 = vsel %vm4494_vm6, %v4489_v50, %v4251_v19  ;;  %v4615_v16 = vunpack.c.l.b16 %v4251_v19  ;;  %v4653_v27 = vrot.slane %v4613_v14, 3 }
 0x634   : > { %v4614_v6 = vunpack.c.l.b16 %v4506_v40 }
 0x635   : > { %v4681_v33 = vrot.slane %v4615_v16, 3 }
 0x636   : > { %v4105_v36 = vpop.permute.xlu1 %4104  ;;  %v4009_v10 = vpop.permute.xlu0 %4008  ;;  %v4667_v43 = vrot.slane %v4614_v6, 3 }
 0x637   : > { %v4351_v23 = vsel %vm4341_vm9, %v4009_v10, %v4033_v24  ;;  %v4636_v24 = vrot.slane %v4612_v11, 3 }
 0x638   : > { %v4368_v35 = vsel %vm4358_vm10, %v4351_v23, %v4057_v49 }
 0x639   : > { %v4385_v0 = vsel %vm4375_vm15, %v4368_v35, %v4081_v59 }
 0x63a   : > { %v4402_v8 = vsel %vm8613_vm3, %v4385_v0, %v4105_v36  ;;  %v4153_v31 = vpop.permute.xlu1 %4152  ;;  %v3961_v2 = vpop.permute.xlu0 %3960  ;;  %vm4637_vm3 = vcmask 1045509  }
 0x63b   : > { %v4419_v44 = vsel %vm4409_vm4, %v4402_v8, %v4129_v20  ;;  %v4436_v45 = vsel %vm4426_vm8, %v4129_v20, %v4153_v31  ;;  %v4300_v4 = vsel %vm8655_vm7, %v4283_v9, %v3961_v2 }
 0x63c   : > { %v4609_v63 = vunpack.c.l.b16 %v4419_v44  ;;  %v4317_v53 = vsel %vm8656_vm0, %v4300_v4, %v3985_v17  ;;  %v4453_v1 = vsel %vm4443_vm11, %v4436_v45, %v4177_v58 }
 0x63d   : > { %v4334_v13 = vsel %vm4324_vm2, %v4317_v53, %v4009_v10 }
 0x63e   : > { %v4651_v5 = vrot.slane %v4609_v63, 4  ;;  %v4608_v21 = vunpack.c.l.b16 %v4334_v13  ;;  %v4249_v15 = vpop.permute.xlu1 %4248  ;;  %v4201_v37 = vpop.permute.xlu0 %4200 }
 0x63f   : > { %v4611_v56 = vunpack.c.l.b16 %v4249_v15  ;;  %v4470_v28 = vsel %vm4460_vm12, %v4453_v1, %v4201_v37 }
 0x640   : > { %v4633_v18 = vrot.slane %v4608_v21, 4  ;;  %v4487_v51 = vsel %vm4477_vm5, %v4470_v28, %v4225_v3  ;;  %v4652_v58 = vsel %vm4634_vm1, %v4651_v5, %v8328_v52 }
 0x641   : > { %v4679_v26 = vrot.slane %v4611_v56, 4  ;;  %v4504_v9 = vsel %vm4494_vm6, %v4487_v51, %v4249_v15  ;;  %v8379_v59 = vsel %vm4637_vm3, %v4653_v27, %v4652_v58 }
 0x642   : > { %v4635_v17 = vsel %vm4634_vm1, %v4633_v18, %v8314_v41  ;;  %v4610_v46 = vunpack.c.l.b16 %v4504_v9  ;;  %v4039_v30 = vpop.permute.xlu0 %4038  ;;  %v3911_v20 = vpop.permute.xlu1 %3910 }
 0x643   : > { %v4680_v3 = vsel %vm4634_vm1, %v4679_v26, %v8337_v38  ;;  %v8386_v22 = vsel %vm4637_vm3, %v4636_v24, %v4635_v17  ;;  %v4272_v35 = vsel %vm4256_vm13, %v7832_v25, %v3911_v20 }
 0x644   : > { %v4665_v52 = vrot.slane %v4610_v46, 4  ;;  %v8389_v48 = vsel %vm4637_vm3, %v4681_v33, %v4680_v3 }
 0x646   : > { %v4087_v29 = vpop.permute.xlu0 %4086  ;;  %v3943_v32 = vpop.permute.xlu1 %3942  ;;  %v4666_v54 = vsel %vm4634_vm1, %v4665_v52, %v8342_v57 }
 0x647   : > { %v8394_v41 = vsel %vm4637_vm3, %v4667_v43, %v4666_v54  ;;  %v4289_v2 = vsel %vm4273_vm14, %v4272_v35, %v3943_v32  ;;  %vm8657_vm3 = vmmov %vm8655_vm7  ;;  %vm8658_vm7 = vcmask 793600  }
 0x648   : > { %vm8660_vm1 = vmmov %vm8657_vm3 }
 0x64a   : > { %v3991_v61 = vpop.permute.xlu0 %3990  ;;  %v4135_v47 = vpop.permute.xlu1 %4134 }
 0x64e   : > { %v4183_v60 = vpop.permute.xlu0 %4182  ;;  %v4231_v38 = vpop.permute.xlu1 %4230 }
 0x652   : > { %v4181_v42 = vpop.permute.xlu1 %4180  ;;  %v4037_v55 = vpop.permute.xlu0 %4036 }
 0x656   : > { %v4229_v34 = vpop.permute.xlu1 %4228  ;;  %v3909_v39 = vpop.permute.xlu0 %3908 }
 0x657   : > { %v4270_v1 = vsel %vm4256_vm13, %v7836_v7, %v3909_v39  ;;  %vm4640_vm13 = vcmask 1046534  }
 0x65a   : > { %v4015_v62 = vpop.permute.xlu1 %4014  ;;  %v3941_v50 = vpop.permute.xlu0 %3940 }
 0x65b   : > { %v4357_v57 = vsel %vm4341_vm9, %v4015_v62, %v4039_v30  ;;  %v4287_v16 = vsel %vm4273_vm14, %v4270_v1, %v3941_v50  ;;  %vm4643_vm14 = vcmask 1047559  }
 0x65e   : > { %v4063_v19 = vpop.permute.xlu1 %4062  ;;  %v4085_v49 = vpop.permute.xlu0 %4084 }
 0x65f   : > { %v4374_v0 = vsel %vm4358_vm10, %v4357_v57, %v4063_v19 }
 0x660   : > { %v4391_v44 = vsel %vm4375_vm15, %v4374_v0, %v4087_v29 }
 0x662   : > { %v3967_v40 = vpop.permute.xlu1 %3966  ;;  %v3989_v36 = vpop.permute.xlu0 %3988 }
 0x663   : > { %v4306_v14 = vsel %vm8657_vm3, %v4289_v2, %v3967_v40  ;;  %v6509_v2 = vld [vmem:[%s8566_s10 + $0x8] sm:$0xff]  }
 0x664   : > { %v4323_v53 = vsel %vm8656_vm0, %v4306_v14, %v3991_v61 }
 0x665   : > { %v4340_v5 = vsel %vm4324_vm2, %v4323_v53, %v4015_v62  ;;  %v6515_v53 = vld [vmem:[%s8566_s10 + $0x38] ss:$0 sps:$4 sm:$0xff]  }
 0x666   : > { %v4111_v10 = vpop.permute.xlu1 %4110  ;;  %v4133_v23 = vpop.permute.xlu0 %4132  ;;  %v4620_v51 = vunpack.c.l.b16 %v4340_v5  ;;  %v6519_v5 = vld [vmem:[%s8568_s12 + $0x18] sm:$0xff]  }
 0x667   : > { %v4408_v45 = vsel %vm8658_vm7, %v4391_v44, %v4111_v10 }
 0x668   : > { %v4425_v13 = vsel %vm4409_vm4, %v4408_v45, %v4135_v47  ;;  %v4642_v29 = vrot.slane %v4620_v51, 1  ;;  %v6511_v45 = vld [vmem:[%s8566_s10 + $0x18] sm:$0xff]  }
 0x669   : > { %v4621_v24 = vunpack.c.l.b16 %v4425_v13  ;;  %v6517_v13 = vld [vmem:[%s8568_s12 + $0x8] sm:$0xff]  }
 0x66a   : > { %v4159_v8 = vpop.permute.xlu0 %4158  ;;  %v4013_v31 = vpop.permute.xlu1 %4012 }
 0x66b   : > { %v4355_v4 = vsel %vm4341_vm9, %v4013_v31, %v4037_v55  ;;  %v4442_v27 = vsel %vm4426_vm8, %v4135_v47, %v4159_v8  ;;  %vm8659_vm9 = vmmov %vm8658_vm7  ;;  %v4657_v3 = vrot.slane %v4621_v24, 1 }
 0x66c   : > { %v4459_v26 = vsel %vm4443_vm11, %v4442_v27, %v4183_v60 }
 0x66e   : > { %v4207_v11 = vpop.permute.xlu0 %4206  ;;  %v4061_v63 = vpop.permute.xlu1 %4060 }
 0x66f   : > { %v4372_v25 = vsel %vm4358_vm10, %v4355_v4, %v4061_v63  ;;  %vm8661_vm10 = vmmov %vm8656_vm0  ;;  %v4476_v46 = vsel %vm4460_vm12, %v4459_v26, %v4207_v11  ;;  %v6512_v4 = vld [vmem:[%s8566_s10 + $0x20] sm:$0xff]   ;;  %v6513_v11 = vld [vmem:[%s8566_s10 + $0x28] sm:$0xff]  }
 0x670   : > { %v4389_v21 = vsel %vm4375_vm15, %v4372_v25, %v4085_v49  ;;  %v4493_v61 = vsel %vm4477_vm5, %v4476_v46, %v4231_v38  ;;  %v6514_v63 = vld [vmem:[%s8566_s10 + $0x30] sm:$0xff]   ;;  %v6516_v25 = vld [vmem:[%s8568_s12] sm:$0xff]   ;;  %vm5097_vm15 = vcmask 687104  }
 0x672   : > { %v4109_v15 = vpop.permute.xlu1 %4108  ;;  %v3965_v37 = vpop.permute.xlu0 %3964 }
 0x673   : > { %v4406_v56 = vsel %vm8659_vm9, %v4389_v21, %v4109_v15  ;;  %v4304_v28 = vsel %vm8660_vm1, %v4287_v16, %v3965_v37  ;;  %v6518_v16 = vld [vmem:[%s8568_s12 + $0x10] sm:$0xff]   ;;  %v5430_v37 = vld [vmem:[%s8565_s9] ss:$0 sm:$0xff] }
 0x674   : > { %v4423_v18 = vsel %vm4409_vm4, %v4406_v56, %v4133_v23  ;;  %v4321_v7 = vsel %vm8661_vm10, %v4304_v28, %v3989_v36  ;;  %vm8663_vm4 = vcmask 130048  }
 0x675   : > { %v4617_v58 = vunpack.c.l.b16 %v4423_v18  ;;  %v4338_v6 = vsel %vm4324_vm2, %v4321_v7, %v4013_v31  ;;  %vm8662_vm2 = vmmov 0  }
 0x676   : > { %v4616_v9 = vunpack.c.l.b16 %v4338_v6  ;;  %v4205_v33 = vpop.permute.xlu1 %4204  ;;  %v4157_v17 = vpop.permute.xlu0 %4156 }
 0x677   : > { %v4655_v30 = vrot.slane %v4617_v58, 2  ;;  %v4440_v20 = vsel %vm4426_vm8, %v4133_v23, %v4157_v17  ;;  %vm5000_vm8 = vcmask 1043456   ;;  %v6521_v17 = vld [vmem:[%s8568_s12 + $0x28] ss:$0 sps:$4 sm:$0x33]  }
 0x678   : > { %v4639_v52 = vrot.slane %v4616_v9, 2  ;;  %v4457_v43 = vsel %vm4443_vm11, %v4440_v20, %v4181_v42  ;;  %v5002_v1 = vsel %vm5000_vm8, %v6515_v53, 0  ;;  %vm4996_vm11 = vcmask 982016  }
 0x679   : > { %v4474_v32 = vsel %vm4460_vm12, %v4457_v43, %v4205_v33  ;;  %v4656_v54 = vsel %vm4640_vm13, %v4655_v30, %v8379_v59  ;;  %v6520_v33 = vld [vmem:[%s8568_s12 + $0x20] sm:$0xff]   ;;  %vm8664_vm12 = vcmask 1041408  }
 0x67a   : > { %v4255_v47 = vpop.permute.xlu1 %4254  ;;  %v4491_v60 = vsel %vm4477_vm5, %v4474_v32, %v4229_v34  ;;  %v4641_v55 = vsel %vm4640_vm13, %v4639_v52, %v8386_v22  ;;  %v4253_v39 = vpop.permute.xlu0 %4252  ;;  %v4658_v62 = vsel %vm4643_vm14, %v4657_v3, %v4656_v54  ;;  %v6508_v34 = vld [vmem:[%s8566_s10] sm:$0xff]   ;;  %v5102_v46 = vsel %vm8664_vm12, %v6521_v17, 0 }
 0x67b   : > { %v4510_v50 = vsel %vm4494_vm6, %v4493_v61, %v4255_v47  ;;  %v4623_v42 = vunpack.c.l.b16 %v4255_v47  ;;  %v4508_v19 = vsel %vm4494_vm6, %v4491_v60, %v4253_v39  ;;  %v4619_v49 = vunpack.c.l.b16 %v4253_v39  ;;  %v5457_v30 = vld [vmem:[%s8567_s11] ss:$0 sm:$0xff] }
 0x67c   : > { %v4622_v40 = vunpack.c.l.b16 %v4510_v50  ;;  %v4618_v36 = vunpack.c.l.b16 %v4508_v19  ;;  %v4688_v59 = vpack.c.b16 %v4658_v62, %v4658_v62  ;;  %v4644_v38 = vsel %vm4643_vm14, %v4642_v29, %v4641_v55 }
 0x67d   : > { %v4685_v10 = vrot.slane %v4623_v42, 1  ;;  %v4683_v22 = vrot.slane %v4619_v49, 2  ;;  %v4687_v23 = vpack.c.b16 %v4644_v38, %v4644_v38 }
 0x67e   : > { %v4671_v57 = vrot.slane %v4622_v40, 1  ;;  %v4669_v35 = vrot.slane %v4618_v36, 2  ;;  %4879 = vmatprep.mubr.bf16.mxu1 %v4688_v59 }
 0x67f   : > { %v4684_v0 = vsel %vm4640_vm13, %v4683_v22, %v8389_v48  ;;  %4880 = vmatmul.mubr.bf16.vlgmr.msra.gmra.mrb[164].mxu1 %v4687_v23 }
 0x680   : > { %v4670_v8 = vsel %vm4640_vm13, %v4669_v35, %v8394_v41  ;;  %v4686_v31 = vsel %vm4643_vm14, %v4685_v10, %v4684_v0  ;;  %6335 = vmatpush3.bf16.msra.mxu1 %v6508_v34  ;;  %6350 = vmatprep.mubr.msk.bf16.mxu1 %vm8662_vm2, %v6591_v12  ;;  %v6510_v41 = vld [vmem:[%s8566_s10 + $0x10] sm:$0xff]  }
 0x681   : > { %v4690_v14 = vpack.c.b16 %v4686_v31, %v4686_v31  ;;  %v4672_v44 = vsel %vm4643_vm14, %v4671_v57, %v4670_v8  ;;  %6336 = vmatprep.subr.bf16.mxu1 %v6591_v12 }
 0x682   : > { %v4689_v48 = vpack.c.b16 %v4672_v44, %v4672_v44 }
 0x683   : > { %5456 = vmatprep.mubr.msk.bf16.mxu0 %vm8663_vm4, %v4690_v14 }
 0x684   : > { %4920 = vmatmul.mubr.bf16.vlgmr.msra.gmra.mrb[156].mxu0 %v4689_v48  ;;  %6337 = vmatpush3.bf16.msra.mxu1 %v6509_v2 }
 0x685   : > { %6338 = vmatprep.subr.bf16.mxu1 %v6591_v12  ;;  %6366 = vmatprep.mubr.msk.bf16.mxu0 %vm8662_vm2, %v6591_v12 }
 0x686   : > { %6355 = vmatpush3.bf16.msra.mxu0 %v6516_v25 }
 0x687   : > { %6356 = vmatprep.subr.bf16.mxu0 %v6591_v12 }
 0x688   : > { %6339 = vmatpush3.bf16.msra.mxu1 %v6510_v41 }
 0x689   : > { %6340 = vmatprep.subr.bf16.mxu1 %v6591_v12 }
 0x68a   : > { %6357 = vmatpush3.bf16.msra.mxu0 %v6517_v13 }
 0x68b   : > { %6358 = vmatprep.subr.bf16.mxu0 %v6591_v12 }
 0x68c   : > { %6341 = vmatpush3.bf16.msra.mxu1 %v6511_v45 }
 0x68d   : > { %6342 = vmatprep.subr.bf16.mxu1 %v6591_v12 }
 0x68e   : > { %6359 = vmatpush3.bf16.msra.mxu0 %v6518_v16 }
 0x68f   : > { %6360 = vmatprep.subr.bf16.mxu0 %v6591_v12 }
 0x690   : > { %6343 = vmatpush3.bf16.msra.mxu1 %v6512_v4 }
 0x691   : > { %6344 = vmatprep.subr.bf16.mxu1 %v6591_v12 }
 0x692   : > { %6361 = vmatpush3.bf16.msra.mxu0 %v6519_v5 }
 0x693   : > { %6362 = vmatprep.subr.bf16.mxu0 %v6591_v12 }
 0x694   : > { %6345 = vmatpush3.bf16.msra.mxu1 %v6513_v11 }
 0x695   : > { %6346 = vmatprep.subr.bf16.mxu1 %v6591_v12 }
 0x696   : > { %6363 = vmatpush3.bf16.msra.mxu0 %v6520_v33 }
 0x697   : > { %6364 = vmatprep.subr.bf16.mxu0 %v6591_v12 }
 0x698   : > { %6347 = vmatpush3.bf16.msra.mxu1 %v6514_v63 }
 0x699   : > { %6348 = vmatprep.subr.bf16.mxu1 %v6591_v12  ;;  %v5467_v12 = vld [vmem:[%s8569_s13] ss:$0 sm:$0xff] }
 0x69a   : > { %6365 = vmatpush3.bf16.msra.mxu0 %v5102_v46 }
 0x69c   : > { %6349 = vmatpush3.bf16.msra.mxu1 %v5002_v1 }
 0x752   : > { %v5880_v21 = vpop.f32.mrb[164].mxu1 }
 0x753   : > { %v5881_v15 = vpop.f32.mrb[165].mxu1 }
 0x754   : > { %v5882_v27 = vadd.f32 %v5881_v15, %v5880_v21  ;;  %v5883_v56 = vpop.f32.mrb[166].mxu1 }
 0x755   : > { %v5884_v28 = vpop.f32.mrb[167].mxu1 }
 0x756   : > { %v4882_v24 = vadd.f32 %v5882_v27, %v5430_v37 }
 0x757   : > { %v4921_v18 = vpop.f32.mrb[156].mxu0 }
 0x758   : > { %v4922_v7 = vadd.f32 %v4921_v18, %v4882_v24  ;;  %v4923_v51 = vpop.f32.mrb[157].mxu0 }
 0x759   : > { %v4924_v58 = vpop.f32.mrb[158].mxu0 }
 0x75a   : > { %v4927_v6 = vmax.f32 %v4922_v7, 0.0  ;;  %v4925_v26 = vpop.f32.mrb[159].mxu0 }
 0x75c   : > { %v4928_v9 = vpack.c.bf16 %v4927_v6, %v4927_v6 }
 0x75e   : > { %6351 = vmatmul.mubr.msk.bf16.vlgmr.msra.gmra.mrb[168].mxu1 %vm4996_vm11, %v4928_v9 }
 0x831   : > { %v5038_v20 = vpop.f32.mrb[168].mxu1 }
 0x832   : > { %v5039_v3 = vadd.f32 %v5457_v30, %v5038_v20  ;;  %v6352_v52 = vpop.f32.mrb[169].mxu1 }
 0x833   : > { %v5041_v43 = vpop.f32.mrb[170].mxu1 }
 0x834   : > { %v5044_v29 = vmax.f32 %v5039_v3, 0.0  ;;  %v6353_v32 = vpop.f32.mrb[171].mxu1 }
 0x836   : > { %v5045_v54 = vpack.c.bf16 %v5044_v29, %v5044_v29 }
 0x838   : > { %6367 = vmatmul.mubr.msk.bf16.vlgmr.msra.gmra.mrb[160].mxu0 %vm5097_vm15, %v5045_v54 }
 0x90b   : > { %v5138_v61 = vpop.f32.mrb[160].mxu0 }
 0x90c   : > { %v5139_v47 = vadd.f32 %v5467_v12, %v5138_v61  ;;  %v6368_v60 = vpop.f32.mrb[161].mxu0 }
 0x90d   : > { %v5141_v55 = vpop.f32.mrb[162].mxu0 }
 0x90e   : > { %5144 = vst [vmem:[%s463_s21] sm:$0xff] %v5139_v47  ;;  %v6369_v39 = vpop.f32.mrb[163].mxu0 }
 0x90f   : > { %6536 = shalt.err (!%p6533_p3)
}
 0x910   : > { %s6537_s4 = scalar_lea.hbm %s8514_s25, 128  ;;  %s6541_s16 = scalar_lea.hbm %s8570_s14, 256 }
 0x911   : > { %p6538_p4 = scmp.ne.s32.totalorder %s8514_s25, %s6537_s4  ;;  %p6542_p9 = scmp.lt.u32.totalorder %s8514_s25, %s8570_s14 }
 0x912   : > { %p6543_p10 = scmp.lt.u32.totalorder %s6541_s16, %s6537_s4  ;;  %p6545_p12 = scmp.lt.u32.totalorder %s6537_s4, %s8514_s25 }
 0x913   : > { %p6539_p7 = pnand %p6538_p4, %p6723_p5 }
 0x914   : > { %p6544_p11 = por %p6543_p10, %p6542_p9 }
 0x915   : > { %p6540_p8 = pneg %p6539_p7 }
 0x916   : > { %p6546_p13 = por %p6545_p12, %p6544_p11 }
 0x918   : > { %p6547_p0 = pnand %p6546_p13, %p6540_p8 }
 0x91a   : > { %6550 = shalt.err (!%p6547_p0)
}
 0x91b   : > { %6372 = dma.vmem_to_hbm [thread:$0]  (%p6723_p5), %s8516_s6, 128, %s8514_s25, %s5146_s2  }
 0x91c PF: > { %s8665_s15 = sld [smem:[#allocation7_spill]]  ;;  %s8666_s24 = sld [smem:[#allocation5_spill]] }
 0x922   : > { %p6378_p1 = scmp.ge.s32.totalorder %s8665_s15, 2  ;;  %s5171_s18 = sand.u32 1, %s8666_s24  }
 0x923   : > { %s5172_s26 = scalar_lea.sflag [#allocation3], %s5171_s18 }
 0x924   : > { %p6375_p2 = pnand %p6378_p1, %p6727_p6 }
 0x926   : > { %6568 = dma.done.wait (!%p6375_p2), %s5172_s26, 128  }
 0x927   : > { %6570 = vsyncadd (!%p6375_p2), %s5172_s26, 4294967168  ;;  %s8668_s16 = sld [smem:[#allocation8_spill]]  ;;  %s8669_s0 = sld [smem:[#allocation6_spill]] }
 0x928   : > { %s8670_s15 = sld [smem:[#allocation9_spill]]  ;;  %s8671_s29 = smov %s6577_s30 }
 0x92d   : > { %p24_p3 = scmp.ge.s32.totalorder %s8668_s16, 4   ;;  %s8672_s30 = smov %s8669_s0 }
 0x92f   :  { %26 = sbr.rel (!%p24_p3) target bundleno = 12 (0xc), region = 114 }
 0x936   :  { %5177 = vsyncpa [#allocation3], 1 }
 0x937   :  { %5179 = vsyncpa [#allocation3 + $0x1], 1 }

</bundles_post_ra>
